<compile_context>
chip_gen: v7x
topology: tpu7x:2x2x1
jax: 0.10.0
libtpu: 0.0.40
codegen_flags: <defaults>
</compile_context>

<pallas_src>
import math

import jax
import jax.numpy as jnp
from jax.experimental import pallas as pl
from jax.experimental.pallas import tpu as pltpu

D_MODEL = 32
NUM_HEADS = 4
D_K = D_MODEL // NUM_HEADS
D_FF = 64
NUM_LAYERS = 2
EPS = 1e-5
NEG_INF = -1e9


# ----------------------------- kernel helpers ------------------------------
def _layer_norm(v, g, b):
    mu = jnp.mean(v, axis=-1, keepdims=True)
    var = jnp.mean((v - mu) ** 2, axis=-1, keepdims=True)
    return (v - mu) * jax.lax.rsqrt(var + EPS) * g + b


def _attend(q, k, v, bias, wo, bo):
    """Head-batched attention.  q:(Lq,D) k,v:(S,D) f32, bias additive (Lq|1,S)."""
    lq = q.shape[0]
    s_len = k.shape[0]
    scale = 1.0 / math.sqrt(D_K)
    # (H, Lq, Dk) / (H, S, Dk), transposes done in f32, bf16 only at MXU input.
    qh = jnp.transpose((q * scale).reshape(lq, NUM_HEADS, D_K), (1, 0, 2))
    kh = jnp.transpose(k.reshape(s_len, NUM_HEADS, D_K), (1, 0, 2))
    vh = jnp.transpose(v.reshape(s_len, NUM_HEADS, D_K), (1, 0, 2))
    qh = qh.astype(jnp.bfloat16)
    kh = kh.astype(jnp.bfloat16)
    vh = vh.astype(jnp.bfloat16)

    scores = jnp.einsum("hld,hsd->hls", qh, kh,
                        preferred_element_type=jnp.float32)
    scores = scores + bias[None]                       # broadcast over heads
    m = jnp.max(scores, axis=-1, keepdims=True)
    p = jnp.exp(scores - m)
    p = p * pl.reciprocal(jnp.sum(p, axis=-1, keepdims=True), approx=True)

    ctx = jnp.einsum("hls,hsd->hld", p.astype(jnp.bfloat16), vh,
                     preferred_element_type=jnp.float32)       # (H, Lq, Dk)
    ctx = jnp.transpose(ctx, (1, 0, 2)).reshape(lq, D_MODEL)   # (Lq, D)
    return jnp.dot(ctx.astype(jnp.bfloat16), wo,
                   preferred_element_type=jnp.float32) + bo


# ------------------------------ fused kernel --------------------------------
def decoder_kernel(x_ref, e_ref, em_ref, dm_ref,
                   ln_g_ref, ln_b_ref,
                   swqkv_ref, sbqkv_ref, swo_ref, sbo_ref,
                   cwq_ref, cbq_ref, cwkv_ref, cbkv_ref, cwo_ref, cbo_ref,
                   w1_ref, b1_ref, w2_ref, b2_ref,
                   fg_ref, fb_ref,
                   out_ref):
    x = x_ref[0]                                    # (L, D)  f32 residual stream
    e_bf = e_ref[0].astype(jnp.bfloat16)            # (S, D)  encoder output
    # additive mask biases computed once per batch element (0 keep, -1e9 mask)
    d_bias = (dm_ref[0] - 1.0) * 1e9                # (L, L)
    e_bias = (em_ref[0] - 1.0) * 1e9                # (1, S)

    for l in range(NUM_LAYERS):                     # static layer loop, fully fused
        lg = ln_g_ref[l]                            # (3, D)
        lb = ln_b_ref[l]

        # --- masked multi-head self-attention (pre-LN, residual) ---
        x1 = _layer_norm(x, lg[0], lb[0])
        qkv = jnp.dot(x1.astype(jnp.bfloat16), swqkv_ref[l],
                      preferred_element_type=jnp.float32) + sbqkv_ref[l]
        x = x + _attend(qkv[:, :D_MODEL],
                        qkv[:, D_MODEL:2 * D_MODEL],
                        qkv[:, 2 * D_MODEL:],
                        d_bias, swo_ref[l], sbo_ref[l])

        # --- cross-attention over encoder output (pre-LN, residual) ---
        x2 = _layer_norm(x, lg[1], lb[1])
        q = jnp.dot(x2.astype(jnp.bfloat16), cwq_ref[l],
                    preferred_element_type=jnp.float32) + cbq_ref[l]
        kv = jnp.dot(e_bf, cwkv_ref[l],
                     preferred_element_type=jnp.float32) + cbkv_ref[l]
        x = x + _attend(q, kv[:, :D_MODEL], kv[:, D_MODEL:],
                        e_bias, cwo_ref[l], cbo_ref[l])

        # --- position-wise feed-forward (pre-LN, residual) ---
        x3 = _layer_norm(x, lg[2], lb[2])
        h = jnp.maximum(jnp.dot(x3.astype(jnp.bfloat16), w1_ref[l],
                                preferred_element_type=jnp.float32) + b1_ref[l],
                        0.0)
        x = x + jnp.dot(h.astype(jnp.bfloat16), w2_ref[l],
                        preferred_element_type=jnp.float32) + b2_ref[l]

    # final LayerNorm fused into the same kernel
    out_ref[0] = _layer_norm(x, fg_ref[0], fb_ref[0])


# ------------------------------ host wrapper --------------------------------
def decoder_forward(x, e_output, e_mask, d_mask, p):
    B, L, D = x.shape
    S = e_output.shape[1]

    weight_args = (
        p["ln_g"], p["ln_b"],
        p["self_wqkv"], p["self_bqkv"], p["self_wo"], p["self_bo"],
        p["cross_wq"], p["cross_bq"], p["cross_wkv"], p["cross_bkv"],
        p["cross_wo"], p["cross_bo"],
        p["ffn_w1"], p["ffn_b1"], p["ffn_w2"], p["ffn_b2"],
        p["final_ln_g"], p["final_ln_b"],
    )

    def rep_spec(a):
        n = a.ndim
        return pl.BlockSpec(a.shape, lambda b: (0,) * n)   # whole array, VMEM-resident

    in_specs = [
        pl.BlockSpec((1, L, D), lambda b: (b, 0, 0)),       # x
        pl.BlockSpec((1, S, D), lambda b: (b, 0, 0)),       # e_output
        pl.BlockSpec((1, 1, S), lambda b: (b, 0, 0)),       # e_mask
        pl.BlockSpec((1, L, L), lambda b: (b, 0, 0)),       # d_mask
    ] + [rep_spec(a) for a in weight_args]

    return pl.pallas_call(
        decoder_kernel,
        out_shape=jax.ShapeDtypeStruct((B, L, D), jnp.float32),
        grid=(B,),
        in_specs=in_specs,
        out_specs=pl.BlockSpec((1, L, D), lambda b: (b, 0, 0)),
        compiler_params=pltpu.CompilerParams(dimension_semantics=("parallel",)),
    )(x, e_output, e_mask, d_mask, *weight_args)


# --------------------------- deterministic params ---------------------------
def init_params(key):
    names = ("ln_g", "ln_b", "self_wqkv", "self_bqkv", "self_wo", "self_bo",
             "cross_wq", "cross_bq", "cross_wkv", "cross_bkv", "cross_wo",
             "cross_bo", "ffn_w1", "ffn_b1", "ffn_w2", "ffn_b2")
    acc = {n: [] for n in names}
    for _ in range(NUM_LAYERS):
        key, *ks = jax.random.split(key, 7)
        sw = 0.05 * jax.random.normal(ks[0], (4, D_MODEL, D_MODEL), jnp.float32)
        sb = 0.01 * jax.random.normal(ks[1], (4, D_MODEL), jnp.float32)
        cw = 0.05 * jax.random.normal(ks[2], (4, D_MODEL, D_MODEL), jnp.float32)
        cb = 0.01 * jax.random.normal(ks[3], (4, D_MODEL), jnp.float32)
        w1 = 0.05 * jax.random.normal(ks[4], (D_MODEL, D_FF), jnp.float32)
        w2 = 0.05 * jax.random.normal(ks[5], (D_FF, D_MODEL), jnp.float32)

        acc["ln_g"].append(jnp.ones((3, D_MODEL), jnp.float32))
        acc["ln_b"].append(jnp.zeros((3, D_MODEL), jnp.float32))
        acc["self_wqkv"].append(jnp.concatenate([sw[0], sw[1], sw[2]], axis=1))
        acc["self_bqkv"].append(jnp.concatenate([sb[0], sb[1], sb[2]])[None, :])
        acc["self_wo"].append(sw[3])
        acc["self_bo"].append(sb[3][None, :])
        acc["cross_wq"].append(cw[0])
        acc["cross_bq"].append(cb[0][None, :])
        acc["cross_wkv"].append(jnp.concatenate([cw[1], cw[2]], axis=1))
        acc["cross_bkv"].append(jnp.concatenate([cb[1], cb[2]])[None, :])
        acc["cross_wo"].append(cw[3])
        acc["cross_bo"].append(cb[3][None, :])
        acc["ffn_w1"].append(w1)
        acc["ffn_b1"].append(jnp.zeros((1, D_FF), jnp.float32))
        acc["ffn_w2"].append(w2)
        acc["ffn_b2"].append(jnp.zeros((1, D_MODEL), jnp.float32))

    params = {k: jnp.stack(v, axis=0) for k, v in acc.items()}
    # MXU-native bf16 weights; biases / LN params / accumulation stay f32.
    for k in ("self_wqkv", "self_wo", "cross_wq", "cross_wkv", "cross_wo",
              "ffn_w1", "ffn_w2"):
        params[k] = params[k].astype(jnp.bfloat16)
    params["final_ln_g"] = jnp.ones((1, D_MODEL), jnp.float32)
    params["final_ln_b"] = jnp.zeros((1, D_MODEL), jnp.float32)
    return params


# ----------------------------- pure-JAX reference ----------------------------
def ref_decoder(x, e, e_mask, d_mask, p):
    def ln(v, g, b):
        mu = v.mean(-1, keepdims=True)
        var = ((v - mu) ** 2).mean(-1, keepdims=True)
        return (v - mu) / jnp.sqrt(var + EPS) * g + b

    def attn(q_in, kv_in, mask, wq, bq, wk, bk, wv, bv, wo, bo):
        B = q_in.shape[0]
        q = q_in @ wq + bq
        k = kv_in @ wk + bk
        v = kv_in @ wv + bv

        def split(t):
            return t.reshape(B, t.shape[1], NUM_HEADS, D_K).transpose(0, 2, 1, 3)

        qh, kh, vh = split(q), split(k), split(v)
        s = jnp.einsum("bhld,bhsd->bhls", qh, kh) / math.sqrt(D_K)
        s = jnp.where(mask[:, None] == 0.0, NEG_INF, s)
        pr = jax.nn.softmax(s, axis=-1)
        o = jnp.einsum("bhls,bhsd->bhld", pr, vh)
        o = o.transpose(0, 2, 1, 3).reshape(B, q_in.shape[1], D_MODEL)
        return o @ wo + bo

    D = D_MODEL
    f32 = lambda a: a.astype(jnp.float32)
    for l in range(NUM_LAYERS):
        wqkv = f32(p["self_wqkv"][l]); bqkv = p["self_bqkv"][l][0]
        x1 = ln(x, p["ln_g"][l, 0], p["ln_b"][l, 0])
        x = x + attn(x1, x1, d_mask,
                     wqkv[:, :D], bqkv[:D], wqkv[:, D:2 * D], bqkv[D:2 * D],
                     wqkv[:, 2 * D:], bqkv[2 * D:],
                     f32(p["self_wo"][l]), p["self_bo"][l][0])
        wkv = f32(p["cross_wkv"][l]); bkv = p["cross_bkv"][l][0]
        x2 = ln(x, p["ln_g"][l, 1], p["ln_b"][l, 1])
        x = x + attn(x2, e, e_mask,
                     f32(p["cross_wq"][l]), p["cross_bq"][l][0],
                     wkv[:, :D], bkv[:D], wkv[:, D:], bkv[D:],
                     f32(p["cross_wo"][l]), p["cross_bo"][l][0])
        x3 = ln(x, p["ln_g"][l, 2], p["ln_b"][l, 2])
        h = jnp.maximum(x3 @ f32(p["ffn_w1"][l]) + p["ffn_b1"][l][0], 0.0)
        x = x + h @ f32(p["ffn_w2"][l]) + p["ffn_b2"][l][0]
    return ln(x, p["final_ln_g"][0], p["final_ln_b"][0])


if __name__ == "__main__":
    B, L, S = 2, 8, 16
    key = jax.random.PRNGKey(0)
    k1, k2, kp = jax.random.split(key, 3)

    x = jax.random.normal(k1, (B, L, D_MODEL), jnp.float32)
    e_output = jax.random.normal(k2, (B, S, D_MODEL), jnp.float32)

    # e_mask: (B, 1, S); pad out last 4 source positions of batch element 1
    e_mask = jnp.ones((B, 1, S), jnp.float32).at[1, 0, S - 4:].set(0.0)
    # d_mask: (B, L, L) causal mask
    d_mask = jnp.broadcast_to(jnp.tril(jnp.ones((L, L), jnp.float32)), (B, L, L))

    params = init_params(kp)
    out = decoder_forward(x, e_output, e_mask, d_mask, params)
    out = jax.block_until_ready(out)

    assert out.shape == (B, L, D_MODEL)
    assert bool(jnp.all(jnp.isfinite(out)))

    ref = ref_decoder(x, e_output, e_mask, d_mask, params)
    max_err = float(jnp.max(jnp.abs(out - ref)))
    assert max_err < 0.1, f"mismatch vs reference: max_err={max_err}"
    print("KERNEL_OK")
</pallas_src>

<mosaic_0001>
module attributes {stable_mosaic.version = 11 : i64} {
  func.func @decoder_kernel(%arg0: i32, %arg1: memref<1x8x32xf32, #tpu.memory_space<vmem>>, %arg2: memref<1x16x32xf32, #tpu.memory_space<vmem>>, %arg3: memref<1x1x16xf32, #tpu.memory_space<vmem>>, %arg4: memref<1x8x8xf32, #tpu.memory_space<vmem>>, %arg5: memref<2x3x32xf32, #tpu.memory_space<vmem>>, %arg6: memref<2x3x32xf32, #tpu.memory_space<vmem>>, %arg7: memref<2x32x96xbf16, #tpu.memory_space<vmem>>, %arg8: memref<2x1x96xf32, #tpu.memory_space<vmem>>, %arg9: memref<2x32x32xbf16, #tpu.memory_space<vmem>>, %arg10: memref<2x1x32xf32, #tpu.memory_space<vmem>>, %arg11: memref<2x32x32xbf16, #tpu.memory_space<vmem>>, %arg12: memref<2x1x32xf32, #tpu.memory_space<vmem>>, %arg13: memref<2x32x64xbf16, #tpu.memory_space<vmem>>, %arg14: memref<2x1x64xf32, #tpu.memory_space<vmem>>, %arg15: memref<2x32x32xbf16, #tpu.memory_space<vmem>>, %arg16: memref<2x1x32xf32, #tpu.memory_space<vmem>>, %arg17: memref<2x32x64xbf16, #tpu.memory_space<vmem>>, %arg18: memref<2x1x64xf32, #tpu.memory_space<vmem>>, %arg19: memref<2x64x32xbf16, #tpu.memory_space<vmem>>, %arg20: memref<2x1x32xf32, #tpu.memory_space<vmem>>, %arg21: memref<1x32xf32, #tpu.memory_space<vmem>>, %arg22: memref<1x32xf32, #tpu.memory_space<vmem>>, %arg23: memref<1x8x32xf32, #tpu.memory_space<vmem>>) attributes {dimension_semantics = [#tpu.dimension_semantics<parallel>], iteration_bounds = array<i64: 2>, scalar_prefetch = 0 : i64, scratch_operands = 0 : i64, tpu.core_type = #tpu.core_type<tc>, window_params = [{transform_indices = @transform_0, window_bounds = array<i64: 1, 8, 32>}, {transform_indices = @transform_1, window_bounds = array<i64: 1, 16, 32>}, {transform_indices = @transform_2, window_bounds = array<i64: 1, 1, 16>}, {transform_indices = @transform_3, window_bounds = array<i64: 1, 8, 8>}, {pipeline_mode = #tpu.pipeline_mode<synchronous>, transform_indices = @transform_4, window_bounds = array<i64: 2, 3, 32>}, {pipeline_mode = #tpu.pipeline_mode<synchronous>, transform_indices = @transform_5, window_bounds = array<i64: 2, 3, 32>}, {pipeline_mode = #tpu.pipeline_mode<synchronous>, transform_indices = @transform_6, window_bounds = array<i64: 2, 32, 96>}, {pipeline_mode = #tpu.pipeline_mode<synchronous>, transform_indices = @transform_7, window_bounds = array<i64: 2, 1, 96>}, {pipeline_mode = #tpu.pipeline_mode<synchronous>, transform_indices = @transform_8, window_bounds = array<i64: 2, 32, 32>}, {pipeline_mode = #tpu.pipeline_mode<synchronous>, transform_indices = @transform_9, window_bounds = array<i64: 2, 1, 32>}, {pipeline_mode = #tpu.pipeline_mode<synchronous>, transform_indices = @transform_10, window_bounds = array<i64: 2, 32, 32>}, {pipeline_mode = #tpu.pipeline_mode<synchronous>, transform_indices = @transform_11, window_bounds = array<i64: 2, 1, 32>}, {pipeline_mode = #tpu.pipeline_mode<synchronous>, transform_indices = @transform_12, window_bounds = array<i64: 2, 32, 64>}, {pipeline_mode = #tpu.pipeline_mode<synchronous>, transform_indices = @transform_13, window_bounds = array<i64: 2, 1, 64>}, {pipeline_mode = #tpu.pipeline_mode<synchronous>, transform_indices = @transform_14, window_bounds = array<i64: 2, 32, 32>}, {pipeline_mode = #tpu.pipeline_mode<synchronous>, transform_indices = @transform_15, window_bounds = array<i64: 2, 1, 32>}, {pipeline_mode = #tpu.pipeline_mode<synchronous>, transform_indices = @transform_16, window_bounds = array<i64: 2, 32, 64>}, {pipeline_mode = #tpu.pipeline_mode<synchronous>, transform_indices = @transform_17, window_bounds = array<i64: 2, 1, 64>}, {pipeline_mode = #tpu.pipeline_mode<synchronous>, transform_indices = @transform_18, window_bounds = array<i64: 2, 64, 32>}, {pipeline_mode = #tpu.pipeline_mode<synchronous>, transform_indices = @transform_19, window_bounds = array<i64: 2, 1, 32>}, {pipeline_mode = #tpu.pipeline_mode<synchronous>, transform_indices = @transform_20, window_bounds = array<i64: 1, 32>}, {pipeline_mode = #tpu.pipeline_mode<synchronous>, transform_indices = @transform_21, window_bounds = array<i64: 1, 32>}, {transform_indices = @transform_22, window_bounds = array<i64: 1, 8, 32>}]} {
    %c0 = arith.constant 0 : index
    %c0_0 = arith.constant 0 : index
    %c0_1 = arith.constant 0 : index
    %0 = vector.load %arg1[%c0, %c0_0, %c0_1] : memref<1x8x32xf32, #tpu.memory_space<vmem>>, vector<1x8x32xf32>
    %1 = vector.shape_cast %0 : vector<1x8x32xf32> to vector<8x32xf32>
    %c0_2 = arith.constant 0 : index
    %c0_3 = arith.constant 0 : index
    %c0_4 = arith.constant 0 : index
    %2 = vector.load %arg2[%c0_2, %c0_3, %c0_4] : memref<1x16x32xf32, #tpu.memory_space<vmem>>, vector<1x16x32xf32>
    %3 = vector.shape_cast %2 : vector<1x16x32xf32> to vector<16x32xf32>
    %4 = arith.truncf %3 : vector<16x32xf32> to vector<16x32xbf16>
    %c0_5 = arith.constant 0 : index
    %c0_6 = arith.constant 0 : index
    %c0_7 = arith.constant 0 : index
    %5 = vector.load %arg4[%c0_5, %c0_6, %c0_7] : memref<1x8x8xf32, #tpu.memory_space<vmem>>, vector<1x8x8xf32>
    %6 = vector.shape_cast %5 : vector<1x8x8xf32> to vector<8x8xf32>
    %cst = arith.constant 1.000000e+00 : f32
    %7 = vector.broadcast %cst : f32 to vector<8x8xf32>
    %8 = arith.subf %6, %7 : vector<8x8xf32>
    %cst_8 = arith.constant 1.000000e+09 : f32
    %9 = vector.broadcast %cst_8 : f32 to vector<8x8xf32>
    %10 = arith.mulf %8, %9 : vector<8x8xf32>
    %c0_9 = arith.constant 0 : index
    %c0_10 = arith.constant 0 : index
    %c0_11 = arith.constant 0 : index
    %11 = vector.load %arg3[%c0_9, %c0_10, %c0_11] : memref<1x1x16xf32, #tpu.memory_space<vmem>>, vector<1x1x16xf32>
    %12 = vector.shape_cast %11 : vector<1x1x16xf32> to vector<1x16xf32>
    %cst_12 = arith.constant 1.000000e+00 : f32
    %13 = vector.broadcast %cst_12 : f32 to vector<1x16xf32>
    %14 = arith.subf %12, %13 : vector<1x16xf32>
    %cst_13 = arith.constant 1.000000e+09 : f32
    %15 = vector.broadcast %cst_13 : f32 to vector<1x16xf32>
    %16 = arith.mulf %14, %15 : vector<1x16xf32>
    %c0_14 = arith.constant 0 : index
    %c0_15 = arith.constant 0 : index
    %c0_16 = arith.constant 0 : index
    %17 = vector.load %arg5[%c0_14, %c0_15, %c0_16] : memref<2x3x32xf32, #tpu.memory_space<vmem>>, vector<1x3x32xf32>
    %18 = vector.shape_cast %17 : vector<1x3x32xf32> to vector<3x32xf32>
    %c0_17 = arith.constant 0 : index
    %c0_18 = arith.constant 0 : index
    %c0_19 = arith.constant 0 : index
    %19 = vector.load %arg6[%c0_17, %c0_18, %c0_19] : memref<2x3x32xf32, #tpu.memory_space<vmem>>, vector<1x3x32xf32>
    %20 = vector.shape_cast %19 : vector<1x3x32xf32> to vector<3x32xf32>
    %21 = vector.extract_strided_slice %18 {offsets = [0, 0], sizes = [1, 32], strides = [1, 1]} : vector<3x32xf32> to vector<1x32xf32>
    %22 = vector.shape_cast %21 : vector<1x32xf32> to vector<32xf32>
    %23 = vector.extract_strided_slice %20 {offsets = [0, 0], sizes = [1, 32], strides = [1, 1]} : vector<3x32xf32> to vector<1x32xf32>
    %24 = vector.shape_cast %23 : vector<1x32xf32> to vector<32xf32>
    %cst_20 = arith.constant dense<0.000000e+00> : vector<8xf32>
    %25 = vector.multi_reduction <add>, %1, %cst_20 [1] : vector<8x32xf32> to vector<8xf32>
    %26 = vector.shape_cast %25 : vector<8xf32> to vector<8x1xf32>
    %cst_21 = arith.constant 3.200000e+01 : f32
    %27 = vector.broadcast %cst_21 : f32 to vector<8x1xf32>
    %28 = arith.divf %26, %27 : vector<8x1xf32>
    %29 = vector.broadcast %28 : vector<8x1xf32> to vector<8x32xf32>
    %30 = arith.subf %1, %29 : vector<8x32xf32>
    %31 = arith.mulf %30, %30 : vector<8x32xf32>
    %cst_22 = arith.constant dense<0.000000e+00> : vector<8xf32>
    %32 = vector.multi_reduction <add>, %31, %cst_22 [1] : vector<8x32xf32> to vector<8xf32>
    %33 = vector.shape_cast %32 : vector<8xf32> to vector<8x1xf32>
    %cst_23 = arith.constant 3.200000e+01 : f32
    %34 = vector.broadcast %cst_23 : f32 to vector<8x1xf32>
    %35 = arith.divf %33, %34 : vector<8x1xf32>
    %36 = vector.broadcast %28 : vector<8x1xf32> to vector<8x32xf32>
    %37 = arith.subf %1, %36 : vector<8x32xf32>
    %cst_24 = arith.constant 9.99999974E-6 : f32
    %38 = vector.broadcast %cst_24 : f32 to vector<8x1xf32>
    %39 = arith.addf %35, %38 : vector<8x1xf32>
    %40 = math.rsqrt %39 : vector<8x1xf32>
    %41 = vector.broadcast %40 : vector<8x1xf32> to vector<8x32xf32>
    %42 = arith.mulf %37, %41 : vector<8x32xf32>
    %43 = vector.shape_cast %22 : vector<32xf32> to vector<1x32xf32>
    %44 = vector.broadcast %43 : vector<1x32xf32> to vector<8x32xf32>
    %45 = arith.mulf %42, %44 : vector<8x32xf32>
    %46 = vector.shape_cast %24 : vector<32xf32> to vector<1x32xf32>
    %47 = vector.broadcast %46 : vector<1x32xf32> to vector<8x32xf32>
    %48 = arith.addf %45, %47 : vector<8x32xf32>
    %49 = arith.truncf %48 : vector<8x32xf32> to vector<8x32xbf16>
    %c0_25 = arith.constant 0 : index
    %c0_26 = arith.constant 0 : index
    %c0_27 = arith.constant 0 : index
    %50 = vector.load %arg7[%c0_25, %c0_26, %c0_27] : memref<2x32x96xbf16, #tpu.memory_space<vmem>>, vector<1x32x96xbf16>
    %51 = vector.shape_cast %50 : vector<1x32x96xbf16> to vector<32x96xbf16>
    %cst_28 = arith.constant dense<0.000000e+00> : vector<8x96xf32>
    %52 = tpu.matmul %49, %51, %cst_28 {dimension_numbers = #tpu.dot_dimension_numbers<[1], [0], [0], [1], [0, 0, 1, 1], [], []>} : vector<8x32xbf16>, vector<32x96xbf16>, vector<8x96xf32> -> vector<8x96xf32>
    %c0_29 = arith.constant 0 : index
    %c0_30 = arith.constant 0 : index
    %c0_31 = arith.constant 0 : index
    %53 = vector.load %arg8[%c0_29, %c0_30, %c0_31] : memref<2x1x96xf32, #tpu.memory_space<vmem>>, vector<1x1x96xf32>
    %54 = vector.shape_cast %53 : vector<1x1x96xf32> to vector<1x96xf32>
    %55 = vector.broadcast %54 : vector<1x96xf32> to vector<8x96xf32>
    %56 = arith.addf %52, %55 : vector<8x96xf32>
    %57 = vector.extract_strided_slice %56 {offsets = [0, 0], sizes = [8, 32], strides = [1, 1]} : vector<8x96xf32> to vector<8x32xf32>
    %58 = vector.extract_strided_slice %56 {offsets = [0, 32], sizes = [8, 32], strides = [1, 1]} : vector<8x96xf32> to vector<8x32xf32>
    %59 = vector.extract_strided_slice %56 {offsets = [0, 64], sizes = [8, 32], strides = [1, 1]} : vector<8x96xf32> to vector<8x32xf32>
    %c0_32 = arith.constant 0 : index
    %c0_33 = arith.constant 0 : index
    %c0_34 = arith.constant 0 : index
    %60 = vector.load %arg9[%c0_32, %c0_33, %c0_34] : memref<2x32x32xbf16, #tpu.memory_space<vmem>>, vector<1x32x32xbf16>
    %61 = vector.shape_cast %60 : vector<1x32x32xbf16> to vector<32x32xbf16>
    %c0_35 = arith.constant 0 : index
    %c0_36 = arith.constant 0 : index
    %c0_37 = arith.constant 0 : index
    %62 = vector.load %arg10[%c0_35, %c0_36, %c0_37] : memref<2x1x32xf32, #tpu.memory_space<vmem>>, vector<1x1x32xf32>
    %63 = vector.shape_cast %62 : vector<1x1x32xf32> to vector<1x32xf32>
    %cst_38 = arith.constant 0.353553385 : f32
    %64 = vector.broadcast %cst_38 : f32 to vector<8x32xf32>
    %65 = arith.mulf %57, %64 : vector<8x32xf32>
    %66 = vector.shape_cast %65 : vector<8x32xf32> to vector<8x4x8xf32>
    %67 = tpu.transpose %66, [1, 0, 2] : vector<8x4x8xf32> -> vector<4x8x8xf32>
    %68 = vector.shape_cast %58 : vector<8x32xf32> to vector<8x4x8xf32>
    %69 = tpu.transpose %68, [1, 0, 2] : vector<8x4x8xf32> -> vector<4x8x8xf32>
    %70 = vector.shape_cast %59 : vector<8x32xf32> to vector<8x4x8xf32>
    %71 = tpu.transpose %70, [1, 0, 2] : vector<8x4x8xf32> -> vector<4x8x8xf32>
    %72 = arith.truncf %67 : vector<4x8x8xf32> to vector<4x8x8xbf16>
    %73 = arith.truncf %69 : vector<4x8x8xf32> to vector<4x8x8xbf16>
    %74 = arith.truncf %71 : vector<4x8x8xf32> to vector<4x8x8xbf16>
    "tpu.trace_start"() <{level = 10 : i32, message = "hld,hsd->hls"}> : () -> ()
    %cst_39 = arith.constant dense<0.000000e+00> : vector<4x8x8xf32>
    %75 = tpu.matmul %72, %73, %cst_39 {dimension_numbers = #tpu.dot_dimension_numbers<[2], [2], [1], [1], [0, 0, 0, 1, 1, 1], [0], [0]>} : vector<4x8x8xbf16>, vector<4x8x8xbf16>, vector<4x8x8xf32> -> vector<4x8x8xf32>
    "tpu.trace_stop"() : () -> ()
    %76 = vector.shape_cast %10 : vector<8x8xf32> to vector<1x8x8xf32>
    %77 = vector.broadcast %76 : vector<1x8x8xf32> to vector<4x8x8xf32>
    %78 = arith.addf %75, %77 : vector<4x8x8xf32>
    %cst_40 = arith.constant dense<0xFF800000> : vector<4x8xf32>
    %79 = vector.multi_reduction <maximumf>, %78, %cst_40 [2] : vector<4x8x8xf32> to vector<4x8xf32>
    %80 = vector.shape_cast %79 : vector<4x8xf32> to vector<4x8x1xf32>
    %81 = vector.broadcast %80 : vector<4x8x1xf32> to vector<4x8x8xf32>
    %82 = arith.subf %78, %81 : vector<4x8x8xf32>
    %83 = math.exp %82 : vector<4x8x8xf32>
    %cst_41 = arith.constant dense<0.000000e+00> : vector<4x8xf32>
    %84 = vector.multi_reduction <add>, %83, %cst_41 [2] : vector<4x8x8xf32> to vector<4x8xf32>
    %85 = vector.shape_cast %84 : vector<4x8xf32> to vector<4x8x1xf32>
    %86 = tpu.reciprocal %85 {approx = true} : vector<4x8x1xf32> -> vector<4x8x1xf32>
    %87 = vector.broadcast %86 : vector<4x8x1xf32> to vector<4x8x8xf32>
    %88 = arith.mulf %83, %87 : vector<4x8x8xf32>
    %89 = arith.truncf %88 : vector<4x8x8xf32> to vector<4x8x8xbf16>
    "tpu.trace_start"() <{level = 10 : i32, message = "hls,hsd->hld"}> : () -> ()
    %cst_42 = arith.constant dense<0.000000e+00> : vector<4x8x8xf32>
    %90 = tpu.matmul %89, %74, %cst_42 {dimension_numbers = #tpu.dot_dimension_numbers<[2], [1], [1], [2], [0, 0, 0, 1, 1, 2], [0], [0]>} : vector<4x8x8xbf16>, vector<4x8x8xbf16>, vector<4x8x8xf32> -> vector<4x8x8xf32>
    "tpu.trace_stop"() : () -> ()
    %91 = tpu.transpose %90, [1, 0, 2] : vector<4x8x8xf32> -> vector<8x4x8xf32>
    %92 = vector.shape_cast %91 : vector<8x4x8xf32> to vector<8x32xf32>
    %93 = arith.truncf %92 : vector<8x32xf32> to vector<8x32xbf16>
    %cst_43 = arith.constant dense<0.000000e+00> : vector<8x32xf32>
    %94 = tpu.matmul %93, %61, %cst_43 {dimension_numbers = #tpu.dot_dimension_numbers<[1], [0], [0], [1], [0, 0, 1, 1], [], []>} : vector<8x32xbf16>, vector<32x32xbf16>, vector<8x32xf32> -> vector<8x32xf32>
    %95 = vector.broadcast %63 : vector<1x32xf32> to vector<8x32xf32>
    %96 = arith.addf %94, %95 : vector<8x32xf32>
    %97 = arith.addf %1, %96 : vector<8x32xf32>
    %98 = vector.extract_strided_slice %18 {offsets = [1, 0], sizes = [1, 32], strides = [1, 1]} : vector<3x32xf32> to vector<1x32xf32>
    %99 = vector.shape_cast %98 : vector<1x32xf32> to vector<32xf32>
    %100 = vector.extract_strided_slice %20 {offsets = [1, 0], sizes = [1, 32], strides = [1, 1]} : vector<3x32xf32> to vector<1x32xf32>
    %101 = vector.shape_cast %100 : vector<1x32xf32> to vector<32xf32>
    %cst_44 = arith.constant dense<0.000000e+00> : vector<8xf32>
    %102 = vector.multi_reduction <add>, %97, %cst_44 [1] : vector<8x32xf32> to vector<8xf32>
    %103 = vector.shape_cast %102 : vector<8xf32> to vector<8x1xf32>
    %cst_45 = arith.constant 3.200000e+01 : f32
    %104 = vector.broadcast %cst_45 : f32 to vector<8x1xf32>
    %105 = arith.divf %103, %104 : vector<8x1xf32>
    %106 = vector.broadcast %105 : vector<8x1xf32> to vector<8x32xf32>
    %107 = arith.subf %97, %106 : vector<8x32xf32>
    %108 = arith.mulf %107, %107 : vector<8x32xf32>
    %cst_46 = arith.constant dense<0.000000e+00> : vector<8xf32>
    %109 = vector.multi_reduction <add>, %108, %cst_46 [1] : vector<8x32xf32> to vector<8xf32>
    %110 = vector.shape_cast %109 : vector<8xf32> to vector<8x1xf32>
    %cst_47 = arith.constant 3.200000e+01 : f32
    %111 = vector.broadcast %cst_47 : f32 to vector<8x1xf32>
    %112 = arith.divf %110, %111 : vector<8x1xf32>
    %113 = vector.broadcast %105 : vector<8x1xf32> to vector<8x32xf32>
    %114 = arith.subf %97, %113 : vector<8x32xf32>
    %cst_48 = arith.constant 9.99999974E-6 : f32
    %115 = vector.broadcast %cst_48 : f32 to vector<8x1xf32>
    %116 = arith.addf %112, %115 : vector<8x1xf32>
    %117 = math.rsqrt %116 : vector<8x1xf32>
    %118 = vector.broadcast %117 : vector<8x1xf32> to vector<8x32xf32>
    %119 = arith.mulf %114, %118 : vector<8x32xf32>
    %120 = vector.shape_cast %99 : vector<32xf32> to vector<1x32xf32>
    %121 = vector.broadcast %120 : vector<1x32xf32> to vector<8x32xf32>
    %122 = arith.mulf %119, %121 : vector<8x32xf32>
    %123 = vector.shape_cast %101 : vector<32xf32> to vector<1x32xf32>
    %124 = vector.broadcast %123 : vector<1x32xf32> to vector<8x32xf32>
    %125 = arith.addf %122, %124 : vector<8x32xf32>
    %126 = arith.truncf %125 : vector<8x32xf32> to vector<8x32xbf16>
    %c0_49 = arith.constant 0 : index
    %c0_50 = arith.constant 0 : index
    %c0_51 = arith.constant 0 : index
    %127 = vector.load %arg11[%c0_49, %c0_50, %c0_51] : memref<2x32x32xbf16, #tpu.memory_space<vmem>>, vector<1x32x32xbf16>
    %128 = vector.shape_cast %127 : vector<1x32x32xbf16> to vector<32x32xbf16>
    %cst_52 = arith.constant dense<0.000000e+00> : vector<8x32xf32>
    %129 = tpu.matmul %126, %128, %cst_52 {dimension_numbers = #tpu.dot_dimension_numbers<[1], [0], [0], [1], [0, 0, 1, 1], [], []>} : vector<8x32xbf16>, vector<32x32xbf16>, vector<8x32xf32> -> vector<8x32xf32>
    %c0_53 = arith.constant 0 : index
    %c0_54 = arith.constant 0 : index
    %c0_55 = arith.constant 0 : index
    %130 = vector.load %arg12[%c0_53, %c0_54, %c0_55] : memref<2x1x32xf32, #tpu.memory_space<vmem>>, vector<1x1x32xf32>
    %131 = vector.shape_cast %130 : vector<1x1x32xf32> to vector<1x32xf32>
    %132 = vector.broadcast %131 : vector<1x32xf32> to vector<8x32xf32>
    %133 = arith.addf %129, %132 : vector<8x32xf32>
    %c0_56 = arith.constant 0 : index
    %c0_57 = arith.constant 0 : index
    %c0_58 = arith.constant 0 : index
    %134 = vector.load %arg13[%c0_56, %c0_57, %c0_58] : memref<2x32x64xbf16, #tpu.memory_space<vmem>>, vector<1x32x64xbf16>
    %135 = vector.shape_cast %134 : vector<1x32x64xbf16> to vector<32x64xbf16>
    %cst_59 = arith.constant dense<0.000000e+00> : vector<16x64xf32>
    %136 = tpu.matmul %4, %135, %cst_59 {dimension_numbers = #tpu.dot_dimension_numbers<[1], [0], [0], [1], [0, 0, 1, 1], [], []>} : vector<16x32xbf16>, vector<32x64xbf16>, vector<16x64xf32> -> vector<16x64xf32>
    %c0_60 = arith.constant 0 : index
    %c0_61 = arith.constant 0 : index
    %c0_62 = arith.constant 0 : index
    %137 = vector.load %arg14[%c0_60, %c0_61, %c0_62] : memref<2x1x64xf32, #tpu.memory_space<vmem>>, vector<1x1x64xf32>
    %138 = vector.shape_cast %137 : vector<1x1x64xf32> to vector<1x64xf32>
    %139 = vector.broadcast %138 : vector<1x64xf32> to vector<16x64xf32>
    %140 = arith.addf %136, %139 : vector<16x64xf32>
    %141 = vector.extract_strided_slice %140 {offsets = [0, 0], sizes = [16, 32], strides = [1, 1]} : vector<16x64xf32> to vector<16x32xf32>
    %142 = vector.extract_strided_slice %140 {offsets = [0, 32], sizes = [16, 32], strides = [1, 1]} : vector<16x64xf32> to vector<16x32xf32>
    %c0_63 = arith.constant 0 : index
    %c0_64 = arith.constant 0 : index
    %c0_65 = arith.constant 0 : index
    %143 = vector.load %arg15[%c0_63, %c0_64, %c0_65] : memref<2x32x32xbf16, #tpu.memory_space<vmem>>, vector<1x32x32xbf16>
    %144 = vector.shape_cast %143 : vector<1x32x32xbf16> to vector<32x32xbf16>
    %c0_66 = arith.constant 0 : index
    %c0_67 = arith.constant 0 : index
    %c0_68 = arith.constant 0 : index
    %145 = vector.load %arg16[%c0_66, %c0_67, %c0_68] : memref<2x1x32xf32, #tpu.memory_space<vmem>>, vector<1x1x32xf32>
    %146 = vector.shape_cast %145 : vector<1x1x32xf32> to vector<1x32xf32>
    %cst_69 = arith.constant 0.353553385 : f32
    %147 = vector.broadcast %cst_69 : f32 to vector<8x32xf32>
    %148 = arith.mulf %133, %147 : vector<8x32xf32>
    %149 = vector.shape_cast %148 : vector<8x32xf32> to vector<8x4x8xf32>
    %150 = tpu.transpose %149, [1, 0, 2] : vector<8x4x8xf32> -> vector<4x8x8xf32>
    %151 = vector.shape_cast %141 : vector<16x32xf32> to vector<16x4x8xf32>
    %152 = tpu.transpose %151, [1, 0, 2] : vector<16x4x8xf32> -> vector<4x16x8xf32>
    %153 = vector.shape_cast %142 : vector<16x32xf32> to vector<16x4x8xf32>
    %154 = tpu.transpose %153, [1, 0, 2] : vector<16x4x8xf32> -> vector<4x16x8xf32>
    %155 = arith.truncf %150 : vector<4x8x8xf32> to vector<4x8x8xbf16>
    %156 = arith.truncf %152 : vector<4x16x8xf32> to vector<4x16x8xbf16>
    %157 = arith.truncf %154 : vector<4x16x8xf32> to vector<4x16x8xbf16>
    "tpu.trace_start"() <{level = 10 : i32, message = "hld,hsd->hls"}> : () -> ()
    %cst_70 = arith.constant dense<0.000000e+00> : vector<4x8x16xf32>
    %158 = tpu.matmul %155, %156, %cst_70 {dimension_numbers = #tpu.dot_dimension_numbers<[2], [2], [1], [1], [0, 0, 0, 1, 1, 1], [0], [0]>} : vector<4x8x8xbf16>, vector<4x16x8xbf16>, vector<4x8x16xf32> -> vector<4x8x16xf32>
    "tpu.trace_stop"() : () -> ()
    %159 = vector.shape_cast %16 : vector<1x16xf32> to vector<1x1x16xf32>
    %160 = vector.broadcast %159 : vector<1x1x16xf32> to vector<4x8x16xf32>
    %161 = arith.addf %158, %160 : vector<4x8x16xf32>
    %cst_71 = arith.constant dense<0xFF800000> : vector<4x8xf32>
    %162 = vector.multi_reduction <maximumf>, %161, %cst_71 [2] : vector<4x8x16xf32> to vector<4x8xf32>
    %163 = vector.shape_cast %162 : vector<4x8xf32> to vector<4x8x1xf32>
    %164 = vector.broadcast %163 : vector<4x8x1xf32> to vector<4x8x16xf32>
    %165 = arith.subf %161, %164 : vector<4x8x16xf32>
    %166 = math.exp %165 : vector<4x8x16xf32>
    %cst_72 = arith.constant dense<0.000000e+00> : vector<4x8xf32>
    %167 = vector.multi_reduction <add>, %166, %cst_72 [2] : vector<4x8x16xf32> to vector<4x8xf32>
    %168 = vector.shape_cast %167 : vector<4x8xf32> to vector<4x8x1xf32>
    %169 = tpu.reciprocal %168 {approx = true} : vector<4x8x1xf32> -> vector<4x8x1xf32>
    %170 = vector.broadcast %169 : vector<4x8x1xf32> to vector<4x8x16xf32>
    %171 = arith.mulf %166, %170 : vector<4x8x16xf32>
    %172 = arith.truncf %171 : vector<4x8x16xf32> to vector<4x8x16xbf16>
    "tpu.trace_start"() <{level = 10 : i32, message = "hls,hsd->hld"}> : () -> ()
    %cst_73 = arith.constant dense<0.000000e+00> : vector<4x8x8xf32>
    %173 = tpu.matmul %172, %157, %cst_73 {dimension_numbers = #tpu.dot_dimension_numbers<[2], [1], [1], [2], [0, 0, 0, 1, 1, 2], [0], [0]>} : vector<4x8x16xbf16>, vector<4x16x8xbf16>, vector<4x8x8xf32> -> vector<4x8x8xf32>
    "tpu.trace_stop"() : () -> ()
    %174 = tpu.transpose %173, [1, 0, 2] : vector<4x8x8xf32> -> vector<8x4x8xf32>
    %175 = vector.shape_cast %174 : vector<8x4x8xf32> to vector<8x32xf32>
    %176 = arith.truncf %175 : vector<8x32xf32> to vector<8x32xbf16>
    %cst_74 = arith.constant dense<0.000000e+00> : vector<8x32xf32>
    %177 = tpu.matmul %176, %144, %cst_74 {dimension_numbers = #tpu.dot_dimension_numbers<[1], [0], [0], [1], [0, 0, 1, 1], [], []>} : vector<8x32xbf16>, vector<32x32xbf16>, vector<8x32xf32> -> vector<8x32xf32>
    %178 = vector.broadcast %146 : vector<1x32xf32> to vector<8x32xf32>
    %179 = arith.addf %177, %178 : vector<8x32xf32>
    %180 = arith.addf %97, %179 : vector<8x32xf32>
    %181 = vector.extract_strided_slice %18 {offsets = [2, 0], sizes = [1, 32], strides = [1, 1]} : vector<3x32xf32> to vector<1x32xf32>
    %182 = vector.shape_cast %181 : vector<1x32xf32> to vector<32xf32>
    %183 = vector.extract_strided_slice %20 {offsets = [2, 0], sizes = [1, 32], strides = [1, 1]} : vector<3x32xf32> to vector<1x32xf32>
    %184 = vector.shape_cast %183 : vector<1x32xf32> to vector<32xf32>
    %cst_75 = arith.constant dense<0.000000e+00> : vector<8xf32>
    %185 = vector.multi_reduction <add>, %180, %cst_75 [1] : vector<8x32xf32> to vector<8xf32>
    %186 = vector.shape_cast %185 : vector<8xf32> to vector<8x1xf32>
    %cst_76 = arith.constant 3.200000e+01 : f32
    %187 = vector.broadcast %cst_76 : f32 to vector<8x1xf32>
    %188 = arith.divf %186, %187 : vector<8x1xf32>
    %189 = vector.broadcast %188 : vector<8x1xf32> to vector<8x32xf32>
    %190 = arith.subf %180, %189 : vector<8x32xf32>
    %191 = arith.mulf %190, %190 : vector<8x32xf32>
    %cst_77 = arith.constant dense<0.000000e+00> : vector<8xf32>
    %192 = vector.multi_reduction <add>, %191, %cst_77 [1] : vector<8x32xf32> to vector<8xf32>
    %193 = vector.shape_cast %192 : vector<8xf32> to vector<8x1xf32>
    %cst_78 = arith.constant 3.200000e+01 : f32
    %194 = vector.broadcast %cst_78 : f32 to vector<8x1xf32>
    %195 = arith.divf %193, %194 : vector<8x1xf32>
    %196 = vector.broadcast %188 : vector<8x1xf32> to vector<8x32xf32>
    %197 = arith.subf %180, %196 : vector<8x32xf32>
    %cst_79 = arith.constant 9.99999974E-6 : f32
    %198 = vector.broadcast %cst_79 : f32 to vector<8x1xf32>
    %199 = arith.addf %195, %198 : vector<8x1xf32>
    %200 = math.rsqrt %199 : vector<8x1xf32>
    %201 = vector.broadcast %200 : vector<8x1xf32> to vector<8x32xf32>
    %202 = arith.mulf %197, %201 : vector<8x32xf32>
    %203 = vector.shape_cast %182 : vector<32xf32> to vector<1x32xf32>
    %204 = vector.broadcast %203 : vector<1x32xf32> to vector<8x32xf32>
    %205 = arith.mulf %202, %204 : vector<8x32xf32>
    %206 = vector.shape_cast %184 : vector<32xf32> to vector<1x32xf32>
    %207 = vector.broadcast %206 : vector<1x32xf32> to vector<8x32xf32>
    %208 = arith.addf %205, %207 : vector<8x32xf32>
    %209 = arith.truncf %208 : vector<8x32xf32> to vector<8x32xbf16>
    %c0_80 = arith.constant 0 : index
    %c0_81 = arith.constant 0 : index
    %c0_82 = arith.constant 0 : index
    %210 = vector.load %arg17[%c0_80, %c0_81, %c0_82] : memref<2x32x64xbf16, #tpu.memory_space<vmem>>, vector<1x32x64xbf16>
    %211 = vector.shape_cast %210 : vector<1x32x64xbf16> to vector<32x64xbf16>
    %cst_83 = arith.constant dense<0.000000e+00> : vector<8x64xf32>
    %212 = tpu.matmul %209, %211, %cst_83 {dimension_numbers = #tpu.dot_dimension_numbers<[1], [0], [0], [1], [0, 0, 1, 1], [], []>} : vector<8x32xbf16>, vector<32x64xbf16>, vector<8x64xf32> -> vector<8x64xf32>
    %c0_84 = arith.constant 0 : index
    %c0_85 = arith.constant 0 : index
    %c0_86 = arith.constant 0 : index
    %213 = vector.load %arg18[%c0_84, %c0_85, %c0_86] : memref<2x1x64xf32, #tpu.memory_space<vmem>>, vector<1x1x64xf32>
    %214 = vector.shape_cast %213 : vector<1x1x64xf32> to vector<1x64xf32>
    %215 = vector.broadcast %214 : vector<1x64xf32> to vector<8x64xf32>
    %216 = arith.addf %212, %215 : vector<8x64xf32>
    %cst_87 = arith.constant 0.000000e+00 : f32
    %217 = vector.broadcast %cst_87 : f32 to vector<8x64xf32>
    %218 = arith.maximumf %216, %217 : vector<8x64xf32>
    %219 = arith.truncf %218 : vector<8x64xf32> to vector<8x64xbf16>
    %c0_88 = arith.constant 0 : index
    %c0_89 = arith.constant 0 : index
    %c0_90 = arith.constant 0 : index
    %220 = vector.load %arg19[%c0_88, %c0_89, %c0_90] : memref<2x64x32xbf16, #tpu.memory_space<vmem>>, vector<1x64x32xbf16>
    %221 = vector.shape_cast %220 : vector<1x64x32xbf16> to vector<64x32xbf16>
    %cst_91 = arith.constant dense<0.000000e+00> : vector<8x32xf32>
    %222 = tpu.matmul %219, %221, %cst_91 {dimension_numbers = #tpu.dot_dimension_numbers<[1], [0], [0], [1], [0, 0, 1, 1], [], []>} : vector<8x64xbf16>, vector<64x32xbf16>, vector<8x32xf32> -> vector<8x32xf32>
    %223 = arith.addf %180, %222 : vector<8x32xf32>
    %c0_92 = arith.constant 0 : index
    %c0_93 = arith.constant 0 : index
    %c0_94 = arith.constant 0 : index
    %224 = vector.load %arg20[%c0_92, %c0_93, %c0_94] : memref<2x1x32xf32, #tpu.memory_space<vmem>>, vector<1x1x32xf32>
    %225 = vector.shape_cast %224 : vector<1x1x32xf32> to vector<1x32xf32>
    %226 = vector.broadcast %225 : vector<1x32xf32> to vector<8x32xf32>
    %227 = arith.addf %223, %226 : vector<8x32xf32>
    %c1 = arith.constant 1 : index
    %c0_95 = arith.constant 0 : index
    %c0_96 = arith.constant 0 : index
    %228 = vector.load %arg5[%c1, %c0_95, %c0_96] : memref<2x3x32xf32, #tpu.memory_space<vmem>>, vector<1x3x32xf32>
    %229 = vector.shape_cast %228 : vector<1x3x32xf32> to vector<3x32xf32>
    %c1_97 = arith.constant 1 : index
    %c0_98 = arith.constant 0 : index
    %c0_99 = arith.constant 0 : index
    %230 = vector.load %arg6[%c1_97, %c0_98, %c0_99] : memref<2x3x32xf32, #tpu.memory_space<vmem>>, vector<1x3x32xf32>
    %231 = vector.shape_cast %230 : vector<1x3x32xf32> to vector<3x32xf32>
    %232 = vector.extract_strided_slice %229 {offsets = [0, 0], sizes = [1, 32], strides = [1, 1]} : vector<3x32xf32> to vector<1x32xf32>
    %233 = vector.shape_cast %232 : vector<1x32xf32> to vector<32xf32>
    %234 = vector.extract_strided_slice %231 {offsets = [0, 0], sizes = [1, 32], strides = [1, 1]} : vector<3x32xf32> to vector<1x32xf32>
    %235 = vector.shape_cast %234 : vector<1x32xf32> to vector<32xf32>
    %cst_100 = arith.constant dense<0.000000e+00> : vector<8xf32>
    %236 = vector.multi_reduction <add>, %227, %cst_100 [1] : vector<8x32xf32> to vector<8xf32>
    %237 = vector.shape_cast %236 : vector<8xf32> to vector<8x1xf32>
    %cst_101 = arith.constant 3.200000e+01 : f32
    %238 = vector.broadcast %cst_101 : f32 to vector<8x1xf32>
    %239 = arith.divf %237, %238 : vector<8x1xf32>
    %240 = vector.broadcast %239 : vector<8x1xf32> to vector<8x32xf32>
    %241 = arith.subf %227, %240 : vector<8x32xf32>
    %242 = arith.mulf %241, %241 : vector<8x32xf32>
    %cst_102 = arith.constant dense<0.000000e+00> : vector<8xf32>
    %243 = vector.multi_reduction <add>, %242, %cst_102 [1] : vector<8x32xf32> to vector<8xf32>
    %244 = vector.shape_cast %243 : vector<8xf32> to vector<8x1xf32>
    %cst_103 = arith.constant 3.200000e+01 : f32
    %245 = vector.broadcast %cst_103 : f32 to vector<8x1xf32>
    %246 = arith.divf %244, %245 : vector<8x1xf32>
    %247 = vector.broadcast %239 : vector<8x1xf32> to vector<8x32xf32>
    %248 = arith.subf %227, %247 : vector<8x32xf32>
    %cst_104 = arith.constant 9.99999974E-6 : f32
    %249 = vector.broadcast %cst_104 : f32 to vector<8x1xf32>
    %250 = arith.addf %246, %249 : vector<8x1xf32>
    %251 = math.rsqrt %250 : vector<8x1xf32>
    %252 = vector.broadcast %251 : vector<8x1xf32> to vector<8x32xf32>
    %253 = arith.mulf %248, %252 : vector<8x32xf32>
    %254 = vector.shape_cast %233 : vector<32xf32> to vector<1x32xf32>
    %255 = vector.broadcast %254 : vector<1x32xf32> to vector<8x32xf32>
    %256 = arith.mulf %253, %255 : vector<8x32xf32>
    %257 = vector.shape_cast %235 : vector<32xf32> to vector<1x32xf32>
    %258 = vector.broadcast %257 : vector<1x32xf32> to vector<8x32xf32>
    %259 = arith.addf %256, %258 : vector<8x32xf32>
    %260 = arith.truncf %259 : vector<8x32xf32> to vector<8x32xbf16>
    %c1_105 = arith.constant 1 : index
    %c0_106 = arith.constant 0 : index
    %c0_107 = arith.constant 0 : index
    %261 = vector.load %arg7[%c1_105, %c0_106, %c0_107] : memref<2x32x96xbf16, #tpu.memory_space<vmem>>, vector<1x32x96xbf16>
    %262 = vector.shape_cast %261 : vector<1x32x96xbf16> to vector<32x96xbf16>
    %cst_108 = arith.constant dense<0.000000e+00> : vector<8x96xf32>
    %263 = tpu.matmul %260, %262, %cst_108 {dimension_numbers = #tpu.dot_dimension_numbers<[1], [0], [0], [1], [0, 0, 1, 1], [], []>} : vector<8x32xbf16>, vector<32x96xbf16>, vector<8x96xf32> -> vector<8x96xf32>
    %c1_109 = arith.constant 1 : index
    %c0_110 = arith.constant 0 : index
    %c0_111 = arith.constant 0 : index
    %264 = vector.load %arg8[%c1_109, %c0_110, %c0_111] : memref<2x1x96xf32, #tpu.memory_space<vmem>>, vector<1x1x96xf32>
    %265 = vector.shape_cast %264 : vector<1x1x96xf32> to vector<1x96xf32>
    %266 = vector.broadcast %265 : vector<1x96xf32> to vector<8x96xf32>
    %267 = arith.addf %263, %266 : vector<8x96xf32>
    %268 = vector.extract_strided_slice %267 {offsets = [0, 0], sizes = [8, 32], strides = [1, 1]} : vector<8x96xf32> to vector<8x32xf32>
    %269 = vector.extract_strided_slice %267 {offsets = [0, 32], sizes = [8, 32], strides = [1, 1]} : vector<8x96xf32> to vector<8x32xf32>
    %270 = vector.extract_strided_slice %267 {offsets = [0, 64], sizes = [8, 32], strides = [1, 1]} : vector<8x96xf32> to vector<8x32xf32>
    %c1_112 = arith.constant 1 : index
    %c0_113 = arith.constant 0 : index
    %c0_114 = arith.constant 0 : index
    %271 = vector.load %arg9[%c1_112, %c0_113, %c0_114] : memref<2x32x32xbf16, #tpu.memory_space<vmem>>, vector<1x32x32xbf16>
    %272 = vector.shape_cast %271 : vector<1x32x32xbf16> to vector<32x32xbf16>
    %c1_115 = arith.constant 1 : index
    %c0_116 = arith.constant 0 : index
    %c0_117 = arith.constant 0 : index
    %273 = vector.load %arg10[%c1_115, %c0_116, %c0_117] : memref<2x1x32xf32, #tpu.memory_space<vmem>>, vector<1x1x32xf32>
    %274 = vector.shape_cast %273 : vector<1x1x32xf32> to vector<1x32xf32>
    %cst_118 = arith.constant 0.353553385 : f32
    %275 = vector.broadcast %cst_118 : f32 to vector<8x32xf32>
    %276 = arith.mulf %268, %275 : vector<8x32xf32>
    %277 = vector.shape_cast %276 : vector<8x32xf32> to vector<8x4x8xf32>
    %278 = tpu.transpose %277, [1, 0, 2] : vector<8x4x8xf32> -> vector<4x8x8xf32>
    %279 = vector.shape_cast %269 : vector<8x32xf32> to vector<8x4x8xf32>
    %280 = tpu.transpose %279, [1, 0, 2] : vector<8x4x8xf32> -> vector<4x8x8xf32>
    %281 = vector.shape_cast %270 : vector<8x32xf32> to vector<8x4x8xf32>
    %282 = tpu.transpose %281, [1, 0, 2] : vector<8x4x8xf32> -> vector<4x8x8xf32>
    %283 = arith.truncf %278 : vector<4x8x8xf32> to vector<4x8x8xbf16>
    %284 = arith.truncf %280 : vector<4x8x8xf32> to vector<4x8x8xbf16>
    %285 = arith.truncf %282 : vector<4x8x8xf32> to vector<4x8x8xbf16>
    "tpu.trace_start"() <{level = 10 : i32, message = "hld,hsd->hls"}> : () -> ()
    %cst_119 = arith.constant dense<0.000000e+00> : vector<4x8x8xf32>
    %286 = tpu.matmul %283, %284, %cst_119 {dimension_numbers = #tpu.dot_dimension_numbers<[2], [2], [1], [1], [0, 0, 0, 1, 1, 1], [0], [0]>} : vector<4x8x8xbf16>, vector<4x8x8xbf16>, vector<4x8x8xf32> -> vector<4x8x8xf32>
    "tpu.trace_stop"() : () -> ()
    %287 = vector.shape_cast %10 : vector<8x8xf32> to vector<1x8x8xf32>
    %288 = vector.broadcast %287 : vector<1x8x8xf32> to vector<4x8x8xf32>
    %289 = arith.addf %286, %288 : vector<4x8x8xf32>
    %cst_120 = arith.constant dense<0xFF800000> : vector<4x8xf32>
    %290 = vector.multi_reduction <maximumf>, %289, %cst_120 [2] : vector<4x8x8xf32> to vector<4x8xf32>
    %291 = vector.shape_cast %290 : vector<4x8xf32> to vector<4x8x1xf32>
    %292 = vector.broadcast %291 : vector<4x8x1xf32> to vector<4x8x8xf32>
    %293 = arith.subf %289, %292 : vector<4x8x8xf32>
    %294 = math.exp %293 : vector<4x8x8xf32>
    %cst_121 = arith.constant dense<0.000000e+00> : vector<4x8xf32>
    %295 = vector.multi_reduction <add>, %294, %cst_121 [2] : vector<4x8x8xf32> to vector<4x8xf32>
    %296 = vector.shape_cast %295 : vector<4x8xf32> to vector<4x8x1xf32>
    %297 = tpu.reciprocal %296 {approx = true} : vector<4x8x1xf32> -> vector<4x8x1xf32>
    %298 = vector.broadcast %297 : vector<4x8x1xf32> to vector<4x8x8xf32>
    %299 = arith.mulf %294, %298 : vector<4x8x8xf32>
    %300 = arith.truncf %299 : vector<4x8x8xf32> to vector<4x8x8xbf16>
    "tpu.trace_start"() <{level = 10 : i32, message = "hls,hsd->hld"}> : () -> ()
    %cst_122 = arith.constant dense<0.000000e+00> : vector<4x8x8xf32>
    %301 = tpu.matmul %300, %285, %cst_122 {dimension_numbers = #tpu.dot_dimension_numbers<[2], [1], [1], [2], [0, 0, 0, 1, 1, 2], [0], [0]>} : vector<4x8x8xbf16>, vector<4x8x8xbf16>, vector<4x8x8xf32> -> vector<4x8x8xf32>
    "tpu.trace_stop"() : () -> ()
    %302 = tpu.transpose %301, [1, 0, 2] : vector<4x8x8xf32> -> vector<8x4x8xf32>
    %303 = vector.shape_cast %302 : vector<8x4x8xf32> to vector<8x32xf32>
    %304 = arith.truncf %303 : vector<8x32xf32> to vector<8x32xbf16>
    %cst_123 = arith.constant dense<0.000000e+00> : vector<8x32xf32>
    %305 = tpu.matmul %304, %272, %cst_123 {dimension_numbers = #tpu.dot_dimension_numbers<[1], [0], [0], [1], [0, 0, 1, 1], [], []>} : vector<8x32xbf16>, vector<32x32xbf16>, vector<8x32xf32> -> vector<8x32xf32>
    %306 = vector.broadcast %274 : vector<1x32xf32> to vector<8x32xf32>
    %307 = arith.addf %305, %306 : vector<8x32xf32>
    %308 = arith.addf %227, %307 : vector<8x32xf32>
    %309 = vector.extract_strided_slice %229 {offsets = [1, 0], sizes = [1, 32], strides = [1, 1]} : vector<3x32xf32> to vector<1x32xf32>
    %310 = vector.shape_cast %309 : vector<1x32xf32> to vector<32xf32>
    %311 = vector.extract_strided_slice %231 {offsets = [1, 0], sizes = [1, 32], strides = [1, 1]} : vector<3x32xf32> to vector<1x32xf32>
    %312 = vector.shape_cast %311 : vector<1x32xf32> to vector<32xf32>
    %cst_124 = arith.constant dense<0.000000e+00> : vector<8xf32>
    %313 = vector.multi_reduction <add>, %308, %cst_124 [1] : vector<8x32xf32> to vector<8xf32>
    %314 = vector.shape_cast %313 : vector<8xf32> to vector<8x1xf32>
    %cst_125 = arith.constant 3.200000e+01 : f32
    %315 = vector.broadcast %cst_125 : f32 to vector<8x1xf32>
    %316 = arith.divf %314, %315 : vector<8x1xf32>
    %317 = vector.broadcast %316 : vector<8x1xf32> to vector<8x32xf32>
    %318 = arith.subf %308, %317 : vector<8x32xf32>
    %319 = arith.mulf %318, %318 : vector<8x32xf32>
    %cst_126 = arith.constant dense<0.000000e+00> : vector<8xf32>
    %320 = vector.multi_reduction <add>, %319, %cst_126 [1] : vector<8x32xf32> to vector<8xf32>
    %321 = vector.shape_cast %320 : vector<8xf32> to vector<8x1xf32>
    %cst_127 = arith.constant 3.200000e+01 : f32
    %322 = vector.broadcast %cst_127 : f32 to vector<8x1xf32>
    %323 = arith.divf %321, %322 : vector<8x1xf32>
    %324 = vector.broadcast %316 : vector<8x1xf32> to vector<8x32xf32>
    %325 = arith.subf %308, %324 : vector<8x32xf32>
    %cst_128 = arith.constant 9.99999974E-6 : f32
    %326 = vector.broadcast %cst_128 : f32 to vector<8x1xf32>
    %327 = arith.addf %323, %326 : vector<8x1xf32>
    %328 = math.rsqrt %327 : vector<8x1xf32>
    %329 = vector.broadcast %328 : vector<8x1xf32> to vector<8x32xf32>
    %330 = arith.mulf %325, %329 : vector<8x32xf32>
    %331 = vector.shape_cast %310 : vector<32xf32> to vector<1x32xf32>
    %332 = vector.broadcast %331 : vector<1x32xf32> to vector<8x32xf32>
    %333 = arith.mulf %330, %332 : vector<8x32xf32>
    %334 = vector.shape_cast %312 : vector<32xf32> to vector<1x32xf32>
    %335 = vector.broadcast %334 : vector<1x32xf32> to vector<8x32xf32>
    %336 = arith.addf %333, %335 : vector<8x32xf32>
    %337 = arith.truncf %336 : vector<8x32xf32> to vector<8x32xbf16>
    %c1_129 = arith.constant 1 : index
    %c0_130 = arith.constant 0 : index
    %c0_131 = arith.constant 0 : index
    %338 = vector.load %arg11[%c1_129, %c0_130, %c0_131] : memref<2x32x32xbf16, #tpu.memory_space<vmem>>, vector<1x32x32xbf16>
    %339 = vector.shape_cast %338 : vector<1x32x32xbf16> to vector<32x32xbf16>
    %cst_132 = arith.constant dense<0.000000e+00> : vector<8x32xf32>
    %340 = tpu.matmul %337, %339, %cst_132 {dimension_numbers = #tpu.dot_dimension_numbers<[1], [0], [0], [1], [0, 0, 1, 1], [], []>} : vector<8x32xbf16>, vector<32x32xbf16>, vector<8x32xf32> -> vector<8x32xf32>
    %c1_133 = arith.constant 1 : index
    %c0_134 = arith.constant 0 : index
    %c0_135 = arith.constant 0 : index
    %341 = vector.load %arg12[%c1_133, %c0_134, %c0_135] : memref<2x1x32xf32, #tpu.memory_space<vmem>>, vector<1x1x32xf32>
    %342 = vector.shape_cast %341 : vector<1x1x32xf32> to vector<1x32xf32>
    %343 = vector.broadcast %342 : vector<1x32xf32> to vector<8x32xf32>
    %344 = arith.addf %340, %343 : vector<8x32xf32>
    %c1_136 = arith.constant 1 : index
    %c0_137 = arith.constant 0 : index
    %c0_138 = arith.constant 0 : index
    %345 = vector.load %arg13[%c1_136, %c0_137, %c0_138] : memref<2x32x64xbf16, #tpu.memory_space<vmem>>, vector<1x32x64xbf16>
    %346 = vector.shape_cast %345 : vector<1x32x64xbf16> to vector<32x64xbf16>
    %cst_139 = arith.constant dense<0.000000e+00> : vector<16x64xf32>
    %347 = tpu.matmul %4, %346, %cst_139 {dimension_numbers = #tpu.dot_dimension_numbers<[1], [0], [0], [1], [0, 0, 1, 1], [], []>} : vector<16x32xbf16>, vector<32x64xbf16>, vector<16x64xf32> -> vector<16x64xf32>
    %c1_140 = arith.constant 1 : index
    %c0_141 = arith.constant 0 : index
    %c0_142 = arith.constant 0 : index
    %348 = vector.load %arg14[%c1_140, %c0_141, %c0_142] : memref<2x1x64xf32, #tpu.memory_space<vmem>>, vector<1x1x64xf32>
    %349 = vector.shape_cast %348 : vector<1x1x64xf32> to vector<1x64xf32>
    %350 = vector.broadcast %349 : vector<1x64xf32> to vector<16x64xf32>
    %351 = arith.addf %347, %350 : vector<16x64xf32>
    %352 = vector.extract_strided_slice %351 {offsets = [0, 0], sizes = [16, 32], strides = [1, 1]} : vector<16x64xf32> to vector<16x32xf32>
    %353 = vector.extract_strided_slice %351 {offsets = [0, 32], sizes = [16, 32], strides = [1, 1]} : vector<16x64xf32> to vector<16x32xf32>
    %c1_143 = arith.constant 1 : index
    %c0_144 = arith.constant 0 : index
    %c0_145 = arith.constant 0 : index
    %354 = vector.load %arg15[%c1_143, %c0_144, %c0_145] : memref<2x32x32xbf16, #tpu.memory_space<vmem>>, vector<1x32x32xbf16>
    %355 = vector.shape_cast %354 : vector<1x32x32xbf16> to vector<32x32xbf16>
    %c1_146 = arith.constant 1 : index
    %c0_147 = arith.constant 0 : index
    %c0_148 = arith.constant 0 : index
    %356 = vector.load %arg16[%c1_146, %c0_147, %c0_148] : memref<2x1x32xf32, #tpu.memory_space<vmem>>, vector<1x1x32xf32>
    %357 = vector.shape_cast %356 : vector<1x1x32xf32> to vector<1x32xf32>
    %cst_149 = arith.constant 0.353553385 : f32
    %358 = vector.broadcast %cst_149 : f32 to vector<8x32xf32>
    %359 = arith.mulf %344, %358 : vector<8x32xf32>
    %360 = vector.shape_cast %359 : vector<8x32xf32> to vector<8x4x8xf32>
    %361 = tpu.transpose %360, [1, 0, 2] : vector<8x4x8xf32> -> vector<4x8x8xf32>
    %362 = vector.shape_cast %352 : vector<16x32xf32> to vector<16x4x8xf32>
    %363 = tpu.transpose %362, [1, 0, 2] : vector<16x4x8xf32> -> vector<4x16x8xf32>
    %364 = vector.shape_cast %353 : vector<16x32xf32> to vector<16x4x8xf32>
    %365 = tpu.transpose %364, [1, 0, 2] : vector<16x4x8xf32> -> vector<4x16x8xf32>
    %366 = arith.truncf %361 : vector<4x8x8xf32> to vector<4x8x8xbf16>
    %367 = arith.truncf %363 : vector<4x16x8xf32> to vector<4x16x8xbf16>
    %368 = arith.truncf %365 : vector<4x16x8xf32> to vector<4x16x8xbf16>
    "tpu.trace_start"() <{level = 10 : i32, message = "hld,hsd->hls"}> : () -> ()
    %cst_150 = arith.constant dense<0.000000e+00> : vector<4x8x16xf32>
    %369 = tpu.matmul %366, %367, %cst_150 {dimension_numbers = #tpu.dot_dimension_numbers<[2], [2], [1], [1], [0, 0, 0, 1, 1, 1], [0], [0]>} : vector<4x8x8xbf16>, vector<4x16x8xbf16>, vector<4x8x16xf32> -> vector<4x8x16xf32>
    "tpu.trace_stop"() : () -> ()
    %370 = vector.shape_cast %16 : vector<1x16xf32> to vector<1x1x16xf32>
    %371 = vector.broadcast %370 : vector<1x1x16xf32> to vector<4x8x16xf32>
    %372 = arith.addf %369, %371 : vector<4x8x16xf32>
    %cst_151 = arith.constant dense<0xFF800000> : vector<4x8xf32>
    %373 = vector.multi_reduction <maximumf>, %372, %cst_151 [2] : vector<4x8x16xf32> to vector<4x8xf32>
    %374 = vector.shape_cast %373 : vector<4x8xf32> to vector<4x8x1xf32>
    %375 = vector.broadcast %374 : vector<4x8x1xf32> to vector<4x8x16xf32>
    %376 = arith.subf %372, %375 : vector<4x8x16xf32>
    %377 = math.exp %376 : vector<4x8x16xf32>
    %cst_152 = arith.constant dense<0.000000e+00> : vector<4x8xf32>
    %378 = vector.multi_reduction <add>, %377, %cst_152 [2] : vector<4x8x16xf32> to vector<4x8xf32>
    %379 = vector.shape_cast %378 : vector<4x8xf32> to vector<4x8x1xf32>
    %380 = tpu.reciprocal %379 {approx = true} : vector<4x8x1xf32> -> vector<4x8x1xf32>
    %381 = vector.broadcast %380 : vector<4x8x1xf32> to vector<4x8x16xf32>
    %382 = arith.mulf %377, %381 : vector<4x8x16xf32>
    %383 = arith.truncf %382 : vector<4x8x16xf32> to vector<4x8x16xbf16>
    "tpu.trace_start"() <{level = 10 : i32, message = "hls,hsd->hld"}> : () -> ()
    %cst_153 = arith.constant dense<0.000000e+00> : vector<4x8x8xf32>
    %384 = tpu.matmul %383, %368, %cst_153 {dimension_numbers = #tpu.dot_dimension_numbers<[2], [1], [1], [2], [0, 0, 0, 1, 1, 2], [0], [0]>} : vector<4x8x16xbf16>, vector<4x16x8xbf16>, vector<4x8x8xf32> -> vector<4x8x8xf32>
    "tpu.trace_stop"() : () -> ()
    %385 = tpu.transpose %384, [1, 0, 2] : vector<4x8x8xf32> -> vector<8x4x8xf32>
    %386 = vector.shape_cast %385 : vector<8x4x8xf32> to vector<8x32xf32>
    %387 = arith.truncf %386 : vector<8x32xf32> to vector<8x32xbf16>
    %cst_154 = arith.constant dense<0.000000e+00> : vector<8x32xf32>
    %388 = tpu.matmul %387, %355, %cst_154 {dimension_numbers = #tpu.dot_dimension_numbers<[1], [0], [0], [1], [0, 0, 1, 1], [], []>} : vector<8x32xbf16>, vector<32x32xbf16>, vector<8x32xf32> -> vector<8x32xf32>
    %389 = vector.broadcast %357 : vector<1x32xf32> to vector<8x32xf32>
    %390 = arith.addf %388, %389 : vector<8x32xf32>
    %391 = arith.addf %308, %390 : vector<8x32xf32>
    %392 = vector.extract_strided_slice %229 {offsets = [2, 0], sizes = [1, 32], strides = [1, 1]} : vector<3x32xf32> to vector<1x32xf32>
    %393 = vector.shape_cast %392 : vector<1x32xf32> to vector<32xf32>
    %394 = vector.extract_strided_slice %231 {offsets = [2, 0], sizes = [1, 32], strides = [1, 1]} : vector<3x32xf32> to vector<1x32xf32>
    %395 = vector.shape_cast %394 : vector<1x32xf32> to vector<32xf32>
    %cst_155 = arith.constant dense<0.000000e+00> : vector<8xf32>
    %396 = vector.multi_reduction <add>, %391, %cst_155 [1] : vector<8x32xf32> to vector<8xf32>
    %397 = vector.shape_cast %396 : vector<8xf32> to vector<8x1xf32>
    %cst_156 = arith.constant 3.200000e+01 : f32
    %398 = vector.broadcast %cst_156 : f32 to vector<8x1xf32>
    %399 = arith.divf %397, %398 : vector<8x1xf32>
    %400 = vector.broadcast %399 : vector<8x1xf32> to vector<8x32xf32>
    %401 = arith.subf %391, %400 : vector<8x32xf32>
    %402 = arith.mulf %401, %401 : vector<8x32xf32>
    %cst_157 = arith.constant dense<0.000000e+00> : vector<8xf32>
    %403 = vector.multi_reduction <add>, %402, %cst_157 [1] : vector<8x32xf32> to vector<8xf32>
    %404 = vector.shape_cast %403 : vector<8xf32> to vector<8x1xf32>
    %cst_158 = arith.constant 3.200000e+01 : f32
    %405 = vector.broadcast %cst_158 : f32 to vector<8x1xf32>
    %406 = arith.divf %404, %405 : vector<8x1xf32>
    %407 = vector.broadcast %399 : vector<8x1xf32> to vector<8x32xf32>
    %408 = arith.subf %391, %407 : vector<8x32xf32>
    %cst_159 = arith.constant 9.99999974E-6 : f32
    %409 = vector.broadcast %cst_159 : f32 to vector<8x1xf32>
    %410 = arith.addf %406, %409 : vector<8x1xf32>
    %411 = math.rsqrt %410 : vector<8x1xf32>
    %412 = vector.broadcast %411 : vector<8x1xf32> to vector<8x32xf32>
    %413 = arith.mulf %408, %412 : vector<8x32xf32>
    %414 = vector.shape_cast %393 : vector<32xf32> to vector<1x32xf32>
    %415 = vector.broadcast %414 : vector<1x32xf32> to vector<8x32xf32>
    %416 = arith.mulf %413, %415 : vector<8x32xf32>
    %417 = vector.shape_cast %395 : vector<32xf32> to vector<1x32xf32>
    %418 = vector.broadcast %417 : vector<1x32xf32> to vector<8x32xf32>
    %419 = arith.addf %416, %418 : vector<8x32xf32>
    %420 = arith.truncf %419 : vector<8x32xf32> to vector<8x32xbf16>
    %c1_160 = arith.constant 1 : index
    %c0_161 = arith.constant 0 : index
    %c0_162 = arith.constant 0 : index
    %421 = vector.load %arg17[%c1_160, %c0_161, %c0_162] : memref<2x32x64xbf16, #tpu.memory_space<vmem>>, vector<1x32x64xbf16>
    %422 = vector.shape_cast %421 : vector<1x32x64xbf16> to vector<32x64xbf16>
    %cst_163 = arith.constant dense<0.000000e+00> : vector<8x64xf32>
    %423 = tpu.matmul %420, %422, %cst_163 {dimension_numbers = #tpu.dot_dimension_numbers<[1], [0], [0], [1], [0, 0, 1, 1], [], []>} : vector<8x32xbf16>, vector<32x64xbf16>, vector<8x64xf32> -> vector<8x64xf32>
    %c1_164 = arith.constant 1 : index
    %c0_165 = arith.constant 0 : index
    %c0_166 = arith.constant 0 : index
    %424 = vector.load %arg18[%c1_164, %c0_165, %c0_166] : memref<2x1x64xf32, #tpu.memory_space<vmem>>, vector<1x1x64xf32>
    %425 = vector.shape_cast %424 : vector<1x1x64xf32> to vector<1x64xf32>
    %426 = vector.broadcast %425 : vector<1x64xf32> to vector<8x64xf32>
    %427 = arith.addf %423, %426 : vector<8x64xf32>
    %cst_167 = arith.constant 0.000000e+00 : f32
    %428 = vector.broadcast %cst_167 : f32 to vector<8x64xf32>
    %429 = arith.maximumf %427, %428 : vector<8x64xf32>
    %430 = arith.truncf %429 : vector<8x64xf32> to vector<8x64xbf16>
    %c1_168 = arith.constant 1 : index
    %c0_169 = arith.constant 0 : index
    %c0_170 = arith.constant 0 : index
    %431 = vector.load %arg19[%c1_168, %c0_169, %c0_170] : memref<2x64x32xbf16, #tpu.memory_space<vmem>>, vector<1x64x32xbf16>
    %432 = vector.shape_cast %431 : vector<1x64x32xbf16> to vector<64x32xbf16>
    %cst_171 = arith.constant dense<0.000000e+00> : vector<8x32xf32>
    %433 = tpu.matmul %430, %432, %cst_171 {dimension_numbers = #tpu.dot_dimension_numbers<[1], [0], [0], [1], [0, 0, 1, 1], [], []>} : vector<8x64xbf16>, vector<64x32xbf16>, vector<8x32xf32> -> vector<8x32xf32>
    %434 = arith.addf %391, %433 : vector<8x32xf32>
    %c1_172 = arith.constant 1 : index
    %c0_173 = arith.constant 0 : index
    %c0_174 = arith.constant 0 : index
    %435 = vector.load %arg20[%c1_172, %c0_173, %c0_174] : memref<2x1x32xf32, #tpu.memory_space<vmem>>, vector<1x1x32xf32>
    %436 = vector.shape_cast %435 : vector<1x1x32xf32> to vector<1x32xf32>
    %437 = vector.broadcast %436 : vector<1x32xf32> to vector<8x32xf32>
    %438 = arith.addf %434, %437 : vector<8x32xf32>
    %c0_175 = arith.constant 0 : index
    %c0_176 = arith.constant 0 : index
    %439 = vector.load %arg21[%c0_175, %c0_176] : memref<1x32xf32, #tpu.memory_space<vmem>>, vector<1x32xf32>
    %440 = vector.shape_cast %439 : vector<1x32xf32> to vector<32xf32>
    %c0_177 = arith.constant 0 : index
    %c0_178 = arith.constant 0 : index
    %441 = vector.load %arg22[%c0_177, %c0_178] : memref<1x32xf32, #tpu.memory_space<vmem>>, vector<1x32xf32>
    %442 = vector.shape_cast %441 : vector<1x32xf32> to vector<32xf32>
    %cst_179 = arith.constant dense<0.000000e+00> : vector<8xf32>
    %443 = vector.multi_reduction <add>, %438, %cst_179 [1] : vector<8x32xf32> to vector<8xf32>
    %444 = vector.shape_cast %443 : vector<8xf32> to vector<8x1xf32>
    %cst_180 = arith.constant 3.200000e+01 : f32
    %445 = vector.broadcast %cst_180 : f32 to vector<8x1xf32>
    %446 = arith.divf %444, %445 : vector<8x1xf32>
    %447 = vector.broadcast %446 : vector<8x1xf32> to vector<8x32xf32>
    %448 = arith.subf %438, %447 : vector<8x32xf32>
    %449 = arith.mulf %448, %448 : vector<8x32xf32>
    %cst_181 = arith.constant dense<0.000000e+00> : vector<8xf32>
    %450 = vector.multi_reduction <add>, %449, %cst_181 [1] : vector<8x32xf32> to vector<8xf32>
    %451 = vector.shape_cast %450 : vector<8xf32> to vector<8x1xf32>
    %cst_182 = arith.constant 3.200000e+01 : f32
    %452 = vector.broadcast %cst_182 : f32 to vector<8x1xf32>
    %453 = arith.divf %451, %452 : vector<8x1xf32>
    %454 = vector.broadcast %446 : vector<8x1xf32> to vector<8x32xf32>
    %455 = arith.subf %438, %454 : vector<8x32xf32>
    %cst_183 = arith.constant 9.99999974E-6 : f32
    %456 = vector.broadcast %cst_183 : f32 to vector<8x1xf32>
    %457 = arith.addf %453, %456 : vector<8x1xf32>
    %458 = math.rsqrt %457 : vector<8x1xf32>
    %459 = vector.broadcast %458 : vector<8x1xf32> to vector<8x32xf32>
    %460 = arith.mulf %455, %459 : vector<8x32xf32>
    %461 = vector.shape_cast %440 : vector<32xf32> to vector<1x32xf32>
    %462 = vector.broadcast %461 : vector<1x32xf32> to vector<8x32xf32>
    %463 = arith.mulf %460, %462 : vector<8x32xf32>
    %464 = vector.shape_cast %442 : vector<32xf32> to vector<1x32xf32>
    %465 = vector.broadcast %464 : vector<1x32xf32> to vector<8x32xf32>
    %466 = arith.addf %463, %465 : vector<8x32xf32>
    %c0_184 = arith.constant 0 : index
    %c0_185 = arith.constant 0 : index
    %c0_186 = arith.constant 0 : index
    %467 = vector.load %arg23[%c0_184, %c0_185, %c0_186] : memref<1x8x32xf32, #tpu.memory_space<vmem>>, vector<1x8x32xf32>
    %468 = vector.shape_cast %467 : vector<1x8x32xf32> to vector<8x32xf32>
    %469 = vector.shape_cast %466 : vector<8x32xf32> to vector<1x8x32xf32>
    tpu.vector_store %arg23[%c0_184, %c0_185, %c0_186], %469 {strides = array<i32>} : memref<1x8x32xf32, #tpu.memory_space<vmem>>, vector<1x8x32xf32>,
    return
  }
  func.func @transform_0(%arg0: i32) -> (i32, i32, i32) {
    %c0_i32 = arith.constant 0 : i32
    %c0_i32_0 = arith.constant 0 : i32
    %c0_i32_1 = arith.constant 0 : i32
    return %arg0, %c0_i32, %c0_i32_0 : i32, i32, i32
  }
  func.func @transform_1(%arg0: i32) -> (i32, i32, i32) {
    %c0_i32 = arith.constant 0 : i32
    %c0_i32_0 = arith.constant 0 : i32
    %c0_i32_1 = arith.constant 0 : i32
    return %arg0, %c0_i32, %c0_i32_0 : i32, i32, i32
  }
  func.func @transform_2(%arg0: i32) -> (i32, i32, i32) {
    %c0_i32 = arith.constant 0 : i32
    %c0_i32_0 = arith.constant 0 : i32
    %c0_i32_1 = arith.constant 0 : i32
    return %arg0, %c0_i32, %c0_i32_0 : i32, i32, i32
  }
  func.func @transform_3(%arg0: i32) -> (i32, i32, i32) {
    %c0_i32 = arith.constant 0 : i32
    %c0_i32_0 = arith.constant 0 : i32
    %c0_i32_1 = arith.constant 0 : i32
    return %arg0, %c0_i32, %c0_i32_0 : i32, i32, i32
  }
  func.func @transform_4(%arg0: i32) -> (i32, i32, i32) {
    %c0_i32 = arith.constant 0 : i32
    %c0_i32_0 = arith.constant 0 : i32
    %c0_i32_1 = arith.constant 0 : i32
    %c0_i32_2 = arith.constant 0 : i32
    return %c0_i32, %c0_i32_0, %c0_i32_1 : i32, i32, i32
  }
  func.func @transform_5(%arg0: i32) -> (i32, i32, i32) {
    %c0_i32 = arith.constant 0 : i32
    %c0_i32_0 = arith.constant 0 : i32
    %c0_i32_1 = arith.constant 0 : i32
    %c0_i32_2 = arith.constant 0 : i32
    return %c0_i32, %c0_i32_0, %c0_i32_1 : i32, i32, i32
  }
  func.func @transform_6(%arg0: i32) -> (i32, i32, i32) {
    %c0_i32 = arith.constant 0 : i32
    %c0_i32_0 = arith.constant 0 : i32
    %c0_i32_1 = arith.constant 0 : i32
    %c0_i32_2 = arith.constant 0 : i32
    return %c0_i32, %c0_i32_0, %c0_i32_1 : i32, i32, i32
  }
  func.func @transform_7(%arg0: i32) -> (i32, i32, i32) {
    %c0_i32 = arith.constant 0 : i32
    %c0_i32_0 = arith.constant 0 : i32
    %c0_i32_1 = arith.constant 0 : i32
    %c0_i32_2 = arith.constant 0 : i32
    return %c0_i32, %c0_i32_0, %c0_i32_1 : i32, i32, i32
  }
  func.func @transform_8(%arg0: i32) -> (i32, i32, i32) {
    %c0_i32 = arith.constant 0 : i32
    %c0_i32_0 = arith.constant 0 : i32
    %c0_i32_1 = arith.constant 0 : i32
    %c0_i32_2 = arith.constant 0 : i32
    return %c0_i32, %c0_i32_0, %c0_i32_1 : i32, i32, i32
  }
  func.func @transform_9(%arg0: i32) -> (i32, i32, i32) {
    %c0_i32 = arith.constant 0 : i32
    %c0_i32_0 = arith.constant 0 : i32
    %c0_i32_1 = arith.constant 0 : i32
    %c0_i32_2 = arith.constant 0 : i32
    return %c0_i32, %c0_i32_0, %c0_i32_1 : i32, i32, i32
  }
  func.func @transform_10(%arg0: i32) -> (i32, i32, i32) {
    %c0_i32 = arith.constant 0 : i32
    %c0_i32_0 = arith.constant 0 : i32
    %c0_i32_1 = arith.constant 0 : i32
    %c0_i32_2 = arith.constant 0 : i32
    return %c0_i32, %c0_i32_0, %c0_i32_1 : i32, i32, i32
  }
  func.func @transform_11(%arg0: i32) -> (i32, i32, i32) {
    %c0_i32 = arith.constant 0 : i32
    %c0_i32_0 = arith.constant 0 : i32
    %c0_i32_1 = arith.constant 0 : i32
    %c0_i32_2 = arith.constant 0 : i32
    return %c0_i32, %c0_i32_0, %c0_i32_1 : i32, i32, i32
  }
  func.func @transform_12(%arg0: i32) -> (i32, i32, i32) {
    %c0_i32 = arith.constant 0 : i32
    %c0_i32_0 = arith.constant 0 : i32
    %c0_i32_1 = arith.constant 0 : i32
    %c0_i32_2 = arith.constant 0 : i32
    return %c0_i32, %c0_i32_0, %c0_i32_1 : i32, i32, i32
  }
  func.func @transform_13(%arg0: i32) -> (i32, i32, i32) {
    %c0_i32 = arith.constant 0 : i32
    %c0_i32_0 = arith.constant 0 : i32
    %c0_i32_1 = arith.constant 0 : i32
    %c0_i32_2 = arith.constant 0 : i32
    return %c0_i32, %c0_i32_0, %c0_i32_1 : i32, i32, i32
  }
  func.func @transform_14(%arg0: i32) -> (i32, i32, i32) {
    %c0_i32 = arith.constant 0 : i32
    %c0_i32_0 = arith.constant 0 : i32
    %c0_i32_1 = arith.constant 0 : i32
    %c0_i32_2 = arith.constant 0 : i32
    return %c0_i32, %c0_i32_0, %c0_i32_1 : i32, i32, i32
  }
  func.func @transform_15(%arg0: i32) -> (i32, i32, i32) {
    %c0_i32 = arith.constant 0 : i32
    %c0_i32_0 = arith.constant 0 : i32
    %c0_i32_1 = arith.constant 0 : i32
    %c0_i32_2 = arith.constant 0 : i32
    return %c0_i32, %c0_i32_0, %c0_i32_1 : i32, i32, i32
  }
  func.func @transform_16(%arg0: i32) -> (i32, i32, i32) {
    %c0_i32 = arith.constant 0 : i32
    %c0_i32_0 = arith.constant 0 : i32
    %c0_i32_1 = arith.constant 0 : i32
    %c0_i32_2 = arith.constant 0 : i32
    return %c0_i32, %c0_i32_0, %c0_i32_1 : i32, i32, i32
  }
  func.func @transform_17(%arg0: i32) -> (i32, i32, i32) {
    %c0_i32 = arith.constant 0 : i32
    %c0_i32_0 = arith.constant 0 : i32
    %c0_i32_1 = arith.constant 0 : i32
    %c0_i32_2 = arith.constant 0 : i32
    return %c0_i32, %c0_i32_0, %c0_i32_1 : i32, i32, i32
  }
  func.func @transform_18(%arg0: i32) -> (i32, i32, i32) {
    %c0_i32 = arith.constant 0 : i32
    %c0_i32_0 = arith.constant 0 : i32
    %c0_i32_1 = arith.constant 0 : i32
    %c0_i32_2 = arith.constant 0 : i32
    return %c0_i32, %c0_i32_0, %c0_i32_1 : i32, i32, i32
  }
  func.func @transform_19(%arg0: i32) -> (i32, i32, i32) {
    %c0_i32 = arith.constant 0 : i32
    %c0_i32_0 = arith.constant 0 : i32
    %c0_i32_1 = arith.constant 0 : i32
    %c0_i32_2 = arith.constant 0 : i32
    return %c0_i32, %c0_i32_0, %c0_i32_1 : i32, i32, i32
  }
  func.func @transform_20(%arg0: i32) -> (i32, i32) {
    %c0_i32 = arith.constant 0 : i32
    %c0_i32_0 = arith.constant 0 : i32
    %c0_i32_1 = arith.constant 0 : i32
    return %c0_i32, %c0_i32_0 : i32, i32
  }
  func.func @transform_21(%arg0: i32) -> (i32, i32) {
    %c0_i32 = arith.constant 0 : i32
    %c0_i32_0 = arith.constant 0 : i32
    %c0_i32_1 = arith.constant 0 : i32
    return %c0_i32, %c0_i32_0 : i32, i32
  }
  func.func @transform_22(%arg0: i32) -> (i32, i32, i32) {
    %c0_i32 = arith.constant 0 : i32
    %c0_i32_0 = arith.constant 0 : i32
    %c0_i32_1 = arith.constant 0 : i32
    return %arg0, %c0_i32, %c0_i32_0 : i32, i32, i32
  }
}

</mosaic_0001>

<bundles_post_ra>
// kernel: tpu_custom_call.1
= control target key start
LH: loop header
LB: loop body
LE: loop exit
PB: predicated region body
PF: predicated region fallthrough
CT: control target
= control target key end

     0   :  { %s9686_s0 = inlined_call_operand.hbm [shape: f32[2,8,32], index: 0, kind: input, shape index: {}]   ;;  %s9687_s1 = inlined_call_operand.vmem [shape: f32[2,16,32], index: 1, kind: input, shape index: {}]   ;;  %s9688_s2 = inlined_call_operand.hbm [shape: f32[2,1,16], index: 2, kind: input, shape index: {}]   ;;  %s9689_s3 = inlined_call_operand.hbm [shape: f32[2,8,8], index: 3, kind: input, shape index: {}]   ;;  %s9690_s4 = inlined_call_operand.vmem [shape: f32[2,3,32], index: 4, kind: input, shape index: {}]   ;;  %s9691_s5 = inlined_call_operand.vmem [shape: f32[2,3,32], index: 5, kind: input, shape index: {}]   ;;  %s9692_s6 = inlined_call_operand.vmem [shape: bf16[2,32,96], index: 6, kind: input, shape index: {}]   ;;  %s9693_s7 = inlined_call_operand.hbm [shape: f32[2,1,96], index: 7, kind: input, shape index: {}]   ;;  %s9694_s8 = inlined_call_operand.vmem [shape: bf16[2,32,32], index: 8, kind: input, shape index: {}]   ;;  %s9695_s9 = inlined_call_operand.hbm [shape: f32[2,1,32], index: 9, kind: input, shape index: {}]   ;;  %s9696_s10 = inlined_call_operand.vmem [shape: bf16[2,32,32], index: 10, kind: input, shape index: {}]   ;;  %s9697_s11 = inlined_call_operand.vmem [shape: f32[2,1,32], index: 11, kind: input, shape index: {}]   ;;  %s9698_s12 = inlined_call_operand.hbm [shape: bf16[2,32,64], index: 12, kind: input, shape index: {}]   ;;  %s9699_s13 = inlined_call_operand.vmem [shape: f32[2,1,64], index: 13, kind: input, shape index: {}]   ;;  %s9700_s14 = inlined_call_operand.hbm [shape: bf16[2,32,32], index: 14, kind: input, shape index: {}]   ;;  %s9701_s15 = inlined_call_operand.vmem [shape: f32[2,1,32], index: 15, kind: input, shape index: {}]   ;;  %s9702_s16 = inlined_call_operand.hbm [shape: bf16[2,32,64], index: 16, kind: input, shape index: {}]   ;;  %s9703_s17 = inlined_call_operand.vmem [shape: f32[2,1,64], index: 17, kind: input, shape index: {}]   ;;  %s9704_s18 = inlined_call_operand.vmem [shape: bf16[2,64,32], index: 18, kind: input, shape index: {}]   ;;  %s9705_s19 = inlined_call_operand.vmem [shape: f32[2,1,32], index: 19, kind: input, shape index: {}]   ;;  %s9706_s20 = inlined_call_operand.vmem [shape: f32[1,32], index: 20, kind: input, shape index: {}]   ;;  %s9707_s21 = inlined_call_operand.vmem [shape: f32[1,32], index: 21, kind: input, shape index: {}]   ;;  %s9708_s22 = inlined_call_operand.hbm [shape: f32[2,8,32], index: 22, kind: output, shape index: {}]  }
   0x1   :  { %9758 = sst [smem:[#allocation29_spill]] %s9686_s0 }
   0x2   :  { %9759 = sst [smem:[#allocation30_spill]] %s9687_s1 }
   0x3   :  { %9760 = sst [smem:[#allocation31_spill]] %s9688_s2 }
   0x4   :  { %9761 = sst [smem:[#allocation32_spill]] %s9689_s3 }
   0x5   :  { %9762 = sst [smem:[#allocation33_spill]] %s9690_s4 }
   0x6   :  { %9763 = sst [smem:[#allocation34_spill]] %s9691_s5 }
   0x7   :  { %9764 = sst [smem:[#allocation35_spill]] %s9692_s6 }
   0x8   :  { %9765 = sst [smem:[#allocation36_spill]] %s9693_s7 }
   0x9   :  { %9766 = sst [smem:[#allocation37_spill]] %s9694_s8 }
   0xa   :  { %9767 = sst [smem:[#allocation38_spill]] %s9695_s9 }
   0xb   :  { %9768 = sst [smem:[#allocation39_spill]] %s9698_s12 }
   0xc   :  { %9769 = sst [smem:[#allocation40_spill]] %s9701_s15 }
   0xd   :  { %9770 = sst [smem:[#allocation41_spill]] %s9703_s17 }
   0xe   :  { %9771 = sst [smem:[#allocation42_spill]] %s9704_s18 }
   0xf   :  { %9772 = sst [smem:[#allocation43_spill]] %s9705_s19 }
  0x10   :  { %9773 = sst [smem:[#allocation44_spill]] %s9706_s20 }
  0x11   :  { %9774 = sst [smem:[#allocation45_spill]] %s9707_s21 }
  0x12   :  { %9775 = sst [smem:[#allocation46_spill]] %s9708_s22 }
  0x13   :  { %27 = vsyncpa [#allocation3], 0 }
  0x14   :  { %29 = vsyncpa [#allocation3 + $0x1], 0 }
  0x15   :  { %30 = vsyncpa [#allocation6], 0 }
  0x16   :  { %32 = vsyncpa [#allocation6 + $0x1], 0 }
  0x17   :  { %33 = vsyncpa [#allocation9], 0 }
  0x18   :  { %34 = vsyncpa [#allocation12], 0 }
  0x19   :  { %35 = vsyncpa [#allocation15], 0 }
  0x1a   :  { %36 = vsyncpa [#allocation4], 0 }
  0x1b   :  { %38 = vsyncpa [#allocation4 + $0x1], 0  ;;  %s8200_s3 = smov 0   ;;  %s8202_s28 = smov 0  }
  0x1c   :  { %s8204_s29 = smov 0   ;;  %s8206_s30 = smov 0  }
  0x1d LB: > { %9776 = sst [smem:[#allocation23_spill]] %s8046_s3  ;;  %s8060_s4 = smov [#allocation8]   ;;  %s8058_s30 = sphi %s8206_s30, %s9839_s30   ;;  %s8054_s29 = sphi %s8204_s29, %s9841_s29   ;;  %s8050_s28 = sphi %s8202_s28, %s9843_s28   ;;  %s8046_s3 = sphi %s8200_s3, %s9842_s3  }
  0x1e   : > { %9777 = sst [smem:[#allocation24_spill]] %s8054_s29  ;;  %s578_s0 = sshll.u32 %s8060_s4, 4  ;;  %s8226_s0 = int_to_ptr.vmem [resolvable:$true] %s578_s0 }
  0x1f   : > { %s8221_s23 = sadd.s32 4294967295, %s8058_s30   ;;  %p6896_p0 = scmp.ge.s32.totalorder %s8058_s30, 1 }
  0x20   : > { %p9730_p1 = scmp.eq.s32.totalorder %s8221_s23, 0  ;;  %p557_p2 = scmp.lt.s32.totalorder %s8058_s30, 3 }
  0x21   : > { %s8061_s5 = smov [#allocation11]   ;;  %s9780_s7 = sld [smem:[#allocation36_spill]] }
  0x22   : > { %p8228_p3 = pnand %p6896_p0, %p557_p2  ;;  %s613_s24 = sshll.u32 %s8061_s5, 4  ;;  %s8241_s24 = int_to_ptr.vmem [resolvable:$true] %s613_s24 }
  0x24   : > { %s9778_s1 = scalar_select %p8228_p3, 1, 0 }
  0x25   : > { %p7537_p5 = pneg %p8228_p3 }
  0x27   : > { %p8237_p6 = pnand %p7537_p5, %p9730_p1  ;;  %s7746_s2 = scalar_lea.hbm %s9780_s7, 32 }
  0x28   : > { %p7747_p7 = scmp.ne.s32.totalorder %s9780_s7, %s7746_s2  ;;  %p7753_p11 = scmp.lt.u32.totalorder %s7746_s2, %s9780_s7 }
  0x29   : > { %s9779_s6 = scalar_select %p8237_p6, 1, 0 }
  0x2a   : > { %p8251_p8 = pneg %p8237_p6 }
  0x2c   : > { %s9781_s22 = scalar_select %p8251_p8, 1, 0 }
  0x2d   : > { %p7749_p9 = pnand %p8251_p8, %p7747_p7 }
  0x2f   : > { %p7750_p10 = pneg %p7749_p9 }
  0x31   : > { %p7755_p12 = pnand %p7753_p11, %p7750_p10 }
  0x33   : > { %7758 = shalt.err (!%p7755_p12)
}
  0x34   : > { %s7759_s25 = scalar_lea.vmem %s8226_s0, 32  ;;  %p7767_p5 = scmp.lt.s32.totalorder %s8226_s0, %s8226_s0 }
  0x35   : > { %p7760_p13 = scmp.ne.s32.totalorder %s8226_s0, %s7759_s25  ;;  %p7768_p4 = scmp.lt.s32.totalorder %s7759_s25, %s7759_s25 }
  0x37   : > { %p7762_p0 = pnand %p7760_p13, %p8251_p8  ;;  %p7769_p7 = por %p7768_p4, %p7767_p5 }
  0x39   : > { %p7763_p2 = pneg %p7762_p0 }
  0x3b   : > { %p7770_p9 = pnand %p7769_p7, %p7763_p2 }
  0x3d   : > { %7773 = shalt.err (!%p7770_p9)
}
  0x3e   : > { %s9724_s26 = smov 16   ;;  %s9725_s21 = smov 1  }
  0x3f   : > { %7540 = dma.hbm_to_vmem [thread:$0]  (!%p8237_p6), %s9780_s7, 32, %s8226_s0, [#allocation9], %s9724_s26, %s9724_s26, %s9725_s21  }
  0x40   : > { %s9782_s12 = sld [smem:[#allocation39_spill]] }
  0x46   : > { %s7774_s25 = scalar_lea.hbm %s9782_s12, 512 }
  0x47   : > { %p7775_p4 = scmp.ne.s32.totalorder %s9782_s12, %s7774_s25  ;;  %p7781_p12 = scmp.lt.u32.totalorder %s7774_s25, %s9782_s12 }
  0x49   : > { %p7777_p10 = pnand %p7775_p4, %p8251_p8 }
  0x4b   : > { %p7778_p11 = pneg %p7777_p10 }
  0x4d   : > { %p7783_p13 = pnand %p7781_p12, %p7778_p11 }
  0x4f   : > { %7786 = shalt.err (!%p7783_p13)
}
  0x50   : > { %s7787_s0 = scalar_lea.vmem %s8241_s24, 512  ;;  %p7795_p7 = scmp.lt.s32.totalorder %s8241_s24, %s8241_s24 }
  0x51   : > { %p7788_p0 = scmp.ne.s32.totalorder %s8241_s24, %s7787_s0  ;;  %p7796_p9 = scmp.lt.s32.totalorder %s7787_s0, %s7787_s0 }
  0x53   : > { %p7790_p2 = pnand %p7788_p0, %p8251_p8  ;;  %p7797_p4 = por %p7796_p9, %p7795_p7 }
  0x55   : > { %p7791_p5 = pneg %p7790_p2 }
  0x57   : > { %p7798_p10 = pnand %p7797_p4, %p7791_p5 }
  0x59   : > { %7801 = shalt.err (!%p7798_p10)
}
  0x5a   : > { %s9720_s19 = smov 64   ;;  %s9722_s17 = smov 4  }
  0x5b   : > { %7546 = dma.hbm_to_vmem [thread:$0]  (!%p8237_p6), %s9782_s12, 512, %s8241_s24, [#allocation12], %s9720_s19, %s9720_s19, %s9722_s17  }
  0x5c   : > { %s6895_s2 = sadd.s32 4294967294, %s8058_s30   ;;  %s8303_s27 = sadd.s32 1, %s8058_s30  }
  0x5d   : > { %9783 = sst [smem:[#allocation25_spill]] %s8303_s27  ;;  %s48_s4 = ssub.s32 %s8058_s30, %s8303_s27 }
  0x5e   : > { %s51_s5 = sadd.s32 1, %s8054_s29  ;;  %p49_p11 = scmp.eq.s32.totalorder %s48_s4, 0 }
  0x5f   : > { %p58_p12 = scmp.ne.s32.totalorder %s8054_s29, %s8050_s28  ;;  %p59_p13 = scmp.eq.s32.totalorder %s8058_s30, 0 }
  0x60   : > { %p64_p0 = scmp.ne.s32.totalorder %s8050_s28, %s8046_s3  ;;  %p544_p7 = scmp.eq.s32.totalorder %s8221_s23, 1 }
  0x61   : > { %s8314_s25 = scalar_select %p49_p11, %s8054_s29, %s51_s5  }
  0x62   : > { %p60_p2 = por %p59_p13, %p58_p12  ;;  %p8318_p5 = por %p9730_p1, %p64_p0 }
  0x63   : > { %9784 = sst [smem:[#allocation26_spill]] %s8314_s25  ;;  %p550_p9 = scmp.eq.s32.totalorder %s6895_s2, 1 }
  0x64   : > { %s9785_s0 = scalar_select %p8318_p5, 1, 0 }
  0x65   : > { %p7572_p4 = scmp.lt.s32.totalorder %s8058_s30, 2  ;;  %s8325_s24 = sand.u32 1, %s8054_s29  }
  0x66   : > { %p8327_p10 = por %p544_p7, %p58_p12  ;;  %p8331_p3 = por %p550_p9, %p64_p0 }
  0x67   : > { %p8335_p11 = pnand %p7572_p4, %p60_p2  ;;  %s700_s5 = sand.u32 1, %s8058_s30  }
  0x68   : > { %s9786_s18 = scalar_select %p8327_p10, 1, 0 }
  0x69   : > { %s9788_s20 = scalar_select %p8331_p3, 1, 0 }
  0x6a   : > { %9787 = sst [smem:[#allocation27_spill]] %s9786_s18  ;;  %s6905_s19 = sshll.u32 %s8058_s30, 4 }
  0x6b   : > { %9789 = sst [smem:[#allocation28_spill]] %s9788_s20  ;;  %s9791_s26 = sld [smem:[#allocation31_spill]] }
  0x6c   : > { %s9790_s4 = scalar_select %p8335_p11, 1, 0 }
  0x6d   : > { %s703_s7 = scalar_lea.vmem [#allocation5], %s8325_s24  ;;  %s8349_s25 = scalar_lea.sflag [#allocation6], %s700_s5 }
  0x6e   : > { %s710_s12 = sshll.u32 %s703_s7, 4  ;;  %p8355_p13 = pneg %p8335_p11  ;;  %s8347_s12 = int_to_ptr.vmem [resolvable:$true] %s710_s12 }
  0x70   : > { %s9792_s27 = scalar_select %p8355_p13, 1, 0 }
  0x71   : > { %s8344_s21 = scalar_lea.hbm %s9791_s26, %s6905_s19  ;;  %s7807_s2 = scalar_lea.hbm %s9791_s26, 32 }
  0x72   : > { %s7802_s29 = scalar_lea.hbm %s8344_s21, 16  ;;  %p7808_p7 = scmp.lt.u32.totalorder %s8344_s21, %s9791_s26 }
  0x73   : > { %p7803_p12 = scmp.ne.s32.totalorder %s8344_s21, %s7802_s29  ;;  %p7809_p9 = scmp.lt.u32.totalorder %s7807_s2, %s7802_s29 }
  0x74   : > { %p7811_p1 = scmp.lt.u32.totalorder %s7802_s29, %s8344_s21 }
  0x75   : > { %p7805_p0 = pnand %p8355_p13, %p7803_p12  ;;  %p7810_p4 = por %p7809_p9, %p7808_p7 }
  0x77   : > { %p7806_p2 = pneg %p7805_p0  ;;  %p7812_p3 = por %p7811_p1, %p7810_p4 }
  0x79   : > { %p7813_p10 = pnand %p7812_p3, %p7806_p2 }
  0x7b   : > { %7816 = shalt.err (!%p7813_p10)
}
  0x7c   : > { %s7817_s5 = scalar_lea.vmem %s8347_s12, 16  ;;  %s8066_s19 = smov [#allocation5]  }
  0x7d   : > { %p7818_p12 = scmp.ne.s32.totalorder %s8347_s12, %s7817_s5  ;;  %s7822_s17 = sshll.u32 %s8066_s19, 4  ;;  %s7823_s17 = int_to_ptr.vmem [resolvable:$false] %s7822_s17 }
  0x7e   : > { %s7824_s20 = scalar_lea.vmem %s7823_s17, 32  ;;  %p7825_p6 = scmp.lt.s32.totalorder %s8347_s12, %s7823_s17 }
  0x7f   : > { %p7820_p0 = pnand %p7818_p12, %p8355_p13  ;;  %p7826_p8 = scmp.lt.s32.totalorder %s7824_s20, %s7817_s5 }
  0x81   : > { %p7821_p5 = pneg %p7820_p0  ;;  %p7827_p7 = por %p7826_p8, %p7825_p6 }
  0x83   : > { %p7828_p9 = pnand %p7827_p7, %p7821_p5 }
  0x85   : > { %7831 = shalt.err (!%p7828_p9)
}
  0x86   : > { %7559 = dma.hbm_to_vmem [thread:$0]  (!%p8335_p11), %s8344_s21, 16, %s8347_s12, %s8349_s25  }
  0x87   : > { %s8067_s29 = smov [#allocation10]   ;;  %s8068_s7 = smov [#allocation13]  }
  0x88   : > { %s594_s2 = sshll.u32 %s8067_s29, 4  ;;  %s629_s26 = sshll.u32 %s8068_s7, 4  ;;  %s595_s2 = int_to_ptr.vmem [resolvable:$true] %s594_s2  ;;  %s630_s26 = int_to_ptr.vmem [resolvable:$true] %s629_s26 }
  0x89   : > { %s9793_s9 = sld [smem:[#allocation38_spill]]  ;;  %p9794_p3 = scmp.ne.s32.totalorder %s9781_s22, 0 }
  0x8f   : > { %s7832_s17 = scalar_lea.hbm %s9793_s9, 32 }
  0x90   : > { %p7833_p1 = scmp.ne.s32.totalorder %s9793_s9, %s7832_s17  ;;  %p7839_p5 = scmp.lt.u32.totalorder %s7832_s17, %s9793_s9 }
  0x92   : > { %p7835_p6 = pnand %p7833_p1, %p9794_p3 }
  0x94   : > { %p7836_p8 = pneg %p7835_p6 }
  0x96   : > { %p7841_p10 = pnand %p7839_p5, %p7836_p8 }
  0x98   : > { %7844 = shalt.err (!%p7841_p10)
}
  0x99   : > { %s7845_s12 = scalar_lea.vmem %s595_s2, 32  ;;  %p7853_p0 = scmp.lt.s32.totalorder %s595_s2, %s595_s2 }
  0x9a   : > { %p7846_p2 = scmp.ne.s32.totalorder %s595_s2, %s7845_s12  ;;  %p7854_p7 = scmp.lt.s32.totalorder %s7845_s12, %s7845_s12 }
  0x9c   : > { %p7848_p4 = pnand %p7846_p2, %p9794_p3  ;;  %p7855_p9 = por %p7854_p7, %p7853_p0 }
  0x9e   : > { %p7849_p12 = pneg %p7848_p4 }
  0xa0   : > { %p7856_p11 = pnand %p7855_p9, %p7849_p12 }
  0xa2   : > { %7859 = shalt.err (!%p7856_p11)
}
  0xa3   : > { %p9795_p1 = scmp.ne.s32.totalorder %s9779_s6, 0  ;;  %s9796_s3 = smov 1  }
  0xa4   : > { %s9797_s21 = smov 16   ;;  %s7860_s19 = scalar_lea.hbm %s9700_s14, 512 }
  0xa5   : > { %7543 = dma.hbm_to_vmem [thread:$0]  (!%p9795_p1), %s9793_s9, 32, %s595_s2, [#allocation9], %s9797_s21, %s9797_s21, %s9796_s3  }
  0xa6   : > { %p7861_p6 = scmp.ne.s32.totalorder %s9700_s14, %s7860_s19  ;;  %p7867_p5 = scmp.lt.u32.totalorder %s7860_s19, %s9700_s14 }
  0xa8   : > { %p7863_p11 = pnand %p7861_p6, %p9794_p3 }
  0xaa   : > { %p7864_p8 = pneg %p7863_p11 }
  0xac   : > { %p7869_p10 = pnand %p7867_p5, %p7864_p8 }
  0xae   : > { %7872 = shalt.err (!%p7869_p10)
}
  0xaf   : > { %s7873_s15 = scalar_lea.vmem %s630_s26, 512  ;;  %p7881_p0 = scmp.lt.s32.totalorder %s630_s26, %s630_s26 }
  0xb0   : > { %p7874_p2 = scmp.ne.s32.totalorder %s630_s26, %s7873_s15  ;;  %p7882_p7 = scmp.lt.s32.totalorder %s7873_s15, %s7873_s15 }
  0xb2   : > { %p7876_p4 = pnand %p7874_p2, %p9794_p3  ;;  %p7883_p9 = por %p7882_p7, %p7881_p0 }
  0xb4   : > { %p7877_p12 = pneg %p7876_p4 }
  0xb6   : > { %p7884_p13 = pnand %p7883_p9, %p7877_p12 }
  0xb8   : > { %7887 = shalt.err (!%p7884_p13)
}
  0xb9   : > { %s9798_s2 = smov 4   ;;  %s9799_s3 = smov 64  }
  0xba   : > { %7549 = dma.hbm_to_vmem [thread:$0]  (!%p9795_p1), %s9700_s14, 512, %s630_s26, [#allocation12], %s9799_s3, %s9799_s3, %s9798_s2  }
  0xbb   : > { %s8069_s29 = smov [#allocation14]   ;;  %s6903_s19 = sshll.u32 %s8325_s24, 3 }
  0xbc   : > { %s645_s7 = sshll.u32 %s8069_s29, 4  ;;  %s7888_s20 = scalar_lea.hbm %s9702_s16, 512  ;;  %s646_s7 = int_to_ptr.vmem [resolvable:$true] %s645_s7 }
  0xbd   : > { %p7889_p13 = scmp.ne.s32.totalorder %s9702_s16, %s7888_s20  ;;  %p7895_p8 = scmp.lt.u32.totalorder %s7888_s20, %s9702_s16 }
  0xbf   : > { %p7891_p6 = pnand %p7889_p13, %p9794_p3 }
  0xc1   : > { %p7892_p11 = pneg %p7891_p6 }
  0xc3   : > { %p7897_p5 = pnand %p7895_p8, %p7892_p11 }
  0xc5   : > { %7900 = shalt.err (!%p7897_p5)
}
  0xc6   : > { %s7901_s26 = scalar_lea.vmem %s646_s7, 512  ;;  %p7909_p12 = scmp.lt.s32.totalorder %s646_s7, %s646_s7 }
  0xc7   : > { %p7902_p10 = scmp.ne.s32.totalorder %s646_s7, %s7901_s26  ;;  %p7910_p0 = scmp.lt.s32.totalorder %s7901_s26, %s7901_s26 }
  0xc9   : > { %p7904_p2 = pnand %p7902_p10, %p9794_p3  ;;  %p7911_p7 = por %p7910_p0, %p7909_p12 }
  0xcb   : > { %p7905_p4 = pneg %p7904_p2 }
  0xcd   : > { %p7912_p9 = pnand %p7911_p7, %p7905_p4 }
  0xcf   : > { %7915 = shalt.err (!%p7912_p9)
}
  0xd0   : > { %7552 = dma.hbm_to_vmem [thread:$0]  (!%p9795_p1), %s9702_s16, 512, %s646_s7, [#allocation15], %s9799_s3, %s9799_s3, %s9798_s2  }
  0xd1   : > { %s6904_s22 = sshll.u32 %s8058_s30, 7  ;;  %s9800_s5 = sld [smem:[#allocation29_spill]] }
  0xd2   : > { %s678_s6 = scalar_lea.vmem [#allocation2], %s6903_s19  ;;  %s675_s15 = scalar_lea.sflag [#allocation3], %s8325_s24 }
  0xd3   : > { %s685_s12 = sshll.u32 %s678_s6, 4  ;;  %p9801_p13 = scmp.ne.s32.totalorder %s9792_s27, 0  ;;  %s686_s12 = int_to_ptr.vmem [resolvable:$true] %s685_s12 }
  0xd7   : > { %s8449_s20 = scalar_lea.hbm %s9800_s5, %s6904_s22  ;;  %s7921_s7 = scalar_lea.hbm %s9800_s5, 256 }
  0xd8   : > { %s7916_s21 = scalar_lea.hbm %s8449_s20, 128  ;;  %p7922_p11 = scmp.lt.u32.totalorder %s8449_s20, %s9800_s5 }
  0xd9   : > { %p7917_p3 = scmp.ne.s32.totalorder %s8449_s20, %s7916_s21  ;;  %p7923_p8 = scmp.lt.u32.totalorder %s7921_s7, %s7916_s21 }
  0xda   : > { %p7925_p10 = scmp.lt.u32.totalorder %s7916_s21, %s8449_s20 }
  0xdb   : > { %p7919_p1 = pnand %p7917_p3, %p9801_p13  ;;  %p7924_p5 = por %p7923_p8, %p7922_p11 }
  0xdd   : > { %p7920_p6 = pneg %p7919_p1  ;;  %p7926_p2 = por %p7925_p10, %p7924_p5 }
  0xdf   : > { %p7927_p4 = pnand %p7926_p2, %p7920_p6 }
  0xe1   : > { %7930 = shalt.err (!%p7927_p4)
}
  0xe2   : > { %s7931_s18 = scalar_lea.vmem %s686_s12, 128  ;;  %s8070_s29 = smov [#allocation2]  }
  0xe3   : > { %p7932_p12 = scmp.ne.s32.totalorder %s686_s12, %s7931_s18  ;;  %s7936_s17 = sshll.u32 %s8070_s29, 4  ;;  %s7937_s17 = int_to_ptr.vmem [resolvable:$false] %s7936_s17 }
  0xe4   : > { %s7938_s6 = scalar_lea.vmem %s7937_s17, 256  ;;  %p7939_p9 = scmp.lt.s32.totalorder %s686_s12, %s7937_s17 }
  0xe5   : > { %p7934_p0 = pnand %p7932_p12, %p9801_p13  ;;  %p7940_p3 = scmp.lt.s32.totalorder %s7938_s6, %s7931_s18 }
  0xe7   : > { %p7935_p7 = pneg %p7934_p0  ;;  %p7941_p1 = por %p7940_p3, %p7939_p9 }
  0xe9   : > { %p7942_p8 = pnand %p7941_p1, %p7935_p7 }
  0xeb   : > { %7945 = shalt.err (!%p7942_p8)
}
  0xec   : > { %p9802_p11 = scmp.ne.s32.totalorder %s9790_s4, 0  ;;  %s9803_s3 = sld [smem:[#allocation32_spill]] }
  0xed   : > { %s721_s9 = scalar_lea.vmem [#allocation7], %s6903_s19 }
  0xee   : > { %7556 = dma.hbm_to_vmem [thread:$0]  (!%p9802_p11), %s8449_s20, 128, %s686_s12, %s675_s15  }
  0xef   : > { %s728_s18 = sshll.u32 %s721_s9, 4  ;;  %s729_s18 = int_to_ptr.vmem [resolvable:$true] %s728_s18 }
  0xf2   : > { %s9804_s7 = smov %s9803_s3  ;;  %s8476_s26 = scalar_lea.hbm %s9803_s3, %s6904_s22 }
  0xf3   : > { %s7946_s29 = scalar_lea.hbm %s8476_s26, 128  ;;  %s7951_s15 = scalar_lea.hbm %s9804_s7, 256 }
  0xf4   : > { %p7947_p6 = scmp.ne.s32.totalorder %s8476_s26, %s7946_s29  ;;  %p7952_p2 = scmp.lt.u32.totalorder %s8476_s26, %s9804_s7 }
  0xf5   : > { %p7953_p4 = scmp.lt.u32.totalorder %s7951_s15, %s7946_s29  ;;  %p7955_p0 = scmp.lt.u32.totalorder %s7946_s29, %s8476_s26 }
  0xf6   : > { %p7949_p5 = pnand %p7947_p6, %p9801_p13 }
  0xf7   : > { %p7954_p12 = por %p7953_p4, %p7952_p2 }
  0xf8   : > { %p7950_p10 = pneg %p7949_p5 }
  0xf9   : > { %p7956_p7 = por %p7955_p0, %p7954_p12 }
  0xfb   : > { %p7957_p9 = pnand %p7956_p7, %p7950_p10 }
  0xfd   : > { %7960 = shalt.err (!%p7957_p9)
}
  0xfe   : > { %s7961_s24 = scalar_lea.vmem %s729_s18, 128  ;;  %s8071_s19 = smov [#allocation7]  }
  0xff   : > { %p7962_p3 = scmp.ne.s32.totalorder %s729_s18, %s7961_s24  ;;  %s7966_s6 = sshll.u32 %s8071_s19, 4  ;;  %s7967_s6 = int_to_ptr.vmem [resolvable:$false] %s7966_s6 }
 0x100   : > { %s7968_s21 = scalar_lea.vmem %s7967_s6, 256  ;;  %p7969_p6 = scmp.lt.s32.totalorder %s729_s18, %s7967_s6 }
 0x101   : > { %p7964_p1 = pnand %p7962_p3, %p9801_p13  ;;  %p7970_p5 = scmp.lt.s32.totalorder %s7968_s21, %s7961_s24 }
 0x103   : > { %p7965_p8 = pneg %p7964_p1  ;;  %p7971_p11 = por %p7970_p5, %p7969_p6 }
 0x105   : > { %p7972_p2 = pnand %p7971_p11, %p7965_p8 }
 0x107   : > { %7975 = shalt.err (!%p7972_p2)
}
 0x108   : > { %p9805_p4 = scmp.ne.s32.totalorder %s9790_s4, 0  ;;  %p9806_p10 = scmp.ne.s32.totalorder %s9778_s1, 0 }
 0x109   : > { %s8501_s27 = sand.u32 (!%p9806_p10), 1, %s8050_s28   ;;  %p9807_p13 = scmp.ne.s32.totalorder (!%p9806_p10), %s9785_s0, 0 }
 0x10a   : > { %7562 = dma.hbm_to_vmem [thread:$0]  (!%p9805_p4), %s8476_s26, 128, %s729_s18, %s8349_s25  }
 0x10b   : > { %737 = sbr.rel (%p9806_p10) target bundleno = 9652 (0x25b4), region = 108  ;;  %s8504_s2 = sshll.u32 (!%p9806_p10), %s8501_s27, 3 }
 0x10c   : > { %s740_s3 = scalar_lea.sflag (!%p9806_p10), [#allocation3], %s8501_s27  ;;  %s743_s9 = scalar_lea.vmem (!%p9806_p10), [#allocation2], %s8504_s2 }
 0x112   : > { %8021 = dma.done.wait (%p9807_p13), %s740_s3, 128  }
 0x113   : > { %8023 = vsyncadd (%p9807_p13), %s740_s3, 4294967168  ;;  %s748_s1 = sand.u32 1, %s8221_s23   ;;  %s751_s4 = scalar_lea.vmem [#allocation5], %s8501_s27 }
 0x114   : > { %s749_s25 = scalar_lea.sflag [#allocation6], %s748_s1 }
 0x115   : > { %8025 = dma.done.wait (%p9807_p13), %s749_s25, 144  }
 0x116   : > { %8027 = vsyncadd (%p9807_p13), %s749_s25, 4294967152  ;;  %s760_s26 = scalar_lea.vmem [#allocation7], %s8504_s2  ;;  %p9808_p11 = scmp.eq.s32.totalorder %s8221_s23, 0 }
 0x118   : > { %8029 = dma.done.wait (%p9808_p11), [#allocation9], 64   ;;  %p9809_p12 = pmov %p9808_p11 }
 0x119   : > { %p9810_p0 = pmov %p9808_p11 }
 0x11a   : > { %8031 = vsyncadd (%p9809_p12), [#allocation9], 4294967232 }
 0x11b   : > { %8033 = dma.done.wait (%p9810_p0), [#allocation12], 1024   ;;  %p9811_p7 = pmov %p9810_p0 }
 0x11c   : > { %p9812_p9 = pmov %p9810_p0 }
 0x11d   : > { %8035 = vsyncadd (%p9811_p7), [#allocation12], 4294966272 }
 0x11e   : > { %8037 = dma.done.wait (%p9812_p9), [#allocation15], 512   ;;  %p9813_p3 = pmov %p9810_p0 }
 0x11f   : > { %vm873_vm0 = vcmask 261120   ;;  %v8531_v0 = vld [vmem:[%s743_s9] sm:$0xff]  ;;  %s9814_s29 = sld [smem:[#allocation35_spill]]  ;;  %v8072_v8 = vmov 0.0   ;;  %vm8073_vm1 = vmmov 0   ;;  %v888_v12 = vlaneseq  ;;  %s9816_s24 = sld [smem:[#allocation33_spill]] }
 0x120   : > { %8039 = vsyncadd (%p9813_p3), [#allocation15], 4294966784  ;;  %v874_v1 = vsel %vm873_vm0, %v8531_v0, 0.0  ;;  %7197 = vmatprep.subr.bf16.mxu1 %v8072_v8  ;;  %7201 = vmatprep.mubr.msk.bf16.mxu1 %vm8073_vm1, %v8072_v8  ;;  %s9817_s21 = sld [smem:[#allocation34_spill]]  ;;  %v6921_v25 = vld [vmem:[#allocation8] ss:$0 sm:$0xff] }
 0x121   : > { %875 = vadd.xlane.f32.xlu0 %v874_v1  ;;  %7211 = vmatprep.subr.bf16.mxu0 %v8072_v8  ;;  %v8551_v14 = vshrl.u32 %v888_v12, 7  ;;  %s9754_s3 = smov 104   ;;  %s8075_s9 = smov 120   ;;  %v8078_v36 = vmov 1983009808   ;;  %vm1432_vm2 = vcmask 64512  }
 0x122   : > { %7213 = vmatprep.mubr.msk.bf16.mxu0 %vm8073_vm1, %v8072_v8  ;;  %s8076_s1 = smov 112   ;;  %s9752_s25 = smov 96   ;;  %v984_v37 = vunpack.c.l.s4 %v8078_v36  ;;  %v8079_v39 = vmov 1934713408   ;;  %vm1668_vm3 = vcmask 1043456   ;;  %vm1999_vm4 = vcmask 130048  }
 0x123   : > { %v8554_v15 = vsub.s32 0, %v8551_v14  ;;  %v1016_v40 = vunpack.c.l.s4 %v8079_v39  ;;  %s9818_s8 = sld [smem:[#allocation37_spill]]  ;;  %s9750_s15 = smov 16   ;;  %vm2001_vm5 = vcmask 195584   ;;  %vm3723_vm6 = vcmask 523264  }
 0x124   : > { %v985_v41 = vunpack.c.0.s8 %v984_v37  ;;  %s9748_s17 = smov 8   ;;  %s9746_s22 = smov 24  }
 0x125   : > { %s9815_s20 = smov %s9814_s29  ;;  %v7632_v7 = vld [vmem:[%s9814_s29] sm:$0xff]   ;;  %v1017_v43 = vunpack.c.0.s8 %v1016_v40  ;;  %p855_p1 = scmp.lt.s32.totalorder %s8221_s23, 1 }
 0x126   : > { %7198 = vmatpush3.bf16.msra.mxu1 %v7632_v7  ;;  %v7633_v9 = vld [vmem:[%s9815_s20 + $0x8] sm:$0xff]   ;;  %v8559_v16 = vld [vmem:[%s9816_s24] sm:$0x7]  ;;  %v8600_v44 = vsub.s32 %v985_v41, %v8551_v14  ;;  %s9819_s29 = sld [smem:[#allocation30_spill]]  ;;  %s9820_s18 = sld [smem:[#allocation40_spill]] }
 0x127   : > { %7199 = vmatprep.subr.bf16.mxu1 %v8072_v8  ;;  %v8564_v17 = vld [vmem:[%s9817_s21] sm:$0x7]  ;;  %v891_v18 = vrot.slane %v8559_v16, %v8554_v15  ;;  %v8603_v50 = vsub.s32 %v1017_v43, %v8551_v14  ;;  %s856_s19 = scalar_select %p855_p1, %s8221_s23, 1 }
 0x128   : > { %v896_v21 = vrot.slane %v8564_v17, %v8554_v15  ;;  %s9833_s7 = sld [smem:[#allocation46_spill]] }
 0x129   : > { %s7086_s6 = sshll.u32 %s856_s19, 4  ;;  %s9821_s19 = sld [smem:[#allocation42_spill]] }
 0x12a   : > { %7200 = vmatpush3.bf16.msra.mxu1 %v7633_v9 }
 0x12b   : > { %7205 = vmatprep.subr.bf16.mxu1 %v8072_v8 }
 0x12c   : > { %s859_s12 = scalar_lea.vmem %s9819_s29, %s7086_s6  ;;  %s9823_s29 = sld [smem:[#allocation43_spill]] }
 0x12d   : > { %s9827_s6 = smov 24  }
 0x1ae   : > { %v876_v2 = vpop.xlane.xlu0 %875 }
 0x1af   : > { %v878_v3 = vmul.f32 0.03125, %v876_v2 }
 0x1b1   : > { %v879_v4 = vsub.f32 %v8531_v0, %v878_v3 }
 0x1b3   : > { %v880_v5 = vmul.f32 %v879_v4, %v879_v4 }
 0x1b5   : > { %v881_v6 = vsel %vm873_vm0, %v880_v5, 0.0 }
 0x1b6   : > { %882 = vadd.xlane.f32.xlu0 %v881_v6 }
 0x243   : > { %v883_v10 = vpop.xlane.xlu0 %882 }
 0x244   : > { %v884_v11 = vmul.f32 0.03125, %v883_v10 }
 0x246   : > { %v885_v13 = vadd.f32 1e-05, %v884_v11 }
 0x248   : > { %7664 = vrsqrt.f32 %v885_v13 }
 0x252   : > { %v7665_v19 = vpop.eup %7664 }
 0x253   : > { %v887_v20 = vmul.f32 %v7665_v19, %v879_v4 }
 0x255   : > { %v892_v22 = vmul.f32 %v891_v18, %v887_v20 }
 0x257   : > { %v897_v23 = vadd.f32 %v896_v21, %v892_v22 }
 0x259   : > { %v898_v24 = vpack.c.bf16 %v897_v23, %v897_v23 }
 0x25b   : > { %7202 = vmatmul.mubr.msk.bf16.vlgmr.msra.gmra.mrb[0].mxu1 %vm873_vm0, %v898_v24 }
 0x25c   : > { %7207 = vmatprep.mubr.msk.bf16.mxu1 %vm8073_vm1, %v8072_v8 }
 0x32e   : > { %v959_v26 = vpop.f32.mrb[0].mxu1 }
 0x32f   : > { %v8573_v27 = vadd.f32 %v6921_v25, %v959_v26  ;;  %v7203_v28 = vpop.f32.mrb[1].mxu1 }
 0x330   : > { %v962_v29 = vpop.f32.mrb[2].mxu1 }
 0x331   : > { %1122 = vrot.lane.b32.xlu0 %v8573_v27, %s9754_s3  ;;  %1118 = vrot.lane.b32.xlu1 %v8573_v27, %s8075_s9  ;;  %v7204_v30 = vpop.f32.mrb[3].mxu1  ;;  %v970_v31 = vmul.f32 0.35355338, %v8573_v27 }
 0x335   : > { %1120 = vrot.lane.b32.xlu1 %v8573_v27, %s8076_s1  ;;  %978 = vrot.lane.b32.xlu0 %v970_v31, %s9754_s3 }
 0x339   : > { %1124 = vrot.lane.b32.xlu1 %v8573_v27, %s9752_s25 }
 0x3a3   : > { %v8585_v32 = vpop.permute.xlu1 %1118  ;;  %v8593_v34 = vpop.permute.xlu0 %1122 }
 0x3a4   : > { %1126 = vrot.lane.b32.xlu1 %v8585_v32, %s9752_s25 }
 0x3a7   : > { %v8589_v33 = vpop.permute.xlu1 %1120  ;;  %v979_v60 = vpop.permute.xlu0 %978 }
 0x3a8   : > { %1128 = vrot.lane.b32.xlu1 %v8589_v33, %s9752_s25 }
 0x3ab   : > { %v1125_v35 = vpop.permute.xlu1 %1124 }
 0x3ac   : > { %1130 = vrot.lane.b32.xlu1 %v8593_v34, %s9752_s25 }
 0x3b0   : > { %972 = vrot.lane.b32.xlu1 %v970_v31, %s8075_s9 }
 0x3b4   : > { %975 = vrot.lane.b32.xlu1 %v970_v31, %s8076_s1 }
 0x416   : > { %v1127_v38 = vpop.permute.xlu1 %1126 }
 0x41a   : > { %v1129_v42 = vpop.permute.xlu1 %1128 }
 0x41b   : > { %v1136_v45 = vcombine.low %v1125_v35, %v1129_v42  ;;  %v1137_v46 = vcombine.high %v1125_v35, %v1129_v42 }
 0x41d   : > { %v1144_v51 = vrot.slane %v1136_v45, %v8600_v44  ;;  %v1151_v52 = vrot.slane %v1137_v46, %v8600_v44 }
 0x41e   : > { %v1131_v47 = vpop.permute.xlu1 %1130 }
 0x41f   : > { %v1152_v48 = vcombine.low %v1127_v38, %v1131_v47  ;;  %v1153_v49 = vcombine.high %v1127_v38, %v1131_v47 }
 0x421   : > { %v1160_v53 = vrot.slane %v1152_v48, %v8600_v44  ;;  %v1167_v54 = vrot.slane %v1153_v49, %v8600_v44 }
 0x422   : > { %v973_v55 = vpop.permute.xlu1 %972 }
 0x423   : > { %v1168_v56 = vcombine.low %v1144_v51, %v1160_v53  ;;  %v1169_v57 = vcombine.high %v1144_v51, %v1160_v53  ;;  %v1184_v58 = vcombine.low %v1151_v52, %v1167_v54  ;;  %v1185_v59 = vcombine.high %v1151_v52, %v1167_v54 }
 0x424   : > { %v997_v2 = vcombine.low %v973_v55, %v979_v60  ;;  %v998_v3 = vcombine.high %v973_v55, %v979_v60 }
 0x425   : > { %v1176_v61 = vrot.slane %v1168_v56, %v8603_v50  ;;  %v1183_v62 = vrot.slane %v1169_v57, %v8603_v50  ;;  %v1192_v63 = vrot.slane %v1184_v58, %v8603_v50  ;;  %v1199_v1 = vrot.slane %v1185_v59, %v8603_v50 }
 0x426   : > { %v976_v4 = vpop.permute.xlu1 %975  ;;  %v1005_v20 = vrot.slane %v997_v2, %v8600_v44  ;;  %v1012_v21 = vrot.slane %v998_v3, %v8600_v44 }
 0x427   : > { %v1204_v5 = vcombine.low %v1176_v61, %v1183_v62  ;;  %v6927_v6 = vcombine.high %v1176_v61, %v1183_v62  ;;  %v1220_v7 = vcombine.low %v1192_v63, %v1199_v1  ;;  %v6928_v9 = vcombine.high %v1192_v63, %v1199_v1 }
 0x428   : > { %v981_v10 = vcombine.low %v970_v31, %v976_v4  ;;  %v982_v11 = vcombine.high %v970_v31, %v976_v4 }
 0x429   : > { %v1211_v12 = vrot.slane %v1204_v5, %v8600_v44  ;;  %v1219_v13 = vrot.slane %v6927_v6, %v8600_v44  ;;  %v1227_v18 = vrot.slane %v1220_v7, %v8600_v44  ;;  %v1235_v19 = vrot.slane %v6928_v9, %v8600_v44 }
 0x42a   : > { %v989_v22 = vrot.slane %v981_v10, %v8600_v44  ;;  %v996_v23 = vrot.slane %v982_v11, %v8600_v44 }
 0x42b   : > { %v1236_v24 = vcombine.low %v1211_v12, %v1219_v13  ;;  %v1252_v25 = vcombine.low %v1227_v18, %v1235_v19  ;;  %v1237_v26 = vcombine.high %v1211_v12, %v1219_v13  ;;  %v1253_v28 = vcombine.high %v1227_v18, %v1235_v19 }
 0x42c   : > { %v1013_v29 = vcombine.low %v989_v22, %v1005_v20  ;;  %v1014_v30 = vcombine.high %v989_v22, %v1005_v20  ;;  %v1029_v31 = vcombine.low %v996_v23, %v1012_v21  ;;  %v1030_v35 = vcombine.high %v996_v23, %v1012_v21 }
 0x42d   : > { %v1244_v36 = vrot.slane %v1236_v24, %v8603_v50  ;;  %v1260_v37 = vrot.slane %v1252_v25, %v8603_v50  ;;  %v1251_v45 = vrot.slane %v1237_v26, %v8603_v50  ;;  %v1267_v46 = vrot.slane %v1253_v28, %v8603_v50  ;;  %v865_v24 = vld [vmem:[%s760_s26] sm:$0xff]  ;;  %s8080_s26 = smov 64  }
 0x42e   : > { %v1021_v38 = vrot.slane %v1013_v29, %v8603_v50  ;;  %v1028_v39 = vrot.slane %v1014_v30, %v8603_v50  ;;  %v1037_v40 = vrot.slane %v1029_v31, %v8603_v50  ;;  %v1044_v41 = vrot.slane %v1030_v35, %v8603_v50 }
 0x42f   : > { %v1268_v42 = vcombine.low %v1244_v36, %v1260_v37  ;;  %v1269_v43 = vcombine.high %v1244_v36, %v1260_v37  ;;  %v1270_v62 = vcombine.low %v1251_v45, %v1267_v46  ;;  %v1271_v63 = vcombine.high %v1251_v45, %v1267_v46 }
 0x430   : > { %v1049_v47 = vcombine.low %v1021_v38, %v1028_v39  ;;  %v6925_v48 = vcombine.high %v1021_v38, %v1028_v39  ;;  %v1065_v49 = vcombine.low %v1037_v40, %v1044_v41  ;;  %v6926_v51 = vcombine.high %v1037_v40, %v1044_v41 }
 0x431   : > { %v1424_v52 = vpack.c.bf16 %v1268_v42, %v1268_v42  ;;  %v1425_v53 = vpack.c.bf16 %v1269_v43, %v1269_v43  ;;  %v1426_v7 = vpack.c.bf16 %v1270_v62, %v1270_v62  ;;  %v1427_v9 = vpack.c.bf16 %v1271_v63, %v1271_v63 }
 0x432   : > { %v1056_v54 = vrot.slane %v1049_v47, %v8600_v44  ;;  %v1064_v55 = vrot.slane %v6925_v48, %v8600_v44  ;;  %v1072_v56 = vrot.slane %v1065_v49, %v8600_v44  ;;  %v1080_v57 = vrot.slane %v6926_v51, %v8600_v44 }
 0x433   : > { %v1437_v58 = vsel %vm1432_vm2, %v1424_v52, 0  ;;  %v1483_v59 = vsel %vm1432_vm2, %v1425_v53, 0  ;;  %v1529_v18 = vsel %vm1432_vm2, %v1426_v7, 0  ;;  %v1575_v19 = vsel %vm1432_vm2, %v1427_v9, 0 }
 0x434   : > { %v1081_v60 = vcombine.low %v1056_v54, %v1064_v55  ;;  %v1097_v61 = vcombine.low %v1072_v56, %v1080_v57  ;;  %7206 = vmatpush3.bf16.xpose.msra.mxu1 %v1437_v58  ;;  %7212 = vmatpush3.bf16.xpose.msra.mxu0 %v1483_v59  ;;  %v1082_v1 = vcombine.high %v1056_v54, %v1064_v55  ;;  %v6919_v25 = vadd.f32 -1.0, %v865_v24 }
 0x435   : > { %7217 = vmatprep.subr.bf16.mxu1 %v8072_v8  ;;  %v1098_v2 = vcombine.high %v1072_v56, %v1080_v57  ;;  %7223 = vmatprep.subr.bf16.mxu0 %v8072_v8 }
 0x436   : > { %v1089_v3 = vrot.slane %v1081_v60, %v8603_v50  ;;  %v1105_v4 = vrot.slane %v1097_v61, %v8603_v50  ;;  %v1096_v12 = vrot.slane %v1082_v1, %v8603_v50  ;;  %v8659_v26 = vmul.f32 1e+09, %v6919_v25 }
 0x437   : > { %v1112_v13 = vrot.slane %v1098_v2, %v8603_v50 }
 0x438   : > { %v1113_v5 = vcombine.low %v1089_v3, %v1105_v4  ;;  %v1114_v6 = vcombine.high %v1089_v3, %v1105_v4 }
 0x439   : > { %v1115_v20 = vcombine.low %v1096_v12, %v1112_v13  ;;  %v1116_v21 = vcombine.high %v1096_v12, %v1112_v13 }
 0x43a   : > { %v1420_v10 = vpack.c.bf16 %v1113_v5, %v1113_v5  ;;  %v1421_v11 = vpack.c.bf16 %v1114_v6, %v1114_v6 }
 0x43b   : > { %v1422_v22 = vpack.c.bf16 %v1115_v20, %v1115_v20  ;;  %v1423_v23 = vpack.c.bf16 %v1116_v21, %v1116_v21 }
 0x43c   : > { %7208 = vmatmul.mubr.msk.bf16.vlgmr.msra.gmra.mrb[4].mxu1 %vm1432_vm2, %v1420_v10  ;;  %7214 = vmatmul.mubr.msk.bf16.vlgmr.msra.gmra.mrb[0].mxu0 %vm1432_vm2, %v1421_v11 }
 0x43d   : > { %7218 = vmatpush3.bf16.xpose.msra.mxu1 %v1529_v18  ;;  %7224 = vmatpush3.bf16.xpose.msra.mxu0 %v1575_v19 }
 0x43e   : > { %7219 = vmatprep.mubr.msk.bf16.mxu1 %vm8073_vm1, %v8072_v8  ;;  %7225 = vmatprep.mubr.msk.bf16.mxu0 %vm8073_vm1, %v8072_v8 }
 0x43f   : > { %7229 = vmatprep.subr.bf16.mxu1 %v8072_v8  ;;  %7235 = vmatprep.subr.bf16.mxu0 %v8072_v8 }
 0x444   : > { %7220 = vmatmul.mubr.msk.bf16.vlgmr.msra.gmra.mrb[8].mxu1 %vm1432_vm2, %v1422_v22  ;;  %7226 = vmatmul.mubr.msk.bf16.vlgmr.msra.gmra.mrb[4].mxu0 %vm1432_vm2, %v1423_v23 }
 0x445   : > { %7231 = vmatprep.mubr.msk.bf16.mxu1 %vm8073_vm1, %v8072_v8  ;;  %7237 = vmatprep.mubr.msk.bf16.mxu0 %vm8073_vm1, %v8072_v8 }
 0x50f   : > { %v1473_v28 = vpop.f32.mrb[4].mxu1  ;;  %v1519_v29 = vpop.f32.mrb[0].mxu0 }
 0x510   : > { %v1474_v30 = vadd.f32 %v1473_v28, %v8659_v26  ;;  %v1520_v31 = vadd.f32 %v1519_v29, %v8659_v26  ;;  %v7209_v35 = vpop.f32.mrb[5].mxu1  ;;  %v7215_v36 = vpop.f32.mrb[1].mxu0 }
 0x511   : > { %v1476_v37 = vpop.f32.mrb[6].mxu1  ;;  %v1522_v38 = vpop.f32.mrb[2].mxu0 }
 0x512   : > { %v7210_v39 = vpop.f32.mrb[7].mxu1  ;;  %v7216_v40 = vpop.f32.mrb[3].mxu0  ;;  %v1620_v41 = vsel %vm1432_vm2, %v1520_v31, -inf  ;;  %v1617_v42 = vsel %vm1432_vm2, %v1474_v30, -inf }
 0x513   : > { %1621 = vmax.xlane.f32.xlu0 %v1620_v41  ;;  %1618 = vmax.xlane.f32.xlu1 %v1617_v42 }
 0x517   : > { %v1565_v43 = vpop.f32.mrb[8].mxu1  ;;  %v1611_v45 = vpop.f32.mrb[4].mxu0 }
 0x518   : > { %v1566_v46 = vadd.f32 %v1565_v43, %v8659_v26  ;;  %v1612_v47 = vadd.f32 %v1611_v45, %v8659_v26  ;;  %v7221_v48 = vpop.f32.mrb[9].mxu1  ;;  %v7227_v49 = vpop.f32.mrb[5].mxu0 }
 0x519   : > { %v1568_v51 = vpop.f32.mrb[10].mxu1  ;;  %v1614_v52 = vpop.f32.mrb[6].mxu0 }
 0x51a   : > { %v7222_v53 = vpop.f32.mrb[11].mxu1  ;;  %v7228_v54 = vpop.f32.mrb[7].mxu0  ;;  %v1626_v55 = vsel %vm1432_vm2, %v1612_v47, -inf  ;;  %v1623_v56 = vsel %vm1432_vm2, %v1566_v46, -inf }
 0x51b   : > { %1627 = vmax.xlane.f32.xlu1 %v1626_v55  ;;  %1624 = vmax.xlane.f32.xlu0 %v1623_v56 }
 0x52c   : > { %1274 = vrot.lane.b32.xlu1 %v8585_v32, %s8080_s26 }
 0x531   : > { %1272 = vrot.lane.b32.xlu0 %v8573_v27, %s8080_s26 }
 0x5a0   : > { %v1622_v57 = vpop.xlane.xlu0 %1621  ;;  %v1619_v58 = vpop.xlane.xlu1 %1618 }
 0x5a1   : > { %v1630_v59 = vsub.f32 %v1520_v31, %v1622_v57  ;;  %v1629_v60 = vsub.f32 %v1474_v30, %v1619_v58 }
 0x5a3   : > { %v1635_v61 = vmul.f32 1.442695, %v1630_v59  ;;  %v1633_v62 = vmul.f32 1.442695, %v1629_v60 }
 0x5a5   : > { %7666 = vpow2.f32 %v1635_v61 }
 0x5a6   : > { %7668 = vpow2.f32 %v1633_v62 }
 0x5a8   : > { %v1625_v27 = vpop.xlane.xlu0 %1624  ;;  %v1628_v3 = vpop.xlane.xlu1 %1627 }
 0x5a9   : > { %v1631_v4 = vsub.f32 %v1566_v46, %v1625_v27  ;;  %v1632_v5 = vsub.f32 %v1612_v47, %v1628_v3 }
 0x5ab   : > { %v1637_v6 = vmul.f32 1.442695, %v1631_v4  ;;  %v1639_v7 = vmul.f32 1.442695, %v1632_v5 }
 0x5ac   : > { %v1273_v12 = vpop.permute.xlu0 %1272 }
 0x5ad   : > { %7670 = vpow2.f32 %v1637_v6 }
 0x5ae   : > { %7672 = vpow2.f32 %v1639_v7 }
 0x5af   : > { %v8673_v63 = vpop.eup %7666 }
 0x5b0   : > { %v8675_v1 = vpop.eup %7668  ;;  %v1644_v2 = vsel %vm1432_vm2, %v8673_v63, 0.0 }
 0x5b1   : > { %1645 = vadd.xlane.f32.xlu1 %v1644_v2  ;;  %v1641_v32 = vsel %vm1432_vm2, %v8675_v1, 0.0 }
 0x5b2   : > { %1642 = vadd.xlane.f32.xlu0 %v1641_v32 }
 0x5b7   : > { %v8685_v9 = vpop.eup %7670 }
 0x5b8   : > { %v8687_v10 = vpop.eup %7672  ;;  %v1647_v11 = vsel %vm1432_vm2, %v8685_v9, 0.0 }
 0x5c2   : > { %1276 = vrot.lane.b32.xlu1 %v8589_v33, %s8080_s26  ;;  %v1650_v33 = vsel %vm1432_vm2, %v8687_v10, 0.0 }
 0x5c8   : > { %1278 = vrot.lane.b32.xlu0 %v8593_v34, %s8080_s26  ;;  %v1275_v34 = vpop.permute.xlu1 %1274 }
 0x5e6   : > { %1648 = vadd.xlane.f32.xlu1 %v1647_v11 }
 0x5e7   : > { %1651 = vadd.xlane.f32.xlu0 %v1650_v33 }
 0x63e   : > { %v1646_v13 = vpop.xlane.xlu1 %1645 }
 0x63f   : > { %v1643_v18 = vpop.xlane.xlu0 %1642  ;;  %7674 = vrcp.f32 %v1646_v13 }
 0x640   : > { %7676 = vrcp.f32 %v1643_v18 }
 0x642   : > { %v1277_v19 = vpop.permute.xlu1 %1276 }
 0x643   : > { %v1284_v20 = vcombine.low %v1273_v12, %v1277_v19  ;;  %v1285_v21 = vcombine.high %v1273_v12, %v1277_v19  ;;  %v1279_v22 = vpop.permute.xlu0 %1278 }
 0x644   : > { %v1300_v23 = vcombine.low %v1275_v34, %v1279_v22  ;;  %v1301_v24 = vcombine.high %v1275_v34, %v1279_v22 }
 0x645   : > { %v1292_v25 = vrot.slane %v1284_v20, %v8600_v44  ;;  %v1299_v28 = vrot.slane %v1285_v21, %v8600_v44 }
 0x646   : > { %v1308_v29 = vrot.slane %v1300_v23, %v8600_v44  ;;  %v1315_v30 = vrot.slane %v1301_v24, %v8600_v44 }
 0x648   : > { %v1316_v31 = vcombine.low %v1292_v25, %v1308_v29  ;;  %v1317_v35 = vcombine.high %v1292_v25, %v1308_v29  ;;  %v1332_v36 = vcombine.low %v1299_v28, %v1315_v30  ;;  %v1333_v37 = vcombine.high %v1299_v28, %v1315_v30 }
 0x649   : > { %v7675_v56 = vpop.eup %7674 }
 0x64a   : > { %v1324_v38 = vrot.slane %v1316_v31, %v8603_v50  ;;  %v1331_v39 = vrot.slane %v1317_v35, %v8603_v50  ;;  %v1340_v40 = vrot.slane %v1332_v36, %v8603_v50  ;;  %v1347_v41 = vrot.slane %v1333_v37, %v8603_v50  ;;  %v7677_v61 = vpop.eup %7676 }
 0x64b   : > { %v1657_v5 = vmul.f32 %v7677_v61, %v8675_v1  ;;  %v1658_v6 = vmul.f32 %v7675_v56, %v8673_v63 }
 0x64c   : > { %v1352_v42 = vcombine.low %v1324_v38, %v1331_v39  ;;  %v6929_v43 = vcombine.high %v1324_v38, %v1331_v39  ;;  %v1368_v45 = vcombine.low %v1340_v40, %v1347_v41  ;;  %v6930_v46 = vcombine.high %v1340_v40, %v1347_v41 }
 0x64d   : > { %v1661_v12 = vpack.c.bf16 %v1657_v5, %v1657_v5  ;;  %v1662_v13 = vpack.c.bf16 %v1658_v6, %v1658_v6 }
 0x64e   : > { %v1359_v47 = vrot.slane %v1352_v42, %v8600_v44  ;;  %v1367_v48 = vrot.slane %v6929_v43, %v8600_v44  ;;  %v1375_v49 = vrot.slane %v1368_v45, %v8600_v44  ;;  %v1383_v51 = vrot.slane %v6930_v46, %v8600_v44 }
 0x650   : > { %v1384_v52 = vcombine.low %v1359_v47, %v1367_v48  ;;  %v1400_v53 = vcombine.low %v1375_v49, %v1383_v51  ;;  %v1385_v54 = vcombine.high %v1359_v47, %v1367_v48  ;;  %v1401_v55 = vcombine.high %v1375_v49, %v1383_v51 }
 0x652   : > { %v1392_v57 = vrot.slane %v1384_v52, %v8603_v50  ;;  %v1408_v58 = vrot.slane %v1400_v53, %v8603_v50  ;;  %v1399_v59 = vrot.slane %v1385_v54, %v8603_v50  ;;  %v1415_v60 = vrot.slane %v1401_v55, %v8603_v50  ;;  %v7634_v55 = vld [vmem:[%s9818_s8] sm:$0xff]  }
 0x654   : > { %v1416_v62 = vcombine.low %v1392_v57, %v1408_v58  ;;  %v1417_v2 = vcombine.high %v1392_v57, %v1408_v58  ;;  %v1418_v32 = vcombine.low %v1399_v59, %v1415_v60  ;;  %v1419_v27 = vcombine.high %v1399_v59, %v1415_v60 }
 0x656   : > { %v1428_v3 = vpack.c.bf16 %v1416_v62, %v1416_v62  ;;  %v1429_v4 = vpack.c.bf16 %v1417_v2, %v1417_v2  ;;  %v1430_v33 = vpack.c.bf16 %v1418_v32, %v1418_v32  ;;  %v1431_v34 = vpack.c.bf16 %v1419_v27, %v1419_v27  ;;  %v7635_v32 = vld [vmem:[%s9818_s8 + $0x8] sm:$0xff]  }
 0x658   : > { %v1670_v7 = vsel %vm1668_vm3, %v1428_v3, 0  ;;  %v1716_v11 = vsel %vm1668_vm3, %v1429_v4, 0  ;;  %v1762_v63 = vsel %vm1668_vm3, %v1430_v33, 0  ;;  %v1808_v1 = vsel %vm1668_vm3, %v1431_v34, 0 }
 0x659   : > { %7230 = vmatpush3.bf16.msra.mxu1 %v1670_v7  ;;  %7236 = vmatpush3.bf16.msra.mxu0 %v1716_v11 }
 0x65a   : > { %7241 = vmatprep.subr.bf16.mxu1 %v8072_v8  ;;  %7247 = vmatprep.subr.bf16.mxu0 %v8072_v8 }
 0x65c   : > { %7232 = vmatmul.mubr.msk.bf16.vlgmr.msra.gmra.mrb[12].mxu1 %vm1432_vm2, %v1661_v12  ;;  %7238 = vmatmul.mubr.msk.bf16.vlgmr.msra.gmra.mrb[8].mxu0 %vm1432_vm2, %v1662_v13 }
 0x65d   : > { %7242 = vmatpush3.bf16.msra.mxu1 %v1762_v63  ;;  %7248 = vmatpush3.bf16.msra.mxu0 %v1808_v1 }
 0x65e   : > { %7243 = vmatprep.mubr.msk.bf16.mxu1 %vm8073_vm1, %v8072_v8  ;;  %7249 = vmatprep.mubr.msk.bf16.mxu0 %vm8073_vm1, %v8072_v8 }
 0x65f   : > { %7253 = vmatprep.subr.bf16.mxu1 %v8072_v8  ;;  %7261 = vmatprep.subr.bf16.mxu0 %v8072_v8 }
 0x673   : > { %v1649_v18 = vpop.xlane.xlu1 %1648 }
 0x674   : > { %7678 = vrcp.f32 %v1649_v18  ;;  %v1652_v19 = vpop.xlane.xlu0 %1651 }
 0x675   : > { %7680 = vrcp.f32 %v1652_v19 }
 0x67e   : > { %v7679_v20 = vpop.eup %7678 }
 0x67f   : > { %v7681_v21 = vpop.eup %7680  ;;  %v1659_v22 = vmul.f32 %v7679_v20, %v8685_v9 }
 0x680   : > { %v1660_v23 = vmul.f32 %v7681_v21, %v8687_v10 }
 0x681   : > { %v1663_v24 = vpack.c.bf16 %v1659_v22, %v1659_v22 }
 0x682   : > { %v1664_v25 = vpack.c.bf16 %v1660_v23, %v1660_v23 }
 0x683   : > { %7244 = vmatmul.mubr.msk.bf16.vlgmr.msra.gmra.mrb[16].mxu1 %vm1432_vm2, %v1663_v24 }
 0x684   : > { %7250 = vmatmul.mubr.msk.bf16.vlgmr.msra.gmra.mrb[12].mxu0 %vm1432_vm2, %v1664_v25  ;;  %7257 = vmatprep.mubr.msk.bf16.mxu1 %vm8073_vm1, %v8072_v8 }
 0x685   : > { %7265 = vmatprep.mubr.msk.bf16.mxu0 %vm8073_vm1, %v8072_v8  ;;  %7254 = vmatpush3.bf16.msra.mxu1 %v7634_v55  ;;  %v7639_v55 = vld [vmem:[%s9696_s10 + $0x8] sm:$0xff]  }
 0x686   : > { %7255 = vmatprep.subr.bf16.mxu1 %v8072_v8 }
 0x689   : > { %7256 = vmatpush3.bf16.msra.mxu1 %v7635_v32 }
 0x68a   : > { %7269 = vmatprep.subr.bf16.mxu1 %v8072_v8 }
 0x72f   : > { %v1706_v28 = vpop.f32.mrb[12].mxu1  ;;  %v1752_v29 = vpop.f32.mrb[8].mxu0 }
 0x730   : > { %v7233_v30 = vpop.f32.mrb[13].mxu1  ;;  %v7239_v31 = vpop.f32.mrb[9].mxu0 }
 0x731   : > { %v1709_v35 = vpop.f32.mrb[14].mxu1  ;;  %v1755_v9 = vpop.f32.mrb[10].mxu0 }
 0x732   : > { %v7234_v36 = vpop.f32.mrb[15].mxu1  ;;  %v7240_v10 = vpop.f32.mrb[11].mxu0 }
 0x733   : > { %v6941_v36 = vld [vmem:[#allocation10] ss:$0 sm:$0xff] }
 0x756   : > { %v1798_v37 = vpop.f32.mrb[16].mxu1 }
 0x757   : > { %v1850_v38 = vcombine.low %v1706_v28, %v1798_v37  ;;  %v1851_v39 = vcombine.high %v1706_v28, %v1798_v37  ;;  %v1844_v40 = vpop.f32.mrb[12].mxu0  ;;  %v7245_v41 = vpop.f32.mrb[17].mxu1 }
 0x758   : > { %v1866_v42 = vcombine.low %v1752_v29, %v1844_v40  ;;  %v1867_v43 = vcombine.high %v1752_v29, %v1844_v40  ;;  %v7251_v45 = vpop.f32.mrb[13].mxu0  ;;  %v1801_v46 = vpop.f32.mrb[18].mxu1 }
 0x759   : > { %v1858_v47 = vrot.slane %v1850_v38, %v8600_v44  ;;  %v1865_v48 = vrot.slane %v1851_v39, %v8600_v44  ;;  %v1847_v49 = vpop.f32.mrb[14].mxu0  ;;  %v7246_v51 = vpop.f32.mrb[19].mxu1  ;;  %v7637_v45 = vld [vmem:[#allocation11 + $0x8] sm:$0xff]  }
 0x75a   : > { %v1874_v52 = vrot.slane %v1866_v42, %v8600_v44  ;;  %v1881_v53 = vrot.slane %v1867_v43, %v8600_v44  ;;  %v7252_v54 = vpop.f32.mrb[15].mxu0  ;;  %v7636_v43 = vld [vmem:[#allocation11] sm:$0xff]  }
 0x75b   : > { %v863_v46 = vld [vmem:[%s859_s12 + $0x8] sm:$0xff]  ;;  %v7638_v54 = vld [vmem:[%s9696_s10] sm:$0xff]  }
 0x75c   : > { %v1882_v56 = vcombine.low %v1858_v47, %v1874_v52  ;;  %v1883_v57 = vcombine.high %v1858_v47, %v1874_v52  ;;  %v1898_v58 = vcombine.low %v1865_v48, %v1881_v53  ;;  %v1899_v59 = vcombine.high %v1865_v48, %v1881_v53  ;;  %7262 = vmatpush3.bf16.msra.mxu0 %v7638_v54 }
 0x75d   : > { %7263 = vmatprep.subr.bf16.mxu0 %v8072_v8 }
 0x75e   : > { %v1890_v60 = vrot.slane %v1882_v56, %v8603_v50  ;;  %v1897_v61 = vrot.slane %v1883_v57, %v8603_v50  ;;  %v1906_v62 = vrot.slane %v1898_v58, %v8603_v50  ;;  %v1913_v2 = vrot.slane %v1899_v59, %v8603_v50  ;;  %v6949_v56 = vld [vmem:[%s9699_s13] ss:$0 sm:$0xff] }
 0x760   : > { %v1918_v27 = vcombine.low %v1890_v60, %v1897_v61  ;;  %v6939_v3 = vcombine.high %v1890_v60, %v1897_v61  ;;  %v1934_v4 = vcombine.low %v1906_v62, %v1913_v2  ;;  %v6940_v5 = vcombine.high %v1906_v62, %v1913_v2  ;;  %7264 = vmatpush3.bf16.msra.mxu0 %v7639_v55 }
 0x761   : > { %7277 = vmatprep.subr.bf16.mxu0 %v8072_v8 }
 0x762   : > { %v1925_v6 = vrot.slane %v1918_v27, %v8600_v44  ;;  %v1933_v7 = vrot.slane %v6939_v3, %v8600_v44  ;;  %v1941_v11 = vrot.slane %v1934_v4, %v8600_v44  ;;  %v1949_v33 = vrot.slane %v6940_v5, %v8600_v44 }
 0x763   : > { %v8814_v3 = vsub.s32 1, %v8551_v14 }
 0x764   : > { %v1951_v34 = vcombine.high %v1925_v6, %v1933_v7  ;;  %v1967_v12 = vcombine.high %v1941_v11, %v1949_v33  ;;  %v1950_v13 = vcombine.low %v1925_v6, %v1933_v7  ;;  %v1966_v63 = vcombine.low %v1941_v11, %v1949_v33 }
 0x765   : > { %v2082_v4 = vrot.slane %v8559_v16, %v8814_v3  ;;  %v2087_v7 = vrot.slane %v8564_v17, %v8814_v3 }
 0x766   : > { %v1965_v1 = vrot.slane %v1951_v34, %v8603_v50  ;;  %v1981_v18 = vrot.slane %v1967_v12, %v8603_v50  ;;  %v1958_v19 = vrot.slane %v1950_v13, %v8603_v50  ;;  %v1974_v20 = vrot.slane %v1966_v63, %v8603_v50 }
 0x768   : > { %v1984_v21 = vcombine.low %v1965_v1, %v1981_v18  ;;  %v1983_v22 = vcombine.high %v1958_v19, %v1974_v20  ;;  %v1985_v23 = vcombine.high %v1965_v1, %v1981_v18  ;;  %v1982_v24 = vcombine.low %v1958_v19, %v1974_v20 }
 0x76a   : > { %1991 = vrot.lane.b32.xlu1 %v1984_v21, %s9750_s15  ;;  %1987 = vrot.lane.b32.xlu0 %v1983_v22, %s9748_s17 }
 0x76e   : > { %1995 = vrot.lane.b32.xlu1 %v1985_v23, %s9746_s22 }
 0x7dc   : > { %v1992_v25 = vpop.permute.xlu1 %1991  ;;  %v1988_v28 = vpop.permute.xlu0 %1987 }
 0x7dd   : > { %v1998_v29 = vsel %vm1432_vm2, %v1982_v24, %v1988_v28 }
 0x7de   : > { %v2000_v31 = vsel %vm1999_vm4, %v1998_v29, %v1992_v25 }
 0x7e0   : > { %v1996_v30 = vpop.permute.xlu1 %1995 }
 0x7e1   : > { %v2002_v35 = vsel %vm2001_vm5, %v2000_v31, %v1996_v30 }
 0x7e2   : > { %v2003_v9 = vpack.c.bf16 %v2002_v35, %v2002_v35 }
 0x7e4   : > { %7258 = vmatmul.mubr.msk.bf16.vlgmr.msra.gmra.mrb[20].mxu1 %vm873_vm0, %v2003_v9 }
 0x7e5   : > { %7273 = vmatprep.mubr.msk.bf16.mxu1 %vm8073_vm1, %v8072_v8  ;;  %7270 = vmatpush3.bf16.msra.mxu1 %v7636_v43 }
 0x7e6   : > { %7271 = vmatprep.subr.bf16.mxu1 %v8072_v8 }
 0x7e9   : > { %7272 = vmatpush3.bf16.msra.mxu1 %v7637_v45 }
 0x7ea   : > { %7283 = vmatprep.subr.bf16.mxu1 %v8072_v8 }
 0x8b7   : > { %v2059_v10 = vpop.f32.mrb[20].mxu1 }
 0x8b8   : > { %v2060_v37 = vadd.f32 %v6941_v36, %v2059_v10  ;;  %v7259_v38 = vpop.f32.mrb[21].mxu1 }
 0x8b9   : > { %v2062_v39 = vpop.f32.mrb[22].mxu1 }
 0x8ba   : > { %v8767_v40 = vadd.f32 %v2060_v37, %v8531_v0  ;;  %v7260_v41 = vpop.f32.mrb[23].mxu1  ;;  %v862_v0 = vld [vmem:[%s859_s12] sm:$0xff]  ;;  %s9824_s12 = smov %s9823_s29 }
 0x8bb   : > { %v8777_v47 = vpack.c.bf16 %v863_v46, %v862_v0 }
 0x8bc   : > { %v2066_v42 = vsel %vm873_vm0, %v8767_v40, 0.0 }
 0x8bd   : > { %2067 = vadd.xlane.f32.xlu0 %v2066_v42  ;;  %7274 = vmatmul.mubr.msk.bf16.vlgmr.msra.gmra.mrb[24].mxu1 %vm873_vm0, %v8777_v47 }
 0x8be   : > { %7285 = vmatprep.mubr.msk.bf16.mxu1 %vm8073_vm1, %v8072_v8 }
 0x94a   : > { %v2068_v48 = vpop.xlane.xlu0 %2067 }
 0x94b   : > { %v2069_v49 = vmul.f32 0.03125, %v2068_v48 }
 0x94d   : > { %v2070_v51 = vsub.f32 %v8767_v40, %v2069_v49 }
 0x94f   : > { %v2071_v52 = vmul.f32 %v2070_v51, %v2070_v51 }
 0x951   : > { %v2072_v53 = vsel %vm873_vm0, %v2071_v52, 0.0 }
 0x952   : > { %2073 = vadd.xlane.f32.xlu1 %v2072_v53 }
 0x990   : > { %v2216_v57 = vpop.f32.mrb[24].mxu1 }
 0x991   : > { %v8797_v58 = vadd.f32 %v6949_v56, %v2216_v57  ;;  %v7275_v59 = vpop.f32.mrb[25].mxu1 }
 0x992   : > { %v2219_v60 = vpop.f32.mrb[26].mxu1 }
 0x993   : > { %v8799_v61 = vadd.f32 %v6949_v56, %v2219_v60  ;;  %2377 = vrot.lane.b32.xlu0 %v8797_v58, %s8075_s9  ;;  %v7276_v62 = vpop.f32.mrb[27].mxu1 }
 0x995   : > { %2379 = vrot.lane.b32.xlu1 %v8799_v61, %s8075_s9 }
 0x997   : > { %2383 = vrot.lane.b32.xlu0 %v8797_v58, %s8076_s1 }
 0x999   : > { %2385 = vrot.lane.b32.xlu1 %v8799_v61, %s8076_s1 }
 0x99b   : > { %2389 = vrot.lane.b32.xlu0 %v8797_v58, %s9754_s3 }
 0x99d   : > { %2391 = vrot.lane.b32.xlu1 %v8799_v61, %s9754_s3 }
 0x9df   : > { %v2074_v2 = vpop.xlane.xlu1 %2073 }
 0x9e0   : > { %v2075_v32 = vmul.f32 0.03125, %v2074_v2 }
 0x9e2   : > { %v2076_v27 = vadd.f32 1e-05, %v2075_v32 }
 0x9e4   : > { %7682 = vrsqrt.f32 %v2076_v27 }
 0x9ee   : > { %v7683_v5 = vpop.eup %7682 }
 0x9ef   : > { %v2078_v6 = vmul.f32 %v7683_v5, %v2070_v51 }
 0x9f1   : > { %v2083_v11 = vmul.f32 %v2082_v4, %v2078_v6 }
 0x9f3   : > { %v2088_v33 = vadd.f32 %v2087_v7, %v2083_v11 }
 0x9f5   : > { %v2089_v34 = vpack.c.bf16 %v2088_v33, %v2088_v33 }
 0x9f7   : > { %7266 = vmatmul.mubr.msk.bf16.vlgmr.msra.gmra.mrb[16].mxu0 %vm873_vm0, %v2089_v34 }
 0x9f8   : > { %7279 = vmatprep.mubr.msk.bf16.mxu0 %vm8073_vm1, %v8072_v8 }
 0xa05   : > { %v8823_v12 = vpop.permute.xlu0 %2377 }
 0xa07   : > { %v8825_v13 = vpop.permute.xlu1 %2379 }
 0xa09   : > { %v8827_v63 = vpop.permute.xlu0 %2383 }
 0xa0a   : > { %v2395_v17 = vcombine.low %v8797_v58, %v8827_v63  ;;  %v2396_v19 = vcombine.high %v8797_v58, %v8827_v63 }
 0xa0b   : > { %v8829_v16 = vpop.permute.xlu1 %2385 }
 0xa0c   : > { %v2463_v22 = vcombine.low %v8799_v61, %v8829_v16  ;;  %v2464_v23 = vcombine.high %v8799_v61, %v8829_v16  ;;  %v2403_v28 = vrot.slane %v2395_v17, %v8600_v44  ;;  %v2410_v29 = vrot.slane %v2396_v19, %v8600_v44 }
 0xa0d   : > { %v8831_v1 = vpop.permute.xlu0 %2389 }
 0xa0e   : > { %v2411_v20 = vcombine.low %v8823_v12, %v8831_v1  ;;  %v2412_v21 = vcombine.high %v8823_v12, %v8831_v1  ;;  %v2471_v35 = vrot.slane %v2463_v22, %v8600_v44  ;;  %v2478_v9 = vrot.slane %v2464_v23, %v8600_v44 }
 0xa0f   : > { %v8833_v18 = vpop.permute.xlu1 %2391 }
 0xa10   : > { %v2479_v24 = vcombine.low %v8825_v13, %v8833_v18  ;;  %v2480_v25 = vcombine.high %v8825_v13, %v8833_v18  ;;  %v2419_v30 = vrot.slane %v2411_v20, %v8600_v44  ;;  %v2426_v31 = vrot.slane %v2412_v21, %v8600_v44 }
 0xa12   : > { %v2487_v36 = vrot.slane %v2479_v24, %v8600_v44  ;;  %v2494_v10 = vrot.slane %v2480_v25, %v8600_v44  ;;  %v2427_v37 = vcombine.low %v2403_v28, %v2419_v30  ;;  %v2428_v38 = vcombine.high %v2403_v28, %v2419_v30 }
 0xa13   : > { %v2443_v39 = vcombine.low %v2410_v29, %v2426_v31  ;;  %v2444_v41 = vcombine.high %v2410_v29, %v2426_v31 }
 0xa14   : > { %v2495_v42 = vcombine.low %v2471_v35, %v2487_v36  ;;  %v2496_v43 = vcombine.high %v2471_v35, %v2487_v36  ;;  %v2511_v45 = vcombine.low %v2478_v9, %v2494_v10  ;;  %v2512_v0 = vcombine.high %v2478_v9, %v2494_v10 }
 0xa15   : > { %v2435_v46 = vrot.slane %v2427_v37, %v8603_v50  ;;  %v2442_v48 = vrot.slane %v2428_v38, %v8603_v50  ;;  %v2451_v49 = vrot.slane %v2443_v39, %v8603_v50  ;;  %v2458_v51 = vrot.slane %v2444_v41, %v8603_v50 }
 0xa16   : > { %v2503_v52 = vrot.slane %v2495_v42, %v8603_v50  ;;  %v2510_v53 = vrot.slane %v2496_v43, %v8603_v50  ;;  %v2519_v54 = vrot.slane %v2511_v45, %v8603_v50  ;;  %v2526_v55 = vrot.slane %v2512_v0, %v8603_v50 }
 0xa17   : > { %v2531_v56 = vcombine.low %v2435_v46, %v2442_v48  ;;  %v6955_v57 = vcombine.high %v2435_v46, %v2442_v48  ;;  %v2547_v59 = vcombine.low %v2451_v49, %v2458_v51  ;;  %v6956_v60 = vcombine.high %v2451_v49, %v2458_v51 }
 0xa18   : > { %v2599_v62 = vcombine.low %v2503_v52, %v2510_v53  ;;  %v6957_v2 = vcombine.high %v2503_v52, %v2510_v53  ;;  %v2615_v32 = vcombine.low %v2519_v54, %v2526_v55  ;;  %v6958_v27 = vcombine.high %v2519_v54, %v2526_v55  ;;  %v6945_v55 = vld [vmem:[%s9697_s11] ss:$0 sm:$0xff] }
 0xa19   : > { %v2538_v4 = vrot.slane %v2531_v56, %v8600_v44  ;;  %v2546_v5 = vrot.slane %v6955_v57, %v8600_v44  ;;  %v2554_v6 = vrot.slane %v2547_v59, %v8600_v44  ;;  %v2562_v7 = vrot.slane %v6956_v60, %v8600_v44 }
 0xa1a   : > { %v2606_v11 = vrot.slane %v2599_v62, %v8600_v44  ;;  %v2614_v33 = vrot.slane %v6957_v2, %v8600_v44  ;;  %v2622_v34 = vrot.slane %v2615_v32, %v8600_v44  ;;  %v2630_v17 = vrot.slane %v6958_v27, %v8600_v44 }
 0xa1b   : > { %v2563_v19 = vcombine.low %v2538_v4, %v2546_v5  ;;  %v2579_v20 = vcombine.low %v2554_v6, %v2562_v7  ;;  %v2564_v21 = vcombine.high %v2538_v4, %v2546_v5  ;;  %v2580_v22 = vcombine.high %v2554_v6, %v2562_v7 }
 0xa1c   : > { %v2631_v23 = vcombine.low %v2606_v11, %v2614_v33  ;;  %v2647_v24 = vcombine.low %v2622_v34, %v2630_v17  ;;  %v2632_v25 = vcombine.high %v2606_v11, %v2614_v33  ;;  %v2648_v28 = vcombine.high %v2622_v34, %v2630_v17 }
 0xa1d   : > { %v2571_v29 = vrot.slane %v2563_v19, %v8603_v50  ;;  %v2587_v30 = vrot.slane %v2579_v20, %v8603_v50  ;;  %v2578_v31 = vrot.slane %v2564_v21, %v8603_v50  ;;  %v2594_v35 = vrot.slane %v2580_v22, %v8603_v50 }
 0xa1e   : > { %v2639_v9 = vrot.slane %v2631_v23, %v8603_v50  ;;  %v2655_v36 = vrot.slane %v2647_v24, %v8603_v50  ;;  %v2646_v10 = vrot.slane %v2632_v25, %v8603_v50  ;;  %v2662_v37 = vrot.slane %v2648_v28, %v8603_v50 }
 0xa1f   : > { %v2595_v38 = vcombine.low %v2571_v29, %v2587_v30  ;;  %v2596_v39 = vcombine.high %v2571_v29, %v2587_v30  ;;  %v2597_v41 = vcombine.low %v2578_v31, %v2594_v35  ;;  %v2598_v0 = vcombine.high %v2578_v31, %v2594_v35 }
 0xa20   : > { %v2663_v42 = vcombine.low %v2639_v9, %v2655_v36  ;;  %v2664_v43 = vcombine.high %v2639_v9, %v2655_v36  ;;  %v2665_v45 = vcombine.low %v2646_v10, %v2662_v37  ;;  %v2666_v46 = vcombine.high %v2646_v10, %v2662_v37 }
 0xa22   : > { %v2967_v48 = vpack.c.bf16 %v2663_v42, %v2595_v38  ;;  %v2968_v49 = vpack.c.bf16 %v2664_v43, %v2596_v39  ;;  %v8883_v51 = vpack.c.bf16 %v2665_v45, %v2597_v41  ;;  %v8885_v52 = vpack.c.bf16 %v2666_v46, %v2598_v0 }
 0xa24   : > { %v2985_v53 = vsel %vm1432_vm2, %v2967_v48, 0  ;;  %v3031_v54 = vsel %vm1432_vm2, %v2968_v49, 0  ;;  %v3077_v49 = vsel %vm1432_vm2, %v8883_v51, 0 }
 0xa25   : > { %7278 = vmatpush3.bf16.xpose.msra.mxu0 %v2985_v53  ;;  %7284 = vmatpush3.bf16.xpose.msra.mxu1 %v3031_v54  ;;  %v3123_v53 = vsel %vm1432_vm2, %v8885_v52, 0  ;;  %v868_v52 = vld [vmem:[%s751_s4] sm:$0x1] }
 0xa26   : > { %7289 = vmatprep.subr.bf16.mxu0 %v8072_v8  ;;  %7295 = vmatprep.subr.bf16.mxu1 %v8072_v8 }
 0xaca   : > { %v2150_v56 = vpop.f32.mrb[16].mxu0 }
 0xacb   : > { %v2151_v57 = vadd.f32 %v6945_v55, %v2150_v56  ;;  %v7267_v59 = vpop.f32.mrb[17].mxu0 }
 0xacc   : > { %v2153_v60 = vpop.f32.mrb[18].mxu0 }
 0xacd   : > { %v2228_v62 = vmul.f32 0.35355338, %v2151_v57  ;;  %v7268_v2 = vpop.f32.mrb[19].mxu0  ;;  %v6920_v57 = vadd.f32 -1.0, %v868_v52 }
 0xacf   : > { %2230 = vrot.lane.b32.xlu0 %v2228_v62, %s8075_s9  ;;  %2233 = vrot.lane.b32.xlu1 %v2228_v62, %s8076_s1  ;;  %v870_v59 = vmul.f32 1e+09, %v6920_v57 }
 0xad1   : > { %v8942_v60 = vrot.slane %v870_v59, %v8554_v15 }
 0xad3   : > { %2236 = vrot.lane.b32.xlu0 %v2228_v62, %s9754_s3  ;;  %2669 = vrot.lane.b32.xlu1 %v8799_v61, %s9752_s25 }
 0xad7   : > { %2667 = vrot.lane.b32.xlu0 %v8797_v58, %s9752_s25  ;;  %2671 = vrot.lane.b32.xlu1 %v8823_v12, %s9752_s25 }
 0xadb   : > { %2673 = vrot.lane.b32.xlu0 %v8825_v13, %s9752_s25 }
 0xb41   : > { %v2231_v32 = vpop.permute.xlu0 %2230  ;;  %v2234_v27 = vpop.permute.xlu1 %2233 }
 0xb42   : > { %v2239_v4 = vcombine.low %v2228_v62, %v2234_v27  ;;  %v2240_v5 = vcombine.high %v2228_v62, %v2234_v27 }
 0xb44   : > { %v2247_v33 = vrot.slane %v2239_v4, %v8600_v44  ;;  %v2254_v61 = vrot.slane %v2240_v5, %v8600_v44 }
 0xb45   : > { %v2237_v6 = vpop.permute.xlu0 %2236 }
 0xb46   : > { %v2255_v7 = vcombine.low %v2231_v32, %v2237_v6  ;;  %v2256_v11 = vcombine.high %v2231_v32, %v2237_v6 }
 0xb48   : > { %v2263_v34 = vrot.slane %v2255_v7, %v8600_v44  ;;  %v2270_v58 = vrot.slane %v2256_v11, %v8600_v44 }
 0xb4a   : > { %v2271_v17 = vcombine.low %v2247_v33, %v2263_v34  ;;  %v2272_v12 = vcombine.high %v2247_v33, %v2263_v34  ;;  %v2287_v19 = vcombine.low %v2254_v61, %v2270_v58  ;;  %v2288_v20 = vcombine.high %v2254_v61, %v2270_v58 }
 0xb4c   : > { %v2279_v13 = vrot.slane %v2271_v17, %v8603_v50  ;;  %v2286_v21 = vrot.slane %v2272_v12, %v8603_v50  ;;  %v2295_v22 = vrot.slane %v2287_v19, %v8603_v50  ;;  %v2302_v23 = vrot.slane %v2288_v20, %v8603_v50 }
 0xb4e   : > { %v2307_v24 = vcombine.low %v2279_v13, %v2286_v21  ;;  %v6953_v25 = vcombine.high %v2279_v13, %v2286_v21  ;;  %v2323_v28 = vcombine.low %v2295_v22, %v2302_v23  ;;  %v6954_v29 = vcombine.high %v2295_v22, %v2302_v23 }
 0xb50   : > { %v2314_v30 = vrot.slane %v2307_v24, %v8600_v44  ;;  %v2322_v31 = vrot.slane %v6953_v25, %v8600_v44  ;;  %v2330_v35 = vrot.slane %v2323_v28, %v8600_v44  ;;  %v2338_v9 = vrot.slane %v6954_v29, %v8600_v44  ;;  %v2670_v29 = vpop.permute.xlu1 %2669 }
 0xb52   : > { %v2339_v36 = vcombine.low %v2314_v30, %v2322_v31  ;;  %v2355_v10 = vcombine.low %v2330_v35, %v2338_v9  ;;  %v2340_v37 = vcombine.high %v2314_v30, %v2322_v31  ;;  %v2356_v38 = vcombine.high %v2330_v35, %v2338_v9  ;;  %v2668_v30 = vpop.permute.xlu0 %2667 }
 0xb54   : > { %v2347_v39 = vrot.slane %v2339_v36, %v8603_v50  ;;  %v2363_v41 = vrot.slane %v2355_v10, %v8603_v50  ;;  %v2354_v46 = vrot.slane %v2340_v37, %v8603_v50  ;;  %v2370_v48 = vrot.slane %v2356_v38, %v8603_v50  ;;  %v2672_v35 = vpop.permute.xlu1 %2671 }
 0xb56   : > { %v2371_v42 = vcombine.low %v2347_v39, %v2363_v41  ;;  %v2372_v43 = vcombine.high %v2347_v39, %v2363_v41  ;;  %v2373_v54 = vcombine.low %v2354_v46, %v2370_v48  ;;  %v2374_v55 = vcombine.high %v2354_v46, %v2370_v48  ;;  %v2674_v31 = vpop.permute.xlu0 %2673 }
 0xb58   : > { %v2963_v45 = vpack.c.bf16 %v2371_v42, %v2371_v42  ;;  %v2964_v0 = vpack.c.bf16 %v2372_v43, %v2372_v43  ;;  %v2965_v56 = vpack.c.bf16 %v2373_v54, %v2373_v54  ;;  %v2966_v51 = vpack.c.bf16 %v2374_v55, %v2374_v55 }
 0xb5a   : > { %7280 = vmatmul.mubr.msk.bf16.vlgmr.msra.gmra.mrb[20].mxu0 %vm1432_vm2, %v2963_v45  ;;  %7286 = vmatmul.mubr.msk.bf16.vlgmr.msra.gmra.mrb[28].mxu1 %vm1432_vm2, %v2964_v0 }
 0xb5b   : > { %7290 = vmatpush3.bf16.xpose.msra.mxu0 %v3077_v49  ;;  %7296 = vmatpush3.bf16.xpose.msra.mxu1 %v3123_v53 }
 0xb5c   : > { %7291 = vmatprep.mubr.msk.bf16.mxu0 %vm8073_vm1, %v8072_v8  ;;  %7297 = vmatprep.mubr.msk.bf16.mxu1 %vm8073_vm1, %v8072_v8 }
 0xb5d   : > { %7301 = vmatprep.subr.bf16.mxu0 %v8072_v8  ;;  %7307 = vmatprep.subr.bf16.mxu1 %v8072_v8 }
 0xb62   : > { %7292 = vmatmul.mubr.msk.bf16.vlgmr.msra.gmra.mrb[24].mxu0 %vm1432_vm2, %v2965_v56  ;;  %7298 = vmatmul.mubr.msk.bf16.vlgmr.msra.gmra.mrb[32].mxu1 %vm1432_vm2, %v2966_v51 }
 0xb63   : > { %7303 = vmatprep.mubr.msk.bf16.mxu0 %vm8073_vm1, %v8072_v8  ;;  %7309 = vmatprep.mubr.msk.bf16.mxu1 %vm8073_vm1, %v8072_v8 }
 0xc2d   : > { %v3021_v62 = vpop.f32.mrb[20].mxu0  ;;  %v3067_v2 = vpop.f32.mrb[28].mxu1 }
 0xc2e   : > { %v3022_v32 = vadd.f32 %v3021_v62, %v8942_v60  ;;  %v3068_v27 = vadd.f32 %v3067_v2, %v8942_v60  ;;  %v7281_v4 = vpop.f32.mrb[21].mxu0  ;;  %v7287_v5 = vpop.f32.mrb[29].mxu1 }
 0xc2f   : > { %v3024_v6 = vpop.f32.mrb[22].mxu0  ;;  %v3070_v7 = vpop.f32.mrb[30].mxu1 }
 0xc30   : > { %v7282_v11 = vpop.f32.mrb[23].mxu0  ;;  %v7288_v33 = vpop.f32.mrb[31].mxu1  ;;  %v3165_v61 = vsel %vm1999_vm4, %v3022_v32, -inf  ;;  %v3168_v34 = vsel %vm1999_vm4, %v3068_v27, -inf }
 0xc31   : > { %3166 = vmax.xlane.f32.xlu1 %v3165_v61  ;;  %3169 = vmax.xlane.f32.xlu0 %v3168_v34 }
 0xc35   : > { %v3113_v58 = vpop.f32.mrb[24].mxu0  ;;  %v3159_v17 = vpop.f32.mrb[32].mxu1 }
 0xc36   : > { %v3114_v12 = vadd.f32 %v3113_v58, %v8942_v60  ;;  %v3160_v19 = vadd.f32 %v3159_v17, %v8942_v60  ;;  %v7293_v20 = vpop.f32.mrb[25].mxu0  ;;  %v7299_v13 = vpop.f32.mrb[33].mxu1 }
 0xc37   : > { %v3116_v21 = vpop.f32.mrb[26].mxu0  ;;  %v3162_v22 = vpop.f32.mrb[34].mxu1 }
 0xc38   : > { %v7294_v23 = vpop.f32.mrb[27].mxu0  ;;  %v7300_v24 = vpop.f32.mrb[35].mxu1  ;;  %v3171_v25 = vsel %vm1999_vm4, %v3114_v12, -inf  ;;  %v3174_v28 = vsel %vm1999_vm4, %v3160_v19, -inf }
 0xc39   : > { %3172 = vmax.xlane.f32.xlu0 %v3171_v25  ;;  %3175 = vmax.xlane.f32.xlu1 %v3174_v28 }
 0xc4a   : > { %2675 = vrot.lane.b32.xlu1 %v8827_v63, %s9752_s25 }
 0xc4f   : > { %2677 = vrot.lane.b32.xlu0 %v8829_v16, %s9752_s25 }
 0xcbe   : > { %v3167_v9 = vpop.xlane.xlu1 %3166  ;;  %v3170_v36 = vpop.xlane.xlu0 %3169 }
 0xcbf   : > { %v3177_v10 = vsub.f32 %v3022_v32, %v3167_v9  ;;  %v3178_v37 = vsub.f32 %v3068_v27, %v3170_v36 }
 0xcc1   : > { %v3181_v38 = vmul.f32 1.442695, %v3177_v10  ;;  %v3183_v39 = vmul.f32 1.442695, %v3178_v37 }
 0xcc3   : > { %7684 = vpow2.f32 %v3181_v38 }
 0xcc4   : > { %7686 = vpow2.f32 %v3183_v39 }
 0xcc6   : > { %v3176_v43 = vpop.xlane.xlu1 %3175  ;;  %v3173_v45 = vpop.xlane.xlu0 %3172 }
 0xcc7   : > { %v3180_v0 = vsub.f32 %v3160_v19, %v3176_v43  ;;  %v3179_v46 = vsub.f32 %v3114_v12, %v3173_v45 }
 0xcc9   : > { %v3187_v48 = vmul.f32 1.442695, %v3180_v0  ;;  %v3185_v49 = vmul.f32 1.442695, %v3179_v46 }
 0xcca   : > { %v2676_v56 = vpop.permute.xlu1 %2675 }
 0xccb   : > { %7688 = vpow2.f32 %v3187_v48  ;;  %v2691_v62 = vcombine.low %v2668_v30, %v2676_v56  ;;  %v2692_v2 = vcombine.high %v2668_v30, %v2676_v56 }
 0xccc   : > { %7690 = vpow2.f32 %v3185_v49 }
 0xccd   : > { %v8956_v41 = vpop.eup %7684  ;;  %v2699_v58 = vrot.slane %v2691_v62, %v8600_v44  ;;  %v2706_v17 = vrot.slane %v2692_v2, %v8600_v44 }
 0xcce   : > { %v8958_v42 = vpop.eup %7686  ;;  %v3189_v63 = vsel %vm1999_vm4, %v8956_v41, 0.0 }
 0xccf   : > { %3190 = vadd.xlane.f32.xlu0 %v3189_v63  ;;  %v3192_v16 = vsel %vm1999_vm4, %v8958_v42, 0.0 }
 0xcd0   : > { %3193 = vadd.xlane.f32.xlu1 %v3192_v16 }
 0xcd5   : > { %v8968_v53 = vpop.eup %7688 }
 0xcd6   : > { %v8970_v54 = vpop.eup %7690  ;;  %v3198_v55 = vsel %vm1999_vm4, %v8968_v53, 0.0 }
 0xce1   : > { %2679 = vrot.lane.b32.xlu1 %v8831_v1, %s9752_s25  ;;  %v3195_v1 = vsel %vm1999_vm4, %v8970_v54, 0.0 }
 0xce5   : > { %2681 = vrot.lane.b32.xlu0 %v8833_v18, %s9752_s25  ;;  %v2678_v18 = vpop.permute.xlu0 %2677 }
 0xce6   : > { %v2759_v57 = vcombine.low %v2670_v29, %v2678_v18  ;;  %v2760_v59 = vcombine.high %v2670_v29, %v2678_v18 }
 0xce8   : > { %v2767_v11 = vrot.slane %v2759_v57, %v8600_v44  ;;  %v2774_v33 = vrot.slane %v2760_v59, %v8600_v44 }
 0xd04   : > { %3199 = vadd.xlane.f32.xlu0 %v3198_v55 }
 0xd05   : > { %3196 = vadd.xlane.f32.xlu1 %v3195_v1 }
 0xd5c   : > { %v3191_v51 = vpop.xlane.xlu0 %3190 }
 0xd5d   : > { %v3194_v52 = vpop.xlane.xlu1 %3193  ;;  %7692 = vrcp.f32 %v3191_v51 }
 0xd5e   : > { %7694 = vrcp.f32 %v3194_v52 }
 0xd60   : > { %v2682_v32 = vpop.permute.xlu0 %2681 }
 0xd61   : > { %v2775_v27 = vcombine.low %v2674_v31, %v2682_v32  ;;  %v2776_v4 = vcombine.high %v2674_v31, %v2682_v32  ;;  %v2680_v5 = vpop.permute.xlu1 %2679 }
 0xd62   : > { %v2707_v6 = vcombine.low %v2672_v35, %v2680_v5  ;;  %v2708_v7 = vcombine.high %v2672_v35, %v2680_v5 }
 0xd63   : > { %v2783_v61 = vrot.slane %v2775_v27, %v8600_v44  ;;  %v2790_v34 = vrot.slane %v2776_v4, %v8600_v44 }
 0xd64   : > { %v2715_v12 = vrot.slane %v2707_v6, %v8600_v44  ;;  %v2722_v19 = vrot.slane %v2708_v7, %v8600_v44 }
 0xd65   : > { %v2791_v20 = vcombine.low %v2767_v11, %v2783_v61  ;;  %v2792_v13 = vcombine.high %v2767_v11, %v2783_v61  ;;  %v2807_v21 = vcombine.low %v2774_v33, %v2790_v34  ;;  %v2808_v22 = vcombine.high %v2774_v33, %v2790_v34 }
 0xd66   : > { %v2723_v23 = vcombine.low %v2699_v58, %v2715_v12  ;;  %v2724_v24 = vcombine.high %v2699_v58, %v2715_v12  ;;  %v2739_v25 = vcombine.low %v2706_v17, %v2722_v19  ;;  %v2740_v28 = vcombine.high %v2706_v17, %v2722_v19 }
 0xd67   : > { %v2799_v29 = vrot.slane %v2791_v20, %v8603_v50  ;;  %v2806_v30 = vrot.slane %v2792_v13, %v8603_v50  ;;  %v2815_v31 = vrot.slane %v2807_v21, %v8603_v50  ;;  %v2822_v35 = vrot.slane %v2808_v22, %v8603_v50  ;;  %v7693_v33 = vpop.eup %7692 }
 0xd68   : > { %v2731_v9 = vrot.slane %v2723_v23, %v8603_v50  ;;  %v2738_v36 = vrot.slane %v2724_v24, %v8603_v50  ;;  %v2747_v10 = vrot.slane %v2739_v25, %v8603_v50  ;;  %v2754_v16 = vrot.slane %v2740_v28, %v8603_v50  ;;  %v7695_v17 = vpop.eup %7694 }
 0xd69   : > { %v2895_v37 = vcombine.low %v2799_v29, %v2806_v30  ;;  %v6961_v38 = vcombine.high %v2799_v29, %v2806_v30  ;;  %v2911_v39 = vcombine.low %v2815_v31, %v2822_v35  ;;  %v6962_v63 = vcombine.high %v2815_v31, %v2822_v35 }
 0xd6a   : > { %v2827_v43 = vcombine.low %v2731_v9, %v2738_v36  ;;  %v6959_v45 = vcombine.high %v2731_v9, %v2738_v36  ;;  %v2843_v18 = vcombine.low %v2747_v10, %v2754_v16  ;;  %v6960_v56 = vcombine.high %v2747_v10, %v2754_v16 }
 0xd6b   : > { %v2902_v0 = vrot.slane %v2895_v37, %v8600_v44  ;;  %v2910_v46 = vrot.slane %v6961_v38, %v8600_v44  ;;  %v2918_v48 = vrot.slane %v2911_v39, %v8600_v44  ;;  %v2926_v49 = vrot.slane %v6962_v63, %v8600_v44 }
 0xd6c   : > { %v2834_v55 = vrot.slane %v2827_v43, %v8600_v44  ;;  %v2842_v1 = vrot.slane %v6959_v45, %v8600_v44  ;;  %v2850_v57 = vrot.slane %v2843_v18, %v8600_v44  ;;  %v2858_v32 = vrot.slane %v6960_v56, %v8600_v44 }
 0xd6d   : > { %v2927_v51 = vcombine.low %v2902_v0, %v2910_v46  ;;  %v2928_v52 = vcombine.high %v2902_v0, %v2910_v46  ;;  %v2943_v62 = vcombine.low %v2918_v48, %v2926_v49  ;;  %v2944_v4 = vcombine.high %v2918_v48, %v2926_v49 }
 0xd6e   : > { %v2859_v59 = vcombine.low %v2834_v55, %v2842_v1  ;;  %v2860_v2 = vcombine.high %v2834_v55, %v2842_v1  ;;  %v2875_v7 = vcombine.low %v2850_v57, %v2858_v32  ;;  %v2876_v11 = vcombine.high %v2850_v57, %v2858_v32 }
 0xd6f   : > { %v2935_v27 = vrot.slane %v2927_v51, %v8603_v50  ;;  %v2951_v5 = vrot.slane %v2943_v62, %v8603_v50  ;;  %v2942_v34 = vrot.slane %v2928_v52, %v8603_v50  ;;  %v2958_v58 = vrot.slane %v2944_v4, %v8603_v50 }
 0xd70   : > { %v2867_v6 = vrot.slane %v2859_v59, %v8603_v50  ;;  %v2874_v61 = vrot.slane %v2860_v2, %v8603_v50  ;;  %v2883_v12 = vrot.slane %v2875_v7, %v8603_v50  ;;  %v2890_v13 = vrot.slane %v2876_v11, %v8603_v50 }
 0xd71   : > { %v2959_v19 = vcombine.low %v2935_v27, %v2951_v5  ;;  %v2960_v20 = vcombine.high %v2935_v27, %v2951_v5  ;;  %v3205_v23 = vmul.f32 %v7693_v33, %v8956_v41  ;;  %v3206_v24 = vmul.f32 %v7695_v17, %v8958_v42 }
 0xd72   : > { %v2891_v21 = vcombine.low %v2867_v6, %v2883_v12  ;;  %v2892_v22 = vcombine.high %v2867_v6, %v2883_v12  ;;  %v2961_v25 = vcombine.low %v2942_v34, %v2958_v58  ;;  %v2962_v28 = vcombine.high %v2942_v34, %v2958_v58  ;;  %v7640_v12 = vld [vmem:[#allocation13] sm:$0xff]  }
 0xd73   : > { %v2893_v31 = vcombine.low %v2874_v61, %v2890_v13  ;;  %v2894_v35 = vcombine.high %v2874_v61, %v2890_v13  ;;  %v3209_v9 = vpack.c.bf16 %v3205_v23, %v3205_v23  ;;  %v3210_v36 = vpack.c.bf16 %v3206_v24, %v3206_v24 }
 0xd74   : > { %v2971_v29 = vpack.c.bf16 %v2959_v19, %v2891_v21  ;;  %v2972_v30 = vpack.c.bf16 %v2960_v20, %v2892_v22 }
 0xd75   : > { %v2973_v10 = vpack.c.bf16 %v2961_v25, %v2893_v31  ;;  %v2974_v37 = vpack.c.bf16 %v2962_v28, %v2894_v35  ;;  %v7641_v35 = vld [vmem:[#allocation13 + $0x8] sm:$0xff]  }
 0xd76   : > { %7302 = vmatpush3.bf16.msra.mxu0 %v2971_v29  ;;  %7308 = vmatpush3.bf16.msra.mxu1 %v2972_v30 }
 0xd77   : > { %7313 = vmatprep.subr.bf16.mxu0 %v8072_v8  ;;  %7319 = vmatprep.subr.bf16.mxu1 %v8072_v8 }
 0xd79   : > { %7304 = vmatmul.mubr.msk.bf16.vlgmr.msra.gmra.mrb[28].mxu0 %vm1999_vm4, %v3209_v9  ;;  %7310 = vmatmul.mubr.msk.bf16.vlgmr.msra.gmra.mrb[36].mxu1 %vm1999_vm4, %v3210_v36 }
 0xd7a   : > { %7314 = vmatpush3.bf16.msra.mxu0 %v2973_v10  ;;  %7320 = vmatpush3.bf16.msra.mxu1 %v2974_v37 }
 0xd7b   : > { %7315 = vmatprep.mubr.msk.bf16.mxu0 %vm8073_vm1, %v8072_v8  ;;  %7321 = vmatprep.mubr.msk.bf16.mxu1 %vm8073_vm1, %v8072_v8 }
 0xd7c   : > { %7325 = vmatprep.subr.bf16.mxu0 %v8072_v8  ;;  %7333 = vmatprep.subr.bf16.mxu1 %v8072_v8 }
 0xd91   : > { %v3200_v41 = vpop.xlane.xlu0 %3199 }
 0xd92   : > { %7696 = vrcp.f32 %v3200_v41  ;;  %v3197_v42 = vpop.xlane.xlu1 %3196 }
 0xd93   : > { %7698 = vrcp.f32 %v3197_v42 }
 0xd9c   : > { %v7697_v38 = vpop.eup %7696 }
 0xd9d   : > { %v7699_v39 = vpop.eup %7698  ;;  %v3208_v63 = vmul.f32 %v7697_v38, %v8968_v53 }
 0xd9e   : > { %v3207_v16 = vmul.f32 %v7699_v39, %v8970_v54 }
 0xd9f   : > { %v3212_v43 = vpack.c.bf16 %v3208_v63, %v3208_v63 }
 0xda0   : > { %v3211_v45 = vpack.c.bf16 %v3207_v16, %v3207_v16 }
 0xda1   : > { %7322 = vmatmul.mubr.msk.bf16.vlgmr.msra.gmra.mrb[40].mxu1 %vm1999_vm4, %v3212_v43 }
 0xda2   : > { %7316 = vmatmul.mubr.msk.bf16.vlgmr.msra.gmra.mrb[32].mxu0 %vm1999_vm4, %v3211_v45  ;;  %7337 = vmatprep.mubr.msk.bf16.mxu1 %vm8073_vm1, %v8072_v8 }
 0xda3   : > { %7329 = vmatprep.mubr.msk.bf16.mxu0 %vm8073_vm1, %v8072_v8  ;;  %7326 = vmatpush3.bf16.msra.mxu0 %v7640_v12 }
 0xda4   : > { %7327 = vmatprep.subr.bf16.mxu0 %v8072_v8 }
 0xda7   : > { %7328 = vmatpush3.bf16.msra.mxu0 %v7641_v35 }
 0xda8   : > { %7341 = vmatprep.subr.bf16.mxu0 %v8072_v8 }
 0xe4c   : > { %v3250_v0 = vpop.f32.mrb[28].mxu0  ;;  %v3293_v46 = vpop.f32.mrb[36].mxu1 }
 0xe4d   : > { %v7305_v48 = vpop.f32.mrb[29].mxu0  ;;  %v7311_v49 = vpop.f32.mrb[37].mxu1 }
 0xe4e   : > { %v3253_v55 = vpop.f32.mrb[30].mxu0  ;;  %v3296_v53 = vpop.f32.mrb[38].mxu1 }
 0xe4f   : > { %v7306_v1 = vpop.f32.mrb[31].mxu0  ;;  %v7312_v54 = vpop.f32.mrb[39].mxu1 }
 0xe50   : > { %v6973_v54 = vld [vmem:[%s9820_s18] ss:$0 sm:$0xff] }
 0xe74   : > { %v3379_v18 = vpop.f32.mrb[40].mxu1 }
 0xe75   : > { %v3336_v56 = vpop.f32.mrb[32].mxu0  ;;  %v3401_v51 = vcombine.low %v3293_v46, %v3379_v18  ;;  %v3402_v52 = vcombine.high %v3293_v46, %v3379_v18  ;;  %v7323_v57 = vpop.f32.mrb[41].mxu1 }
 0xe76   : > { %v3385_v59 = vcombine.low %v3250_v0, %v3336_v56  ;;  %v3386_v62 = vcombine.high %v3250_v0, %v3336_v56  ;;  %v7317_v2 = vpop.f32.mrb[33].mxu0  ;;  %v3382_v32 = vpop.f32.mrb[42].mxu1 }
 0xe77   : > { %v3409_v27 = vrot.slane %v3401_v51, %v8600_v44  ;;  %v3416_v4 = vrot.slane %v3402_v52, %v8600_v44  ;;  %v3339_v5 = vpop.f32.mrb[34].mxu0  ;;  %v7324_v6 = vpop.f32.mrb[43].mxu1 }
 0xe78   : > { %v3393_v7 = vrot.slane %v3385_v59, %v8600_v44  ;;  %v3400_v11 = vrot.slane %v3386_v62, %v8600_v44  ;;  %v7318_v33 = vpop.f32.mrb[35].mxu0  ;;  %v7642_v6 = vld [vmem:[#allocation14] sm:$0xff]  }
 0xe79   : > { %7334 = vmatpush3.bf16.msra.mxu1 %v7642_v6 }
 0xe7a   : > { %v3417_v61 = vcombine.low %v3393_v7, %v3409_v27  ;;  %v3418_v34 = vcombine.high %v3393_v7, %v3409_v27  ;;  %v3433_v58 = vcombine.low %v3400_v11, %v3416_v4  ;;  %v3434_v17 = vcombine.high %v3400_v11, %v3416_v4  ;;  %v7643_v7 = vld [vmem:[#allocation14 + $0x8] sm:$0xff]   ;;  %7335 = vmatprep.subr.bf16.mxu1 %v8072_v8 }
 0xe7b   : > { %v7645_v11 = vld [vmem:[%s9821_s19 + $0x8] sm:$0xff]  }
 0xe7c   : > { %v3425_v19 = vrot.slane %v3417_v61, %v8603_v50  ;;  %v3432_v20 = vrot.slane %v3418_v34, %v8603_v50  ;;  %v3441_v13 = vrot.slane %v3433_v58, %v8603_v50  ;;  %v3448_v21 = vrot.slane %v3434_v17, %v8603_v50  ;;  %v7742_v17 = vld [vmem:[%s9816_s24] sm:$0x7] }
 0xe7d   : > { %7336 = vmatpush3.bf16.msra.mxu1 %v7643_v7  ;;  %v9072_v58 = vsub.s32 2, %v8551_v14  ;;  %v7646_v14 = vld [vmem:[%s9821_s19 + $0x10] sm:$0xff]  }
 0xe7e   : > { %v3453_v22 = vcombine.low %v3425_v19, %v3432_v20  ;;  %v6971_v23 = vcombine.high %v3425_v19, %v3432_v20  ;;  %v3469_v24 = vcombine.low %v3441_v13, %v3448_v21  ;;  %v6972_v25 = vcombine.high %v3441_v13, %v3448_v21  ;;  %7353 = vmatprep.subr.bf16.mxu1 %v8072_v8  ;;  %v7743_v13 = vld [vmem:[%s9817_s21] sm:$0x7] }
 0xe7f   : > { %v3615_v12 = vrot.slane %v7742_v17, %v9072_v58  ;;  %v3620_v21 = vrot.slane %v7743_v13, %v9072_v58 }
 0xe80   : > { %v3460_v28 = vrot.slane %v3453_v22, %v8600_v44  ;;  %v3468_v29 = vrot.slane %v6971_v23, %v8600_v44  ;;  %v3476_v30 = vrot.slane %v3469_v24, %v8600_v44  ;;  %v3484_v31 = vrot.slane %v6972_v25, %v8600_v44  ;;  %v7647_v25 = vld [vmem:[%s9821_s19 + $0x18] sm:$0xff]  }
 0xe82   : > { %v3486_v9 = vcombine.high %v3460_v28, %v3468_v29  ;;  %v3502_v36 = vcombine.high %v3476_v30, %v3484_v31  ;;  %v3485_v10 = vcombine.low %v3460_v28, %v3468_v29  ;;  %v3501_v37 = vcombine.low %v3476_v30, %v3484_v31 }
 0xe84   : > { %v3500_v41 = vrot.slane %v3486_v9, %v8603_v50  ;;  %v3516_v42 = vrot.slane %v3502_v36, %v8603_v50  ;;  %v3493_v38 = vrot.slane %v3485_v10, %v8603_v50  ;;  %v3509_v39 = vrot.slane %v3501_v37, %v8603_v50 }
 0xe86   : > { %v3519_v63 = vcombine.low %v3500_v41, %v3516_v42  ;;  %v3518_v16 = vcombine.high %v3493_v38, %v3509_v39  ;;  %v3520_v43 = vcombine.high %v3500_v41, %v3516_v42  ;;  %v3517_v45 = vcombine.low %v3493_v38, %v3509_v39  ;;  %v6986_v41 = vld [vmem:[%s9823_s29] ss:$0 sm:$0xff]  ;;  %s9825_s29 = smov 16  }
 0xe88   : > { %3526 = vrot.lane.b32.xlu1 %v3519_v63, %s9750_s15  ;;  %3522 = vrot.lane.b32.xlu0 %v3518_v16, %s9748_s17  ;;  %s9822_s17 = sld [smem:[#allocation41_spill]]  ;;  %s9829_s15 = smov 96  }
 0xe8c   : > { %3530 = vrot.lane.b32.xlu1 %v3520_v43, %s9746_s22  ;;  %s9826_s22 = smov 8  }
 0xe8e   : > { %v6977_v28 = vld [vmem:[%s9822_s17] ss:$0 sm:$0xff] }
 0xefa   : > { %v3527_v0 = vpop.permute.xlu1 %3526  ;;  %v3523_v46 = vpop.permute.xlu0 %3522 }
 0xefb   : > { %v3533_v48 = vsel %vm1432_vm2, %v3517_v45, %v3523_v46 }
 0xefc   : > { %v3534_v55 = vsel %vm1999_vm4, %v3533_v48, %v3527_v0 }
 0xefe   : > { %v3531_v49 = vpop.permute.xlu1 %3530 }
 0xeff   : > { %v3535_v53 = vsel %vm2001_vm5, %v3534_v55, %v3531_v49  ;;  %v7648_v55 = vld [vmem:[%s9815_s20 + $0x10] sm:$0xff]  }
 0xf00   : > { %v3536_v1 = vpack.c.bf16 %v3535_v53, %v3535_v53  ;;  %v7649_v53 = vld [vmem:[%s9815_s20 + $0x18] sm:$0xff]  }
 0xf02   : > { %7330 = vmatmul.mubr.msk.bf16.vlgmr.msra.gmra.mrb[36].mxu0 %vm873_vm0, %v3536_v1 }
 0xf03   : > { %7349 = vmatprep.mubr.msk.bf16.mxu0 %vm8073_vm1, %v8072_v8 }
 0xfd5   : > { %v3592_v18 = vpop.f32.mrb[36].mxu0 }
 0xfd6   : > { %v3593_v56 = vadd.f32 %v6973_v54, %v3592_v18  ;;  %v7331_v51 = vpop.f32.mrb[37].mxu0 }
 0xfd7   : > { %v3595_v52 = vpop.f32.mrb[38].mxu0  ;;  %v9124_v51 = vld [vmem:[%s9817_s21 + $0x4] sm:$0x7] }
 0xfd8   : > { %v3598_v57 = vadd.f32 %v3593_v56, %v8767_v40  ;;  %v7332_v59 = vpop.f32.mrb[39].mxu0  ;;  %v7644_v40 = vld [vmem:[%s9821_s19] sm:$0xff]  }
 0xfd9   : > { %7342 = vmatpush3.bf16.msra.mxu0 %v7644_v40  ;;  %v9119_v56 = vld [vmem:[%s9816_s24 + $0x4] sm:$0x7] }
 0xfda   : > { %v3599_v62 = vsel %vm873_vm0, %v3598_v57, 0.0  ;;  %7343 = vmatprep.subr.bf16.mxu0 %v8072_v8  ;;  %v3796_v52 = vrot.slane %v9119_v56, %v8554_v15 }
 0xfdb   : > { %3600 = vadd.xlane.f32.xlu0 %v3599_v62  ;;  %v3801_v62 = vrot.slane %v9124_v51, %v8554_v15 }
 0xfdd   : > { %7344 = vmatpush3.bf16.msra.mxu0 %v7645_v11 }
 0xfde   : > { %7345 = vmatprep.subr.bf16.mxu0 %v8072_v8 }
 0xfe1   : > { %7346 = vmatpush3.bf16.msra.mxu0 %v7646_v14 }
 0xfe2   : > { %7347 = vmatprep.subr.bf16.mxu0 %v8072_v8 }
 0xfe5   : > { %7348 = vmatpush3.bf16.msra.mxu0 %v7647_v25 }
 0xfe6   : > { %7367 = vmatprep.subr.bf16.mxu0 %v8072_v8 }
0x1068   : > { %v3601_v2 = vpop.xlane.xlu0 %3600 }
0x1069   : > { %v3602_v32 = vmul.f32 0.03125, %v3601_v2 }
0x106b   : > { %v3603_v27 = vsub.f32 %v3598_v57, %v3602_v32 }
0x106d   : > { %v3604_v4 = vmul.f32 %v3603_v27, %v3603_v27 }
0x106f   : > { %v3605_v5 = vsel %vm873_vm0, %v3604_v4, 0.0  ;;  %v6993_v4 = vld [vmem:[#allocation8 + $0x1] ss:$0 sm:$0xff] }
0x1070   : > { %3606 = vadd.xlane.f32.xlu1 %v3605_v5 }
0x10fd   : > { %v3607_v33 = vpop.xlane.xlu1 %3606 }
0x10fe   : > { %v3608_v61 = vmul.f32 0.03125, %v3607_v33 }
0x1100   : > { %v3609_v34 = vadd.f32 1e-05, %v3608_v61 }
0x1102   : > { %7700 = vrsqrt.f32 %v3609_v34 }
0x110c   : > { %v7701_v19 = vpop.eup %7700 }
0x110d   : > { %v3611_v20 = vmul.f32 %v7701_v19, %v3603_v27 }
0x110f   : > { %v3616_v22 = vmul.f32 %v3615_v12, %v3611_v20 }
0x1111   : > { %v3621_v23 = vadd.f32 %v3620_v21, %v3616_v22 }
0x1113   : > { %v3622_v24 = vpack.c.bf16 %v3621_v23, %v3621_v23 }
0x1115   : > { %7338 = vmatmul.mubr.msk.bf16.vlgmr.msra.gmra.mrb[44].mxu1 %vm873_vm0, %v3622_v24 }
0x1116   : > { %7357 = vmatprep.mubr.msk.bf16.mxu1 %vm8073_vm1, %v8072_v8  ;;  %7354 = vmatpush3.bf16.msra.mxu1 %v7648_v55 }
0x1117   : > { %7355 = vmatprep.subr.bf16.mxu1 %v8072_v8 }
0x111a   : > { %7356 = vmatpush3.bf16.msra.mxu1 %v7649_v53 }
0x111b   : > { %7361 = vmatprep.subr.bf16.mxu1 %v8072_v8 }
0x11e8   : > { %v3683_v29 = vpop.f32.mrb[44].mxu1 }
0x11e9   : > { %v3684_v30 = vadd.f32 %v6977_v28, %v3683_v29  ;;  %v7339_v31 = vpop.f32.mrb[45].mxu1 }
0x11ea   : > { %v3686_v35 = vpop.f32.mrb[46].mxu1 }
0x11eb   : > { %v3689_v9 = vmax.f32 %v3684_v30, 0.0  ;;  %v7340_v36 = vpop.f32.mrb[47].mxu1 }
0x11ed   : > { %v3690_v10 = vpack.c.bf16 %v3689_v9, %v3689_v9 }
0x11ef   : > { %7350 = vmatmul.mubr.msk.bf16.vlgmr.msra.gmra.mrb[40].mxu0 %vm3723_vm6, %v3690_v10 }
0x11f0   : > { %7369 = vmatprep.mubr.msk.bf16.mxu0 %vm8073_vm1, %v8072_v8 }
0x12c2   : > { %v3761_v37 = vpop.f32.mrb[40].mxu0 }
0x12c3   : > { %v3767_v42 = vadd.f32 %v3761_v37, %v3598_v57  ;;  %v7351_v38 = vpop.f32.mrb[41].mxu0 }
0x12c4   : > { %v3764_v39 = vpop.f32.mrb[42].mxu0 }
0x12c5   : > { %v9102_v63 = vadd.f32 %v6986_v41, %v3767_v42  ;;  %v7352_v16 = vpop.f32.mrb[43].mxu0 }
0x12c7   : > { %v3780_v43 = vsel %vm873_vm0, %v9102_v63, 0.0 }
0x12c8   : > { %3781 = vadd.xlane.f32.xlu0 %v3780_v43 }
0x1355   : > { %v3782_v45 = vpop.xlane.xlu0 %3781 }
0x1356   : > { %v3783_v0 = vmul.f32 0.03125, %v3782_v45 }
0x1358   : > { %v3784_v46 = vsub.f32 %v9102_v63, %v3783_v0 }
0x135a   : > { %v3785_v48 = vmul.f32 %v3784_v46, %v3784_v46 }
0x135c   : > { %v3786_v49 = vsel %vm873_vm0, %v3785_v48, 0.0 }
0x135d   : > { %3787 = vadd.xlane.f32.xlu0 %v3786_v49 }
0x13ea   : > { %v3788_v1 = vpop.xlane.xlu0 %3787 }
0x13eb   : > { %v3789_v54 = vmul.f32 0.03125, %v3788_v1 }
0x13ed   : > { %v3790_v18 = vadd.f32 1e-05, %v3789_v54 }
0x13ef   : > { %7702 = vrsqrt.f32 %v3790_v18 }
0x13f9   : > { %v7703_v57 = vpop.eup %7702 }
0x13fa   : > { %v3792_v59 = vmul.f32 %v7703_v57, %v3784_v46 }
0x13fc   : > { %v3797_v2 = vmul.f32 %v3796_v52, %v3792_v59 }
0x13fe   : > { %v3802_v32 = vadd.f32 %v3801_v62, %v3797_v2 }
0x1400   : > { %v3803_v27 = vpack.c.bf16 %v3802_v32, %v3802_v32 }
0x1402   : > { %7358 = vmatmul.mubr.msk.bf16.vlgmr.msra.gmra.mrb[48].mxu1 %vm873_vm0, %v3803_v27 }
0x1403   : > { %7363 = vmatprep.mubr.msk.bf16.mxu1 %vm8073_vm1, %v8072_v8 }
0x14d5   : > { %v3866_v5 = vpop.f32.mrb[48].mxu1 }
0x14d6   : > { %v9133_v6 = vadd.f32 %v6993_v4, %v3866_v5  ;;  %v7359_v7 = vpop.f32.mrb[49].mxu1 }
0x14d7   : > { %v3869_v40 = vpop.f32.mrb[50].mxu1 }
0x14d8   : > { %4029 = vrot.lane.b32.xlu0 %v9133_v6, %s8076_s1  ;;  %4027 = vrot.lane.b32.xlu1 %v9133_v6, %s8075_s9  ;;  %v7360_v15 = vpop.f32.mrb[51].mxu1  ;;  %v3879_v61 = vmul.f32 0.35355338, %v9133_v6 }
0x14dc   : > { %4031 = vrot.lane.b32.xlu1 %v9133_v6, %s9754_s3 }
0x14e0   : > { %4033 = vrot.lane.b32.xlu1 %v9133_v6, %s9752_s25 }
0x154a   : > { %v9143_v11 = vpop.permute.xlu0 %4029  ;;  %v9145_v33 = vpop.permute.xlu1 %4027 }
0x154b   : > { %4037 = vrot.lane.b32.xlu1 %v9143_v11, %s9752_s25  ;;  %4035 = vrot.lane.b32.xlu0 %v9145_v33, %s9752_s25 }
0x154e   : > { %v9152_v34 = vpop.permute.xlu1 %4031 }
0x154f   : > { %4039 = vrot.lane.b32.xlu0 %v9152_v34, %s9752_s25  ;;  %3881 = vrot.lane.b32.xlu1 %v3879_v61, %s8075_s9  ;;  %s6712_s25 = scalar_lea.sflag [#allocation4], %s8501_s27 }
0x1552   : > { %v4034_v17 = vpop.permute.xlu1 %4033 }
0x1553   : > { %3884 = vrot.lane.b32.xlu0 %v3879_v61, %s8076_s1  ;;  %3887 = vrot.lane.b32.xlu1 %v3879_v61, %s9754_s3  ;;  %s9828_s3 = smov 104  }
0x15bd   : > { %v4036_v12 = vpop.permute.xlu0 %4035  ;;  %v4038_v19 = vpop.permute.xlu1 %4037 }
0x15be   : > { %v4045_v20 = vcombine.low %v4034_v17, %v4038_v19  ;;  %v4046_v13 = vcombine.high %v4034_v17, %v4038_v19 }
0x15c0   : > { %v4053_v14 = vrot.slane %v4045_v20, %v8600_v44  ;;  %v4060_v25 = vrot.slane %v4046_v13, %v8600_v44 }
0x15c1   : > { %v4040_v21 = vpop.permute.xlu0 %4039  ;;  %v3882_v22 = vpop.permute.xlu1 %3881 }
0x15c2   : > { %v4061_v23 = vcombine.low %v4036_v12, %v4040_v21  ;;  %v4062_v24 = vcombine.high %v4036_v12, %v4040_v21 }
0x15c4   : > { %v4069_v28 = vrot.slane %v4061_v23, %v8600_v44  ;;  %v4076_v29 = vrot.slane %v4062_v24, %v8600_v44 }
0x15c5   : > { %v3885_v30 = vpop.permute.xlu0 %3884  ;;  %v3888_v31 = vpop.permute.xlu1 %3887 }
0x15c6   : > { %v4077_v35 = vcombine.low %v4053_v14, %v4069_v28  ;;  %v4078_v9 = vcombine.high %v4053_v14, %v4069_v28  ;;  %v4093_v36 = vcombine.low %v4060_v25, %v4076_v29  ;;  %v4094_v10 = vcombine.high %v4060_v25, %v4076_v29 }
0x15c7   : > { %v3890_v37 = vcombine.low %v3879_v61, %v3885_v30  ;;  %v3891_v41 = vcombine.high %v3879_v61, %v3885_v30  ;;  %v3906_v42 = vcombine.low %v3882_v22, %v3888_v31  ;;  %v3907_v38 = vcombine.high %v3882_v22, %v3888_v31 }
0x15c8   : > { %v4085_v39 = vrot.slane %v4077_v35, %v8603_v50  ;;  %v4092_v16 = vrot.slane %v4078_v9, %v8603_v50  ;;  %v4101_v43 = vrot.slane %v4093_v36, %v8603_v50  ;;  %v4108_v45 = vrot.slane %v4094_v10, %v8603_v50 }
0x15c9   : > { %v3898_v0 = vrot.slane %v3890_v37, %v8600_v44  ;;  %v3905_v46 = vrot.slane %v3891_v41, %v8600_v44  ;;  %v3914_v48 = vrot.slane %v3906_v42, %v8600_v44  ;;  %v3921_v49 = vrot.slane %v3907_v38, %v8600_v44 }
0x15ca   : > { %v4113_v55 = vcombine.low %v4085_v39, %v4092_v16  ;;  %v7003_v53 = vcombine.high %v4085_v39, %v4092_v16  ;;  %v4129_v1 = vcombine.low %v4101_v43, %v4108_v45  ;;  %v7004_v54 = vcombine.high %v4101_v43, %v4108_v45 }
0x15cb   : > { %v3922_v18 = vcombine.low %v3898_v0, %v3914_v48  ;;  %v3923_v52 = vcombine.high %v3898_v0, %v3914_v48  ;;  %v3938_v57 = vcombine.low %v3905_v46, %v3921_v49  ;;  %v3939_v59 = vcombine.high %v3905_v46, %v3921_v49 }
0x15cc   : > { %v4120_v62 = vrot.slane %v4113_v55, %v8600_v44  ;;  %v4128_v2 = vrot.slane %v7003_v53, %v8600_v44  ;;  %v4136_v32 = vrot.slane %v4129_v1, %v8600_v44  ;;  %v4144_v27 = vrot.slane %v7004_v54, %v8600_v44 }
0x15cd   : > { %v3930_v4 = vrot.slane %v3922_v18, %v8603_v50  ;;  %v3937_v5 = vrot.slane %v3923_v52, %v8603_v50  ;;  %v3946_v7 = vrot.slane %v3938_v57, %v8603_v50  ;;  %v3953_v40 = vrot.slane %v3939_v59, %v8603_v50 }
0x15ce   : > { %v4145_v15 = vcombine.low %v4120_v62, %v4128_v2  ;;  %v4161_v61 = vcombine.low %v4136_v32, %v4144_v27  ;;  %v4146_v17 = vcombine.high %v4120_v62, %v4128_v2  ;;  %v4162_v12 = vcombine.high %v4136_v32, %v4144_v27 }
0x15cf   : > { %v3958_v19 = vcombine.low %v3930_v4, %v3937_v5  ;;  %v7001_v20 = vcombine.high %v3930_v4, %v3937_v5  ;;  %v3974_v13 = vcombine.low %v3946_v7, %v3953_v40  ;;  %v7002_v21 = vcombine.high %v3946_v7, %v3953_v40 }
0x15d0   : > { %v4153_v22 = vrot.slane %v4145_v15, %v8603_v50  ;;  %v4169_v23 = vrot.slane %v4161_v61, %v8603_v50  ;;  %v4160_v31 = vrot.slane %v4146_v17, %v8603_v50  ;;  %v4176_v35 = vrot.slane %v4162_v12, %v8603_v50 }
0x15d1   : > { %v3965_v24 = vrot.slane %v3958_v19, %v8600_v44  ;;  %v3973_v14 = vrot.slane %v7001_v20, %v8600_v44  ;;  %v3981_v25 = vrot.slane %v3974_v13, %v8600_v44  ;;  %v3989_v28 = vrot.slane %v7002_v21, %v8600_v44 }
0x15d2   : > { %v4177_v29 = vcombine.low %v4153_v22, %v4169_v23  ;;  %v4178_v30 = vcombine.high %v4153_v22, %v4169_v23  ;;  %v4179_v16 = vcombine.low %v4160_v31, %v4176_v35  ;;  %v4180_v43 = vcombine.high %v4160_v31, %v4176_v35 }
0x15d3   : > { %v3990_v9 = vcombine.low %v3965_v24, %v3973_v14  ;;  %v4006_v36 = vcombine.low %v3981_v25, %v3989_v28  ;;  %v3991_v45 = vcombine.high %v3965_v24, %v3973_v14  ;;  %v4007_v0 = vcombine.high %v3981_v25, %v3989_v28 }
0x15d4   : > { %v4333_v10 = vpack.c.bf16 %v4177_v29, %v4177_v29  ;;  %v4334_v37 = vpack.c.bf16 %v4178_v30, %v4178_v30  ;;  %v4335_v49 = vpack.c.bf16 %v4179_v16, %v4179_v16  ;;  %v4336_v55 = vpack.c.bf16 %v4180_v43, %v4180_v43 }
0x15d5   : > { %v3998_v41 = vrot.slane %v3990_v9, %v8603_v50  ;;  %v4014_v42 = vrot.slane %v4006_v36, %v8603_v50  ;;  %v4005_v54 = vrot.slane %v3991_v45, %v8603_v50  ;;  %v4021_v18 = vrot.slane %v4007_v0, %v8603_v50 }
0x15d6   : > { %v4345_v38 = vsel %vm1432_vm2, %v4333_v10, 0  ;;  %v4391_v39 = vsel %vm1432_vm2, %v4334_v37, 0  ;;  %v4437_v52 = vsel %vm1432_vm2, %v4335_v49, 0  ;;  %v4483_v57 = vsel %vm1432_vm2, %v4336_v55, 0 }
0x15d7   : > { %7362 = vmatpush3.bf16.xpose.msra.mxu1 %v4345_v38  ;;  %7368 = vmatpush3.bf16.xpose.msra.mxu0 %v4391_v39  ;;  %v4022_v46 = vcombine.low %v3998_v41, %v4014_v42  ;;  %v4023_v48 = vcombine.high %v3998_v41, %v4014_v42  ;;  %v4024_v59 = vcombine.low %v4005_v54, %v4021_v18 }
0x15d8   : > { %7373 = vmatprep.subr.bf16.mxu1 %v8072_v8  ;;  %7379 = vmatprep.subr.bf16.mxu0 %v8072_v8  ;;  %v4025_v62 = vcombine.high %v4005_v54, %v4021_v18 }
0x15d9   : > { %v4329_v53 = vpack.c.bf16 %v4022_v46, %v4022_v46  ;;  %v4330_v1 = vpack.c.bf16 %v4023_v48, %v4023_v48  ;;  %v4331_v2 = vpack.c.bf16 %v4024_v59, %v4024_v59 }
0x15da   : > { %v4332_v32 = vpack.c.bf16 %v4025_v62, %v4025_v62 }
0x15de   : > { %7364 = vmatmul.mubr.msk.bf16.vlgmr.msra.gmra.mrb[52].mxu1 %vm1432_vm2, %v4329_v53  ;;  %7370 = vmatmul.mubr.msk.bf16.vlgmr.msra.gmra.mrb[44].mxu0 %vm1432_vm2, %v4330_v1 }
0x15df   : > { %7374 = vmatpush3.bf16.xpose.msra.mxu1 %v4437_v52  ;;  %7380 = vmatpush3.bf16.xpose.msra.mxu0 %v4483_v57 }
0x15e0   : > { %7375 = vmatprep.mubr.msk.bf16.mxu1 %vm8073_vm1, %v8072_v8  ;;  %7381 = vmatprep.mubr.msk.bf16.mxu0 %vm8073_vm1, %v8072_v8 }
0x15e1   : > { %7385 = vmatprep.subr.bf16.mxu1 %v8072_v8  ;;  %7391 = vmatprep.subr.bf16.mxu0 %v8072_v8 }
0x15e6   : > { %7376 = vmatmul.mubr.msk.bf16.vlgmr.msra.gmra.mrb[56].mxu1 %vm1432_vm2, %v4331_v2  ;;  %7382 = vmatmul.mubr.msk.bf16.vlgmr.msra.gmra.mrb[48].mxu0 %vm1432_vm2, %v4332_v32 }
0x15e7   : > { %7387 = vmatprep.mubr.msk.bf16.mxu1 %vm8073_vm1, %v8072_v8  ;;  %7393 = vmatprep.mubr.msk.bf16.mxu0 %vm8073_vm1, %v8072_v8 }
0x16b1   : > { %v4381_v27 = vpop.f32.mrb[52].mxu1  ;;  %v4427_v4 = vpop.f32.mrb[44].mxu0 }
0x16b2   : > { %v4382_v5 = vadd.f32 %v4381_v27, %v8659_v26  ;;  %v4428_v7 = vadd.f32 %v4427_v4, %v8659_v26  ;;  %v7365_v40 = vpop.f32.mrb[53].mxu1  ;;  %v7371_v15 = vpop.f32.mrb[45].mxu0 }
0x16b3   : > { %v4384_v61 = vpop.f32.mrb[54].mxu1  ;;  %v4430_v17 = vpop.f32.mrb[46].mxu0 }
0x16b4   : > { %v7366_v12 = vpop.f32.mrb[55].mxu1  ;;  %v7372_v19 = vpop.f32.mrb[47].mxu0  ;;  %v4528_v20 = vsel %vm1432_vm2, %v4428_v7, -inf  ;;  %v4525_v13 = vsel %vm1432_vm2, %v4382_v5, -inf }
0x16b5   : > { %4529 = vmax.xlane.f32.xlu1 %v4528_v20  ;;  %4526 = vmax.xlane.f32.xlu0 %v4525_v13 }
0x16b9   : > { %v4473_v21 = vpop.f32.mrb[56].mxu1  ;;  %v4519_v22 = vpop.f32.mrb[48].mxu0 }
0x16ba   : > { %v4474_v23 = vadd.f32 %v4473_v21, %v8659_v26  ;;  %v7377_v24 = vpop.f32.mrb[57].mxu1  ;;  %v7383_v14 = vpop.f32.mrb[49].mxu0  ;;  %v4520_v29 = vadd.f32 %v4519_v22, %v8659_v26 }
0x16bb   : > { %v4476_v25 = vpop.f32.mrb[58].mxu1  ;;  %v4522_v28 = vpop.f32.mrb[50].mxu0 }
0x16bc   : > { %v7378_v30 = vpop.f32.mrb[59].mxu1  ;;  %v7384_v31 = vpop.f32.mrb[51].mxu0  ;;  %v4531_v35 = vsel %vm1432_vm2, %v4474_v23, -inf  ;;  %v4534_v9 = vsel %vm1432_vm2, %v4520_v29, -inf }
0x16bd   : > { %4532 = vmax.xlane.f32.xlu0 %v4531_v35 }
0x16c1   : > { %4535 = vmax.xlane.f32.xlu0 %v4534_v9 }
0x16c6   : > { %4181 = vrot.lane.b32.xlu1 %v9133_v6, %s8080_s26 }
0x1742   : > { %v4530_v36 = vpop.xlane.xlu1 %4529  ;;  %v4527_v10 = vpop.xlane.xlu0 %4526 }
0x1743   : > { %v4538_v37 = vsub.f32 %v4428_v7, %v4530_v36  ;;  %v4537_v41 = vsub.f32 %v4382_v5, %v4527_v10 }
0x1745   : > { %v4543_v42 = vmul.f32 1.442695, %v4538_v37  ;;  %v4541_v38 = vmul.f32 1.442695, %v4537_v41 }
0x1747   : > { %7704 = vpow2.f32 %v4543_v42 }
0x1748   : > { %7706 = vpow2.f32 %v4541_v38 }
0x174a   : > { %v4533_v6 = vpop.xlane.xlu0 %4532 }
0x174b   : > { %v4539_v45 = vsub.f32 %v4474_v23, %v4533_v6 }
0x174d   : > { %v4545_v46 = vmul.f32 1.442695, %v4539_v45 }
0x174e   : > { %v4536_v0 = vpop.xlane.xlu0 %4535 }
0x174f   : > { %v4540_v48 = vsub.f32 %v4520_v29, %v4536_v0  ;;  %7708 = vpow2.f32 %v4545_v46 }
0x1751   : > { %v9221_v26 = vpop.eup %7704  ;;  %v4547_v49 = vmul.f32 1.442695, %v4540_v48 }
0x1752   : > { %v9223_v39 = vpop.eup %7706  ;;  %v4552_v16 = vsel %vm1432_vm2, %v9221_v26, 0.0 }
0x1753   : > { %v4549_v43 = vsel %vm1432_vm2, %v9223_v39, 0.0  ;;  %4553 = vadd.xlane.f32.xlu0 %v4552_v16  ;;  %7710 = vpow2.f32 %v4547_v49 }
0x1754   : > { %4550 = vadd.xlane.f32.xlu1 %v4549_v43 }
0x1759   : > { %v9235_v55 = vpop.eup %7708 }
0x175a   : > { %v4555_v53 = vsel %vm1432_vm2, %v9235_v55, 0.0 }
0x1765   : > { %4185 = vrot.lane.b32.xlu1 %v9143_v11, %s8080_s26  ;;  %v9239_v11 = vpop.eup %7710 }
0x1769   : > { %4187 = vrot.lane.b32.xlu1 %v9152_v34, %s8080_s26  ;;  %4183 = vrot.lane.b32.xlu0 %v9145_v33, %s8080_s26  ;;  %v4558_v34 = vsel %vm1432_vm2, %v9239_v11, 0.0  ;;  %v4182_v33 = vpop.permute.xlu1 %4181 }
0x1788   : > { %4556 = vadd.xlane.f32.xlu0 %v4555_v53 }
0x178d   : > { %4559 = vadd.xlane.f32.xlu1 %v4558_v34 }
0x17e0   : > { %v4554_v54 = vpop.xlane.xlu0 %4553 }
0x17e1   : > { %v4551_v1 = vpop.xlane.xlu1 %4550  ;;  %7712 = vrcp.f32 %v4554_v54 }
0x17e2   : > { %7714 = vrcp.f32 %v4551_v1 }
0x17e4   : > { %v4184_v59 = vpop.permute.xlu0 %4183 }
0x17e5   : > { %v4186_v18 = vpop.permute.xlu1 %4185 }
0x17e6   : > { %v4193_v52 = vcombine.low %v4182_v33, %v4186_v18  ;;  %v4194_v57 = vcombine.high %v4182_v33, %v4186_v18 }
0x17e8   : > { %v4201_v27 = vrot.slane %v4193_v52, %v8600_v44  ;;  %v4208_v4 = vrot.slane %v4194_v57, %v8600_v44 }
0x17e9   : > { %v4188_v62 = vpop.permute.xlu1 %4187 }
0x17ea   : > { %v4209_v2 = vcombine.low %v4184_v59, %v4188_v62  ;;  %v4210_v32 = vcombine.high %v4184_v59, %v4188_v62 }
0x17eb   : > { %v7713_v36 = vpop.eup %7712 }
0x17ec   : > { %v4217_v5 = vrot.slane %v4209_v2, %v8600_v44  ;;  %v4224_v7 = vrot.slane %v4210_v32, %v8600_v44  ;;  %v7715_v38 = vpop.eup %7714  ;;  %v4566_v46 = vmul.f32 %v7713_v36, %v9221_v26 }
0x17ed   : > { %v4565_v0 = vmul.f32 %v7715_v38, %v9223_v39 }
0x17ee   : > { %v4225_v40 = vcombine.low %v4201_v27, %v4217_v5  ;;  %v4226_v15 = vcombine.high %v4201_v27, %v4217_v5  ;;  %v4241_v61 = vcombine.low %v4208_v4, %v4224_v7  ;;  %v4242_v17 = vcombine.high %v4208_v4, %v4224_v7 }
0x17ef   : > { %v4569_v54 = vpack.c.bf16 %v4565_v0, %v4565_v0  ;;  %v4570_v18 = vpack.c.bf16 %v4566_v46, %v4566_v46 }
0x17f0   : > { %v4233_v12 = vrot.slane %v4225_v40, %v8603_v50  ;;  %v4240_v19 = vrot.slane %v4226_v15, %v8603_v50  ;;  %v4249_v20 = vrot.slane %v4241_v61, %v8603_v50  ;;  %v4256_v13 = vrot.slane %v4242_v17, %v8603_v50 }
0x17f2   : > { %v4261_v21 = vcombine.low %v4233_v12, %v4240_v19  ;;  %v7005_v22 = vcombine.high %v4233_v12, %v4240_v19  ;;  %v4277_v23 = vcombine.low %v4249_v20, %v4256_v13  ;;  %v7006_v24 = vcombine.high %v4249_v20, %v4256_v13 }
0x17f4   : > { %v4268_v14 = vrot.slane %v4261_v21, %v8600_v44  ;;  %v4276_v25 = vrot.slane %v7005_v22, %v8600_v44  ;;  %v4284_v28 = vrot.slane %v4277_v23, %v8600_v44  ;;  %v4292_v29 = vrot.slane %v7006_v24, %v8600_v44 }
0x17f6   : > { %v4293_v30 = vcombine.low %v4268_v14, %v4276_v25  ;;  %v4309_v31 = vcombine.low %v4284_v28, %v4292_v29  ;;  %v4294_v35 = vcombine.high %v4268_v14, %v4276_v25  ;;  %v4310_v9 = vcombine.high %v4284_v28, %v4292_v29 }
0x17f8   : > { %v4301_v10 = vrot.slane %v4293_v30, %v8603_v50  ;;  %v4317_v37 = vrot.slane %v4309_v31, %v8603_v50  ;;  %v4308_v41 = vrot.slane %v4294_v35, %v8603_v50  ;;  %v4324_v42 = vrot.slane %v4310_v9, %v8603_v50 }
0x17fa   : > { %v4325_v16 = vcombine.low %v4301_v10, %v4317_v37  ;;  %v4326_v43 = vcombine.high %v4301_v10, %v4317_v37  ;;  %v4327_v6 = vcombine.low %v4308_v41, %v4324_v42  ;;  %v4328_v45 = vcombine.high %v4308_v41, %v4324_v42  ;;  %v7650_v42 = vld [vmem:[%s9818_s8 + $0x10] sm:$0xff]  }
0x17fc   : > { %v4337_v48 = vpack.c.bf16 %v4325_v16, %v4325_v16  ;;  %v4338_v49 = vpack.c.bf16 %v4326_v43, %v4326_v43  ;;  %v4339_v33 = vpack.c.bf16 %v4327_v6, %v4327_v6  ;;  %v4340_v1 = vpack.c.bf16 %v4328_v45, %v4328_v45 }
0x17fe   : > { %v4577_v53 = vsel %vm1668_vm3, %v4337_v48, 0  ;;  %v4623_v34 = vsel %vm1668_vm3, %v4338_v49, 0  ;;  %v4669_v26 = vsel %vm1668_vm3, %v4339_v33, 0  ;;  %v4715_v39 = vsel %vm1668_vm3, %v4340_v1, 0  ;;  %v7651_v49 = vld [vmem:[%s9818_s8 + $0x18] sm:$0xff]  }
0x17ff   : > { %7386 = vmatpush3.bf16.msra.mxu1 %v4577_v53  ;;  %7392 = vmatpush3.bf16.msra.mxu0 %v4623_v34 }
0x1800   : > { %7397 = vmatprep.subr.bf16.mxu1 %v8072_v8  ;;  %7403 = vmatprep.subr.bf16.mxu0 %v8072_v8 }
0x1802   : > { %7388 = vmatmul.mubr.msk.bf16.vlgmr.msra.gmra.mrb[60].mxu1 %vm1432_vm2, %v4569_v54  ;;  %7394 = vmatmul.mubr.msk.bf16.vlgmr.msra.gmra.mrb[52].mxu0 %vm1432_vm2, %v4570_v18 }
0x1803   : > { %7398 = vmatpush3.bf16.msra.mxu1 %v4669_v26  ;;  %7404 = vmatpush3.bf16.msra.mxu0 %v4715_v39 }
0x1804   : > { %7399 = vmatprep.mubr.msk.bf16.mxu1 %vm8073_vm1, %v8072_v8  ;;  %7405 = vmatprep.mubr.msk.bf16.mxu0 %vm8073_vm1, %v8072_v8 }
0x1805   : > { %7409 = vmatprep.subr.bf16.mxu1 %v8072_v8  ;;  %7417 = vmatprep.subr.bf16.mxu0 %v8072_v8 }
0x1815   : > { %v4557_v52 = vpop.xlane.xlu0 %4556 }
0x1816   : > { %7716 = vrcp.f32 %v4557_v52 }
0x181a   : > { %v4560_v57 = vpop.xlane.xlu1 %4559 }
0x181b   : > { %7718 = vrcp.f32 %v4560_v57 }
0x1820   : > { %v7717_v59 = vpop.eup %7716 }
0x1821   : > { %v4567_v62 = vmul.f32 %v7717_v59, %v9235_v55 }
0x1823   : > { %v4571_v2 = vpack.c.bf16 %v4567_v62, %v4567_v62 }
0x1825   : > { %v7719_v32 = vpop.eup %7718  ;;  %7400 = vmatmul.mubr.msk.bf16.vlgmr.msra.gmra.mrb[64].mxu1 %vm1432_vm2, %v4571_v2 }
0x1826   : > { %v4568_v27 = vmul.f32 %v7719_v32, %v9239_v11  ;;  %7413 = vmatprep.mubr.msk.bf16.mxu1 %vm8073_vm1, %v8072_v8  ;;  %7410 = vmatpush3.bf16.msra.mxu1 %v7650_v42 }
0x1827   : > { %7411 = vmatprep.subr.bf16.mxu1 %v8072_v8 }
0x1828   : > { %v4572_v4 = vpack.c.bf16 %v4568_v27, %v4568_v27 }
0x182a   : > { %7406 = vmatmul.mubr.msk.bf16.vlgmr.msra.gmra.mrb[56].mxu0 %vm1432_vm2, %v4572_v4  ;;  %7412 = vmatpush3.bf16.msra.mxu1 %v7651_v49 }
0x182b   : > { %7421 = vmatprep.mubr.msk.bf16.mxu0 %vm8073_vm1, %v8072_v8  ;;  %7425 = vmatprep.subr.bf16.mxu1 %v8072_v8 }
0x18d5   : > { %v4613_v5 = vpop.f32.mrb[60].mxu1  ;;  %v4659_v7 = vpop.f32.mrb[52].mxu0 }
0x18d6   : > { %v7389_v40 = vpop.f32.mrb[61].mxu1  ;;  %v7395_v15 = vpop.f32.mrb[53].mxu0 }
0x18d7   : > { %v4616_v55 = vpop.f32.mrb[62].mxu1  ;;  %v4662_v61 = vpop.f32.mrb[54].mxu0 }
0x18d8   : > { %v7390_v17 = vpop.f32.mrb[63].mxu1  ;;  %v7396_v12 = vpop.f32.mrb[55].mxu0 }
0x18d9   : > { %v7017_v12 = vld [vmem:[#allocation10 + $0x1] ss:$0 sm:$0xff] }
0x18f8   : > { %v4705_v19 = vpop.f32.mrb[64].mxu1 }
0x18f9   : > { %v4757_v20 = vcombine.low %v4613_v5, %v4705_v19  ;;  %v4758_v11 = vcombine.high %v4613_v5, %v4705_v19  ;;  %v7401_v13 = vpop.f32.mrb[65].mxu1 }
0x18fa   : > { %v4708_v21 = vpop.f32.mrb[66].mxu1 }
0x18fb   : > { %v7402_v22 = vpop.f32.mrb[67].mxu1  ;;  %v4765_v29 = vrot.slane %v4757_v20, %v8600_v44  ;;  %v4772_v30 = vrot.slane %v4758_v11, %v8600_v44 }
0x18fd   : > { %v4751_v23 = vpop.f32.mrb[56].mxu0 }
0x18fe   : > { %v4773_v24 = vcombine.low %v4659_v7, %v4751_v23  ;;  %v4774_v14 = vcombine.high %v4659_v7, %v4751_v23  ;;  %v7407_v25 = vpop.f32.mrb[57].mxu0 }
0x18ff   : > { %v4754_v28 = vpop.f32.mrb[58].mxu0 }
0x1900   : > { %v4781_v31 = vrot.slane %v4773_v24, %v8600_v44  ;;  %v4788_v35 = vrot.slane %v4774_v14, %v8600_v44  ;;  %v7408_v9 = vpop.f32.mrb[59].mxu0  ;;  %v7652_v24 = vld [vmem:[#allocation11 + $0x10] sm:$0xff]   ;;  %v7653_v14 = vld [vmem:[#allocation11 + $0x18] sm:$0xff]  }
0x1902   : > { %v4789_v36 = vcombine.low %v4765_v29, %v4781_v31  ;;  %v4790_v10 = vcombine.high %v4765_v29, %v4781_v31  ;;  %v4805_v37 = vcombine.low %v4772_v30, %v4788_v35  ;;  %v4806_v41 = vcombine.high %v4772_v30, %v4788_v35  ;;  %v7654_v31 = vld [vmem:[%s9696_s10 + $0x10] sm:$0xff]   ;;  %v7031_v35 = vld [vmem:[%s9699_s13 + $0x1] ss:$0 sm:$0xff] }
0x1903   : > { %7418 = vmatpush3.bf16.msra.mxu0 %v7654_v31 }
0x1904   : > { %v4797_v38 = vrot.slane %v4789_v36, %v8603_v50  ;;  %v4804_v16 = vrot.slane %v4790_v10, %v8603_v50  ;;  %v4813_v43 = vrot.slane %v4805_v37, %v8603_v50  ;;  %v4820_v6 = vrot.slane %v4806_v41, %v8603_v50  ;;  %7419 = vmatprep.subr.bf16.mxu0 %v8072_v8 }
0x1906   : > { %v4825_v45 = vcombine.low %v4797_v38, %v4804_v16  ;;  %v7015_v0 = vcombine.high %v4797_v38, %v4804_v16  ;;  %v4841_v46 = vcombine.low %v4813_v43, %v4820_v6  ;;  %v7016_v48 = vcombine.high %v4813_v43, %v4820_v6 }
0x1907   : > { %v4987_v6 = vrot.slane %v9119_v56, %v8814_v3 }
0x1908   : > { %v4832_v53 = vrot.slane %v4825_v45, %v8600_v44  ;;  %v4840_v34 = vrot.slane %v7015_v0, %v8600_v44  ;;  %v4848_v33 = vrot.slane %v4841_v46, %v8600_v44  ;;  %v4856_v1 = vrot.slane %v7016_v48, %v8600_v44 }
0x1909   : > { %v4992_v46 = vrot.slane %v9124_v51, %v8814_v3 }
0x190a   : > { %v4858_v54 = vcombine.high %v4832_v53, %v4840_v34  ;;  %v4874_v18 = vcombine.high %v4848_v33, %v4856_v1  ;;  %v4857_v26 = vcombine.low %v4832_v53, %v4840_v34  ;;  %v4873_v39 = vcombine.low %v4848_v33, %v4856_v1 }
0x190c   : > { %v4872_v52 = vrot.slane %v4858_v54, %v8603_v50  ;;  %v4888_v57 = vrot.slane %v4874_v18, %v8603_v50  ;;  %v4865_v59 = vrot.slane %v4857_v26, %v8603_v50  ;;  %v4881_v62 = vrot.slane %v4873_v39, %v8603_v50 }
0x190e   : > { %v4891_v2 = vcombine.low %v4872_v52, %v4888_v57  ;;  %v4890_v32 = vcombine.high %v4865_v59, %v4881_v62  ;;  %v4892_v27 = vcombine.high %v4872_v52, %v4888_v57  ;;  %v4889_v4 = vcombine.low %v4865_v59, %v4881_v62 }
0x1910   : > { %4898 = vrot.lane.b32.xlu1 %v4891_v2, %s9825_s29  ;;  %4894 = vrot.lane.b32.xlu0 %v4890_v32, %s9826_s22 }
0x1914   : > { %4902 = vrot.lane.b32.xlu0 %v4892_v27, %s9827_s6 }
0x1982   : > { %v4895_v5 = vpop.permute.xlu0 %4894  ;;  %v4899_v7 = vpop.permute.xlu1 %4898 }
0x1983   : > { %v4905_v40 = vsel %vm1432_vm2, %v4889_v4, %v4895_v5 }
0x1984   : > { %v4906_v55 = vsel %vm1999_vm4, %v4905_v40, %v4899_v7 }
0x1986   : > { %v4903_v15 = vpop.permute.xlu0 %4902 }
0x1987   : > { %v4907_v61 = vsel %vm2001_vm5, %v4906_v55, %v4903_v15 }
0x1988   : > { %v4908_v17 = vpack.c.bf16 %v4907_v61, %v4907_v61 }
0x198a   : > { %7414 = vmatmul.mubr.msk.bf16.vlgmr.msra.gmra.mrb[68].mxu1 %vm873_vm0, %v4908_v17 }
0x198b   : > { %7429 = vmatprep.mubr.msk.bf16.mxu1 %vm8073_vm1, %v8072_v8  ;;  %7426 = vmatpush3.bf16.msra.mxu1 %v7652_v24 }
0x198c   : > { %7427 = vmatprep.subr.bf16.mxu1 %v8072_v8 }
0x198f   : > { %7428 = vmatpush3.bf16.msra.mxu1 %v7653_v14 }
0x1990   : > { %7439 = vmatprep.subr.bf16.mxu1 %v8072_v8 }
0x1992   : > { %7430 = vmatmul.mubr.msk.bf16.vlgmr.msra.gmra.mrb[72].mxu1 %vm873_vm0, %v8777_v47  ;;  %v7655_v47 = vld [vmem:[%s9696_s10 + $0x18] sm:$0xff]  }
0x1993   : > { %7441 = vmatprep.mubr.msk.bf16.mxu1 %vm8073_vm1, %v8072_v8  ;;  %7420 = vmatpush3.bf16.msra.mxu0 %v7655_v47 }
0x1994   : > { %7433 = vmatprep.subr.bf16.mxu0 %v8072_v8 }
0x1a5d   : > { %v4964_v19 = vpop.f32.mrb[68].mxu1 }
0x1a5e   : > { %v4965_v20 = vadd.f32 %v7017_v12, %v4964_v19  ;;  %v7415_v11 = vpop.f32.mrb[69].mxu1 }
0x1a5f   : > { %v4967_v13 = vpop.f32.mrb[70].mxu1 }
0x1a60   : > { %v9317_v21 = vadd.f32 %v4965_v20, %v9102_v63  ;;  %v7416_v22 = vpop.f32.mrb[71].mxu1 }
0x1a62   : > { %v4971_v23 = vsel %vm873_vm0, %v9317_v21, 0.0 }
0x1a63   : > { %4972 = vadd.xlane.f32.xlu1 %v4971_v23 }
0x1a65   : > { %v5122_v9 = vpop.f32.mrb[72].mxu1 }
0x1a66   : > { %v9340_v36 = vadd.f32 %v7031_v35, %v5122_v9  ;;  %v7431_v10 = vpop.f32.mrb[73].mxu1 }
0x1a67   : > { %v5125_v37 = vpop.f32.mrb[74].mxu1 }
0x1a68   : > { %v9342_v41 = vadd.f32 %v7031_v35, %v5125_v37  ;;  %v7432_v42 = vpop.f32.mrb[75].mxu1 }
0x1a74   : > { %5287 = vrot.lane.b32.xlu1 %v9342_v41, %s8075_s9 }
0x1a78   : > { %5291 = vrot.lane.b32.xlu1 %v9340_v36, %s8076_s1 }
0x1a7c   : > { %5297 = vrot.lane.b32.xlu1 %v9340_v36, %s9828_s3 }
0x1af0   : > { %v4973_v63 = vpop.xlane.xlu1 %4972 }
0x1af1   : > { %v4974_v25 = vmul.f32 0.03125, %v4973_v63 }
0x1af3   : > { %v4975_v28 = vsub.f32 %v9317_v21, %v4974_v25 }
0x1af4   : > { %v9363_v34 = vpop.permute.xlu1 %5287 }
0x1af5   : > { %v4976_v29 = vmul.f32 %v4975_v28, %v4975_v28 }
0x1af7   : > { %v4977_v30 = vsel %vm873_vm0, %v4976_v29, 0.0 }
0x1af8   : > { %4978 = vadd.xlane.f32.xlu0 %v4977_v30  ;;  %v9367_v1 = vpop.permute.xlu1 %5291 }
0x1af9   : > { %v5303_v3 = vcombine.low %v9340_v36, %v9367_v1  ;;  %v5304_v51 = vcombine.high %v9340_v36, %v9367_v1 }
0x1afb   : > { %v5311_v2 = vrot.slane %v5303_v3, %v8600_v44  ;;  %v5318_v32 = vrot.slane %v5304_v51, %v8600_v44 }
0x1afc   : > { %v9371_v54 = vpop.permute.xlu1 %5297 }
0x1b0e   : > { %5285 = vrot.lane.b32.xlu0 %v9340_v36, %s8075_s9 }
0x1b12   : > { %5293 = vrot.lane.b32.xlu0 %v9342_v41, %s8076_s1 }
0x1b16   : > { %5299 = vrot.lane.b32.xlu0 %v9342_v41, %s9828_s3 }
0x1b85   : > { %v4979_v38 = vpop.xlane.xlu0 %4978 }
0x1b86   : > { %v4980_v16 = vmul.f32 0.03125, %v4979_v38 }
0x1b88   : > { %v4981_v43 = vadd.f32 1e-05, %v4980_v16 }
0x1b89   : > { %v9365_v33 = vpop.permute.xlu0 %5285 }
0x1b8a   : > { %7720 = vrsqrt.f32 %v4981_v43  ;;  %v5319_v26 = vcombine.low %v9365_v33, %v9371_v54  ;;  %v5320_v39 = vcombine.high %v9365_v33, %v9371_v54 }
0x1b8c   : > { %v5327_v27 = vrot.slane %v5319_v26, %v8600_v44  ;;  %v5334_v4 = vrot.slane %v5320_v39, %v8600_v44 }
0x1b8d   : > { %v9369_v56 = vpop.permute.xlu0 %5293 }
0x1b8e   : > { %v5371_v52 = vcombine.low %v9342_v41, %v9369_v56  ;;  %v5372_v57 = vcombine.high %v9342_v41, %v9369_v56  ;;  %v5335_v55 = vcombine.low %v5311_v2, %v5327_v27  ;;  %v5336_v61 = vcombine.high %v5311_v2, %v5327_v27 }
0x1b8f   : > { %v5351_v17 = vcombine.low %v5318_v32, %v5334_v4  ;;  %v5352_v12 = vcombine.high %v5318_v32, %v5334_v4 }
0x1b90   : > { %v5379_v5 = vrot.slane %v5371_v52, %v8600_v44  ;;  %v5386_v7 = vrot.slane %v5372_v57, %v8600_v44  ;;  %v5343_v22 = vrot.slane %v5335_v55, %v8603_v50  ;;  %v5350_v23 = vrot.slane %v5336_v61, %v8603_v50 }
0x1b91   : > { %v9373_v18 = vpop.permute.xlu0 %5299  ;;  %v5359_v24 = vrot.slane %v5351_v17, %v8603_v50  ;;  %v5366_v14 = vrot.slane %v5352_v12, %v8603_v50 }
0x1b92   : > { %v5387_v59 = vcombine.low %v9363_v34, %v9373_v18  ;;  %v5388_v62 = vcombine.high %v9363_v34, %v9373_v18  ;;  %v5439_v30 = vcombine.low %v5343_v22, %v5350_v23  ;;  %v7038_v31 = vcombine.high %v5343_v22, %v5350_v23 }
0x1b93   : > { %v5455_v47 = vcombine.low %v5359_v24, %v5366_v14  ;;  %v7039_v35 = vcombine.high %v5359_v24, %v5366_v14 }
0x1b94   : > { %v7721_v45 = vpop.eup %7720  ;;  %v5395_v40 = vrot.slane %v5387_v59, %v8600_v44  ;;  %v5402_v15 = vrot.slane %v5388_v62, %v8600_v44  ;;  %v5446_v38 = vrot.slane %v5439_v30, %v8600_v44  ;;  %v5454_v16 = vrot.slane %v7038_v31, %v8600_v44 }
0x1b95   : > { %v4983_v0 = vmul.f32 %v7721_v45, %v4975_v28  ;;  %v5462_v43 = vrot.slane %v5455_v47, %v8600_v44 }
0x1b96   : > { %v5403_v19 = vcombine.low %v5379_v5, %v5395_v40  ;;  %v5404_v20 = vcombine.high %v5379_v5, %v5395_v40  ;;  %v5419_v11 = vcombine.low %v5386_v7, %v5402_v15  ;;  %v5420_v13 = vcombine.high %v5386_v7, %v5402_v15 }
0x1b97   : > { %v4988_v48 = vmul.f32 %v4987_v6, %v4983_v0  ;;  %v5470_v6 = vrot.slane %v7039_v35, %v8600_v44  ;;  %v5472_v3 = vcombine.high %v5446_v38, %v5454_v16 }
0x1b98   : > { %v5411_v63 = vrot.slane %v5403_v19, %v8603_v50  ;;  %v5418_v25 = vrot.slane %v5404_v20, %v8603_v50  ;;  %v5427_v28 = vrot.slane %v5419_v11, %v8603_v50  ;;  %v5434_v29 = vrot.slane %v5420_v13, %v8603_v50 }
0x1b99   : > { %v4993_v49 = vadd.f32 %v4992_v46, %v4988_v48  ;;  %v5488_v51 = vcombine.high %v5462_v43, %v5470_v6  ;;  %v5486_v2 = vrot.slane %v5472_v3, %v8603_v50 }
0x1b9a   : > { %v5507_v9 = vcombine.low %v5411_v63, %v5418_v25  ;;  %v7040_v10 = vcombine.high %v5411_v63, %v5418_v25  ;;  %v5523_v37 = vcombine.low %v5427_v28, %v5434_v29  ;;  %v7041_v42 = vcombine.high %v5427_v28, %v5434_v29  ;;  %v7026_v63 = vld [vmem:[%s9697_s11 + $0x1] ss:$0 sm:$0xff] }
0x1b9b   : > { %v4994_v53 = vpack.c.bf16 %v4993_v49, %v4993_v49  ;;  %v5471_v49 = vcombine.low %v5446_v38, %v5454_v16  ;;  %v5502_v32 = vrot.slane %v5488_v51, %v8603_v50 }
0x1b9c   : > { %v5514_v45 = vrot.slane %v5507_v9, %v8600_v44  ;;  %v5522_v0 = vrot.slane %v7040_v10, %v8600_v44  ;;  %v5530_v46 = vrot.slane %v5523_v37, %v8600_v44  ;;  %v5538_v48 = vrot.slane %v7041_v42, %v8600_v44 }
0x1b9d   : > { %7422 = vmatmul.mubr.msk.bf16.vlgmr.msra.gmra.mrb[60].mxu0 %vm873_vm0, %v4994_v53  ;;  %v5487_v53 = vcombine.low %v5462_v43, %v5470_v6  ;;  %v5479_v59 = vrot.slane %v5471_v49, %v8603_v50  ;;  %v5505_v55 = vcombine.low %v5486_v2, %v5502_v32  ;;  %v5506_v61 = vcombine.high %v5486_v2, %v5502_v32 }
0x1b9e   : > { %7435 = vmatprep.mubr.msk.bf16.mxu0 %vm8073_vm1, %v8072_v8  ;;  %v5539_v26 = vcombine.low %v5514_v45, %v5522_v0  ;;  %v5555_v39 = vcombine.low %v5530_v46, %v5538_v48  ;;  %v5540_v52 = vcombine.high %v5514_v45, %v5522_v0  ;;  %v5556_v57 = vcombine.high %v5530_v46, %v5538_v48 }
0x1b9f   : > { %v5495_v62 = vrot.slane %v5487_v53, %v8603_v50 }
0x1ba0   : > { %v5547_v27 = vrot.slane %v5539_v26, %v8603_v50  ;;  %v5563_v4 = vrot.slane %v5555_v39, %v8603_v50  ;;  %v5554_v5 = vrot.slane %v5540_v52, %v8603_v50  ;;  %v5570_v7 = vrot.slane %v5556_v57, %v8603_v50 }
0x1ba1   : > { %v5503_v40 = vcombine.low %v5479_v59, %v5495_v62  ;;  %v5504_v15 = vcombine.high %v5479_v59, %v5495_v62 }
0x1ba2   : > { %v5571_v17 = vcombine.low %v5547_v27, %v5563_v4  ;;  %v5572_v12 = vcombine.high %v5547_v27, %v5563_v4  ;;  %v5573_v19 = vcombine.low %v5554_v5, %v5570_v7  ;;  %v5574_v20 = vcombine.high %v5554_v5, %v5570_v7 }
0x1ba4   : > { %v5875_v11 = vpack.c.bf16 %v5571_v17, %v5503_v40  ;;  %v5876_v13 = vpack.c.bf16 %v5572_v12, %v5504_v15  ;;  %v9423_v22 = vpack.c.bf16 %v5573_v19, %v5505_v55  ;;  %v9425_v23 = vpack.c.bf16 %v5574_v20, %v5506_v61 }
0x1ba6   : > { %v5887_v24 = vsel %vm1432_vm2, %v5875_v11, 0  ;;  %v5933_v14 = vsel %vm1432_vm2, %v5876_v13, 0  ;;  %v5979_v19 = vsel %vm1432_vm2, %v9423_v22, 0  ;;  %v6025_v20 = vsel %vm1432_vm2, %v9425_v23, 0 }
0x1ba7   : > { %7434 = vmatpush3.bf16.xpose.msra.mxu0 %v5887_v24  ;;  %7440 = vmatpush3.bf16.xpose.msra.mxu1 %v5933_v14 }
0x1ba8   : > { %7445 = vmatprep.subr.bf16.mxu0 %v8072_v8  ;;  %7451 = vmatprep.subr.bf16.mxu1 %v8072_v8 }
0x1c70   : > { %v5057_v25 = vpop.f32.mrb[60].mxu0 }
0x1c71   : > { %v5058_v28 = vadd.f32 %v7026_v63, %v5057_v25  ;;  %v7423_v29 = vpop.f32.mrb[61].mxu0 }
0x1c72   : > { %v5060_v30 = vpop.f32.mrb[62].mxu0 }
0x1c73   : > { %v5136_v31 = vmul.f32 0.35355338, %v5058_v28  ;;  %v7424_v47 = vpop.f32.mrb[63].mxu0 }
0x1c75   : > { %5141 = vrot.lane.b32.xlu0 %v5136_v31, %s8076_s1  ;;  %5138 = vrot.lane.b32.xlu1 %v5136_v31, %s8075_s9 }
0x1c79   : > { %5577 = vrot.lane.b32.xlu0 %v9342_v41, %s9829_s15  ;;  %5144 = vrot.lane.b32.xlu1 %v5136_v31, %s9828_s3  ;;  %s9830_s3 = sld [smem:[#allocation27_spill]] }
0x1c7d   : > { %5575 = vrot.lane.b32.xlu1 %v9340_v36, %s9829_s15 }
0x1c7f   : > { %p9834_p6 = scmp.ne.s32.totalorder %s9830_s3, 0 }
0x1c81   : > { %5579 = vrot.lane.b32.xlu1 %v9365_v33, %s9829_s15 }
0x1c85   : > { %5581 = vrot.lane.b32.xlu1 %v9363_v34, %s9829_s15 }
0x1ce7   : > { %v5142_v35 = vpop.permute.xlu0 %5141  ;;  %v5139_v9 = vpop.permute.xlu1 %5138 }
0x1ce8   : > { %v5147_v10 = vcombine.low %v5136_v31, %v5142_v35  ;;  %v5148_v37 = vcombine.high %v5136_v31, %v5142_v35 }
0x1cea   : > { %v5155_v41 = vrot.slane %v5147_v10, %v8600_v44  ;;  %v5162_v43 = vrot.slane %v5148_v37, %v8600_v44 }
0x1ceb   : > { %v5145_v42 = vpop.permute.xlu1 %5144 }
0x1cec   : > { %v5163_v38 = vcombine.low %v5139_v9, %v5145_v42  ;;  %v5164_v16 = vcombine.high %v5139_v9, %v5145_v42 }
0x1cee   : > { %v5171_v6 = vrot.slane %v5163_v38, %v8600_v44  ;;  %v5178_v36 = vrot.slane %v5164_v16, %v8600_v44 }
0x1cf0   : > { %v5179_v45 = vcombine.low %v5155_v41, %v5171_v6  ;;  %v5180_v33 = vcombine.high %v5155_v41, %v5171_v6  ;;  %v5195_v0 = vcombine.low %v5162_v43, %v5178_v36  ;;  %v5196_v46 = vcombine.high %v5162_v43, %v5178_v36 }
0x1cf2   : > { %v5187_v34 = vrot.slane %v5179_v45, %v8603_v50  ;;  %v5194_v48 = vrot.slane %v5180_v33, %v8603_v50  ;;  %v5203_v49 = vrot.slane %v5195_v0, %v8603_v50  ;;  %v5210_v53 = vrot.slane %v5196_v46, %v8603_v50 }
0x1cf4   : > { %v5215_v3 = vcombine.low %v5187_v34, %v5194_v48  ;;  %v7036_v51 = vcombine.high %v5187_v34, %v5194_v48  ;;  %v5231_v26 = vcombine.low %v5203_v49, %v5210_v53  ;;  %v7037_v39 = vcombine.high %v5203_v49, %v5210_v53  ;;  %v5576_v34 = vpop.permute.xlu1 %5575  ;;  %v5578_v49 = vpop.permute.xlu0 %5577 }
0x1cf6   : > { %v5222_v52 = vrot.slane %v5215_v3, %v8600_v44  ;;  %v5230_v57 = vrot.slane %v7036_v51, %v8600_v44  ;;  %v5238_v59 = vrot.slane %v5231_v26, %v8600_v44  ;;  %v5246_v62 = vrot.slane %v7037_v39, %v8600_v44 }
0x1cf8   : > { %v5247_v2 = vcombine.low %v5222_v52, %v5230_v57  ;;  %v5263_v32 = vcombine.low %v5238_v59, %v5246_v62  ;;  %v5248_v27 = vcombine.high %v5222_v52, %v5230_v57  ;;  %v5264_v4 = vcombine.high %v5238_v59, %v5246_v62  ;;  %v5580_v48 = vpop.permute.xlu1 %5579 }
0x1cfa   : > { %v5255_v5 = vrot.slane %v5247_v2, %v8603_v50  ;;  %v5271_v7 = vrot.slane %v5263_v32, %v8603_v50  ;;  %v5262_v17 = vrot.slane %v5248_v27, %v8603_v50  ;;  %v5278_v12 = vrot.slane %v5264_v4, %v8603_v50 }
0x1cfc   : > { %v5279_v40 = vcombine.low %v5255_v5, %v5271_v7  ;;  %v5280_v15 = vcombine.high %v5255_v5, %v5271_v7  ;;  %v5281_v11 = vcombine.low %v5262_v17, %v5278_v12  ;;  %v5282_v13 = vcombine.high %v5262_v17, %v5278_v12  ;;  %v5582_v53 = vpop.permute.xlu1 %5581 }
0x1cfe   : > { %v5871_v55 = vpack.c.bf16 %v5279_v40, %v5279_v40  ;;  %v5872_v61 = vpack.c.bf16 %v5280_v15, %v5280_v15  ;;  %v5873_v24 = vpack.c.bf16 %v5281_v11, %v5281_v11  ;;  %v5874_v14 = vpack.c.bf16 %v5282_v13, %v5282_v13 }
0x1d00   : > { %7436 = vmatmul.mubr.msk.bf16.vlgmr.msra.gmra.mrb[64].mxu0 %vm1432_vm2, %v5871_v55  ;;  %7442 = vmatmul.mubr.msk.bf16.vlgmr.msra.gmra.mrb[76].mxu1 %vm1432_vm2, %v5872_v61 }
0x1d01   : > { %7446 = vmatpush3.bf16.xpose.msra.mxu0 %v5979_v19  ;;  %7452 = vmatpush3.bf16.xpose.msra.mxu1 %v6025_v20 }
0x1d02   : > { %7447 = vmatprep.mubr.msk.bf16.mxu0 %vm8073_vm1, %v8072_v8  ;;  %7453 = vmatprep.mubr.msk.bf16.mxu1 %vm8073_vm1, %v8072_v8 }
0x1d03   : > { %7457 = vmatprep.subr.bf16.mxu0 %v8072_v8  ;;  %7463 = vmatprep.subr.bf16.mxu1 %v8072_v8 }
0x1d08   : > { %7448 = vmatmul.mubr.msk.bf16.vlgmr.msra.gmra.mrb[68].mxu0 %vm1432_vm2, %v5873_v24  ;;  %7454 = vmatmul.mubr.msk.bf16.vlgmr.msra.gmra.mrb[80].mxu1 %vm1432_vm2, %v5874_v14 }
0x1d09   : > { %7459 = vmatprep.mubr.msk.bf16.mxu0 %vm8073_vm1, %v8072_v8  ;;  %7465 = vmatprep.mubr.msk.bf16.mxu1 %vm8073_vm1, %v8072_v8 }
0x1dd3   : > { %v5923_v22 = vpop.f32.mrb[64].mxu0  ;;  %v5969_v23 = vpop.f32.mrb[76].mxu1 }
0x1dd4   : > { %v5924_v63 = vadd.f32 %v5923_v22, %v8942_v60  ;;  %v5970_v25 = vadd.f32 %v5969_v23, %v8942_v60  ;;  %v7437_v28 = vpop.f32.mrb[65].mxu0  ;;  %v7443_v29 = vpop.f32.mrb[77].mxu1 }
0x1dd5   : > { %v5926_v30 = vpop.f32.mrb[66].mxu0  ;;  %v5972_v31 = vpop.f32.mrb[78].mxu1 }
0x1dd6   : > { %v7438_v47 = vpop.f32.mrb[67].mxu0  ;;  %v7444_v35 = vpop.f32.mrb[79].mxu1  ;;  %v6067_v9 = vsel %vm1999_vm4, %v5924_v63, -inf  ;;  %v6070_v10 = vsel %vm1999_vm4, %v5970_v25, -inf }
0x1dd7   : > { %6068 = vmax.xlane.f32.xlu0 %v6067_v9  ;;  %6071 = vmax.xlane.f32.xlu1 %v6070_v10 }
0x1ddb   : > { %v6015_v37 = vpop.f32.mrb[68].mxu0  ;;  %v6061_v42 = vpop.f32.mrb[80].mxu1 }
0x1ddc   : > { %v6016_v38 = vadd.f32 %v6015_v37, %v8942_v60  ;;  %v7449_v16 = vpop.f32.mrb[69].mxu0  ;;  %v7455_v41 = vpop.f32.mrb[81].mxu1  ;;  %v6062_v36 = vadd.f32 %v6061_v42, %v8942_v60 }
0x1ddd   : > { %v6018_v43 = vpop.f32.mrb[70].mxu0  ;;  %v6064_v6 = vpop.f32.mrb[82].mxu1 }
0x1dde   : > { %v7450_v45 = vpop.f32.mrb[71].mxu0  ;;  %v7456_v33 = vpop.f32.mrb[83].mxu1  ;;  %v6073_v0 = vsel %vm1999_vm4, %v6016_v38, -inf  ;;  %v6076_v46 = vsel %vm1999_vm4, %v6062_v36, -inf }
0x1ddf   : > { %6074 = vmax.xlane.f32.xlu0 %v6073_v0 }
0x1de3   : > { %6077 = vmax.xlane.f32.xlu0 %v6076_v46 }
0x1de8   : > { %5585 = vrot.lane.b32.xlu1 %v9369_v56, %s9829_s15 }
0x1df9   : > { %5583 = vrot.lane.b32.xlu0 %v9367_v1, %s9829_s15 }
0x1e64   : > { %v6069_v3 = vpop.xlane.xlu0 %6068  ;;  %v6072_v60 = vpop.xlane.xlu1 %6071 }
0x1e65   : > { %v6079_v51 = vsub.f32 %v5924_v63, %v6069_v3  ;;  %v6080_v26 = vsub.f32 %v5970_v25, %v6072_v60 }
0x1e67   : > { %v6083_v39 = vmul.f32 1.442695, %v6079_v51  ;;  %v6085_v52 = vmul.f32 1.442695, %v6080_v26 }
0x1e69   : > { %7722 = vpow2.f32 %v6083_v39 }
0x1e6a   : > { %7724 = vpow2.f32 %v6085_v52 }
0x1e6c   : > { %v6075_v62 = vpop.xlane.xlu0 %6074 }
0x1e6d   : > { %v6081_v27 = vsub.f32 %v6016_v38, %v6075_v62 }
0x1e6f   : > { %v6087_v5 = vmul.f32 1.442695, %v6081_v27 }
0x1e70   : > { %v6078_v2 = vpop.xlane.xlu0 %6077 }
0x1e71   : > { %v6082_v32 = vsub.f32 %v6062_v36, %v6078_v2 }
0x1e73   : > { %v9491_v57 = vpop.eup %7722  ;;  %v6089_v4 = vmul.f32 1.442695, %v6082_v32 }
0x1e74   : > { %v9493_v59 = vpop.eup %7724  ;;  %v6091_v56 = vsel %vm1999_vm4, %v9491_v57, 0.0  ;;  %v5584_v55 = vpop.permute.xlu0 %5583 }
0x1e75   : > { %6092 = vadd.xlane.f32.xlu1 %v6091_v56  ;;  %v6094_v1 = vsel %vm1999_vm4, %v9493_v59, 0.0  ;;  %7726 = vpow2.f32 %v6089_v4  ;;  %v5599_v20 = vcombine.low %v5576_v34, %v5584_v55  ;;  %v5600_v11 = vcombine.high %v5576_v34, %v5584_v55 }
0x1e76   : > { %6095 = vadd.xlane.f32.xlu0 %v6094_v1  ;;  %7728 = vpow2.f32 %v6087_v5 }
0x1e77   : > { %v5607_v31 = vrot.slane %v5599_v20, %v8600_v44  ;;  %v5614_v47 = vrot.slane %v5600_v11, %v8600_v44 }
0x1e7f   : > { %v9503_v7 = vpop.eup %7726 }
0x1e80   : > { %v9505_v40 = vpop.eup %7728  ;;  %v6100_v15 = vsel %vm1999_vm4, %v9503_v7, 0.0 }
0x1e86   : > { %5589 = vrot.lane.b32.xlu1 %v9373_v18, %s9829_s15  ;;  %v6097_v18 = vsel %vm1999_vm4, %v9505_v40, 0.0 }
0x1e8c   : > { %5587 = vrot.lane.b32.xlu0 %v9371_v54, %s9829_s15  ;;  %v5586_v54 = vpop.permute.xlu1 %5585  ;;  %s9831_s15 = sld [smem:[#allocation44_spill]] }
0x1e8d   : > { %v5667_v12 = vcombine.low %v5578_v49, %v5586_v54  ;;  %v5668_v19 = vcombine.high %v5578_v49, %v5586_v54 }
0x1e8f   : > { %v5675_v25 = vrot.slane %v5667_v12, %v8600_v44  ;;  %v5682_v28 = vrot.slane %v5668_v19, %v8600_v44 }
0x1eaa   : > { %6101 = vadd.xlane.f32.xlu1 %v6100_v15 }
0x1eab   : > { %6098 = vadd.xlane.f32.xlu0 %v6097_v18 }
0x1f02   : > { %v6093_v61 = vpop.xlane.xlu1 %6092 }
0x1f03   : > { %v6096_v17 = vpop.xlane.xlu0 %6095  ;;  %7730 = vrcp.f32 %v6093_v61 }
0x1f04   : > { %7732 = vrcp.f32 %v6096_v17 }
0x1f06   : > { %v5590_v13 = vpop.permute.xlu1 %5589 }
0x1f07   : > { %v5683_v24 = vcombine.low %v5582_v53, %v5590_v13  ;;  %v5684_v14 = vcombine.high %v5582_v53, %v5590_v13  ;;  %v5588_v22 = vpop.permute.xlu0 %5587 }
0x1f08   : > { %v5615_v23 = vcombine.low %v5580_v48, %v5588_v22  ;;  %v5616_v63 = vcombine.high %v5580_v48, %v5588_v22 }
0x1f09   : > { %v5691_v29 = vrot.slane %v5683_v24, %v8600_v44  ;;  %v5698_v30 = vrot.slane %v5684_v14, %v8600_v44 }
0x1f0a   : > { %v5623_v35 = vrot.slane %v5615_v23, %v8600_v44  ;;  %v5630_v9 = vrot.slane %v5616_v63, %v8600_v44 }
0x1f0b   : > { %v5699_v10 = vcombine.low %v5675_v25, %v5691_v29  ;;  %v5700_v37 = vcombine.high %v5675_v25, %v5691_v29  ;;  %v5715_v42 = vcombine.low %v5682_v28, %v5698_v30  ;;  %v5716_v38 = vcombine.high %v5682_v28, %v5698_v30 }
0x1f0c   : > { %v5631_v16 = vcombine.low %v5607_v31, %v5623_v35  ;;  %v5632_v41 = vcombine.high %v5607_v31, %v5623_v35  ;;  %v5647_v43 = vcombine.low %v5614_v47, %v5630_v9  ;;  %v5648_v6 = vcombine.high %v5614_v47, %v5630_v9 }
0x1f0d   : > { %v5707_v36 = vrot.slane %v5699_v10, %v8603_v50  ;;  %v5714_v45 = vrot.slane %v5700_v37, %v8603_v50  ;;  %v5723_v33 = vrot.slane %v5715_v42, %v8603_v50  ;;  %v5730_v0 = vrot.slane %v5716_v38, %v8603_v50  ;;  %v7731_v14 = vpop.eup %7730 }
0x1f0e   : > { %v5639_v46 = vrot.slane %v5631_v16, %v8603_v50  ;;  %v5646_v34 = vrot.slane %v5632_v41, %v8603_v50  ;;  %v5655_v48 = vrot.slane %v5647_v43, %v8603_v50  ;;  %v5662_v51 = vrot.slane %v5648_v6, %v8603_v50  ;;  %v7733_v25 = vpop.eup %7732 }
0x1f0f   : > { %v5803_v49 = vcombine.low %v5707_v36, %v5714_v45  ;;  %v7044_v53 = vcombine.high %v5707_v36, %v5714_v45  ;;  %v5819_v3 = vcombine.low %v5723_v33, %v5730_v0  ;;  %v7045_v60 = vcombine.high %v5723_v33, %v5730_v0 }
0x1f10   : > { %v5735_v26 = vcombine.low %v5639_v46, %v5646_v34  ;;  %v7042_v39 = vcombine.high %v5639_v46, %v5646_v34  ;;  %v5751_v27 = vcombine.low %v5655_v48, %v5662_v51  ;;  %v7043_v4 = vcombine.high %v5655_v48, %v5662_v51 }
0x1f11   : > { %v5810_v52 = vrot.slane %v5803_v49, %v8600_v44  ;;  %v5818_v56 = vrot.slane %v7044_v53, %v8600_v44  ;;  %v5826_v1 = vrot.slane %v5819_v3, %v8600_v44  ;;  %v5834_v62 = vrot.slane %v7045_v60, %v8600_v44 }
0x1f12   : > { %v5742_v2 = vrot.slane %v5735_v26, %v8600_v44  ;;  %v5750_v32 = vrot.slane %v7042_v39, %v8600_v44  ;;  %v5758_v18 = vrot.slane %v5751_v27, %v8600_v44  ;;  %v5766_v17 = vrot.slane %v7043_v4, %v8600_v44 }
0x1f13   : > { %v5835_v5 = vcombine.low %v5810_v52, %v5818_v56  ;;  %v5836_v15 = vcombine.high %v5810_v52, %v5818_v56  ;;  %v5851_v55 = vcombine.low %v5826_v1, %v5834_v62  ;;  %v5852_v19 = vcombine.high %v5826_v1, %v5834_v62 }
0x1f14   : > { %v5767_v54 = vcombine.low %v5742_v2, %v5750_v32  ;;  %v5768_v61 = vcombine.high %v5742_v2, %v5750_v32  ;;  %v5783_v13 = vcombine.low %v5758_v18, %v5766_v17  ;;  %v5784_v24 = vcombine.high %v5758_v18, %v5766_v17 }
0x1f15   : > { %v5843_v12 = vrot.slane %v5835_v5, %v8603_v50  ;;  %v5859_v20 = vrot.slane %v5851_v55, %v8603_v50  ;;  %v5850_v23 = vrot.slane %v5836_v15, %v8603_v50  ;;  %v5866_v63 = vrot.slane %v5852_v19, %v8603_v50 }
0x1f16   : > { %v5775_v11 = vrot.slane %v5767_v54, %v8603_v50  ;;  %v5782_v22 = vrot.slane %v5768_v61, %v8603_v50  ;;  %v5791_v28 = vrot.slane %v5783_v13, %v8603_v50  ;;  %v5798_v31 = vrot.slane %v5784_v24, %v8603_v50 }
0x1f17   : > { %v5867_v29 = vcombine.low %v5843_v12, %v5859_v20  ;;  %v5868_v30 = vcombine.high %v5843_v12, %v5859_v20  ;;  %v6107_v9 = vmul.f32 %v7731_v14, %v9491_v57  ;;  %v6108_v10 = vmul.f32 %v7733_v25, %v9493_v59  ;;  %v7656_v14 = vld [vmem:[#allocation13 + $0x10] sm:$0xff]  }
0x1f18   : > { %v5799_v47 = vcombine.low %v5775_v11, %v5791_v28  ;;  %v5800_v35 = vcombine.high %v5775_v11, %v5791_v28  ;;  %v5869_v37 = vcombine.low %v5850_v23, %v5866_v63  ;;  %v5870_v42 = vcombine.high %v5850_v23, %v5866_v63 }
0x1f19   : > { %v5801_v41 = vcombine.low %v5782_v22, %v5798_v31  ;;  %v5802_v43 = vcombine.high %v5782_v22, %v5798_v31  ;;  %v6111_v6 = vpack.c.bf16 %v6107_v9, %v6107_v9  ;;  %v6112_v36 = vpack.c.bf16 %v6108_v10, %v6108_v10 }
0x1f1a   : > { %v5879_v38 = vpack.c.bf16 %v5867_v29, %v5799_v47  ;;  %v5880_v16 = vpack.c.bf16 %v5868_v30, %v5800_v35 }
0x1f1b   : > { %v5881_v45 = vpack.c.bf16 %v5869_v37, %v5801_v41  ;;  %v5882_v33 = vpack.c.bf16 %v5870_v42, %v5802_v43  ;;  %v7657_v37 = vld [vmem:[#allocation13 + $0x18] sm:$0xff]  }
0x1f1c   : > { %7458 = vmatpush3.bf16.msra.mxu0 %v5879_v38  ;;  %7464 = vmatpush3.bf16.msra.mxu1 %v5880_v16 }
0x1f1d   : > { %7469 = vmatprep.subr.bf16.mxu0 %v8072_v8  ;;  %7475 = vmatprep.subr.bf16.mxu1 %v8072_v8 }
0x1f1f   : > { %7460 = vmatmul.mubr.msk.bf16.vlgmr.msra.gmra.mrb[72].mxu0 %vm1999_vm4, %v6111_v6  ;;  %7466 = vmatmul.mubr.msk.bf16.vlgmr.msra.gmra.mrb[84].mxu1 %vm1999_vm4, %v6112_v36 }
0x1f20   : > { %7470 = vmatpush3.bf16.msra.mxu0 %v5881_v45  ;;  %7476 = vmatpush3.bf16.msra.mxu1 %v5882_v33 }
0x1f21   : > { %7471 = vmatprep.mubr.msk.bf16.mxu0 %vm8073_vm1, %v8072_v8  ;;  %7477 = vmatprep.mubr.msk.bf16.mxu1 %vm8073_vm1, %v8072_v8 }
0x1f22   : > { %7481 = vmatprep.subr.bf16.mxu0 %v8072_v8  ;;  %7489 = vmatprep.subr.bf16.mxu1 %v8072_v8 }
0x1f37   : > { %v6102_v57 = vpop.xlane.xlu1 %6101 }
0x1f38   : > { %7734 = vrcp.f32 %v6102_v57  ;;  %v6099_v59 = vpop.xlane.xlu0 %6098 }
0x1f39   : > { %7736 = vrcp.f32 %v6099_v59 }
0x1f42   : > { %v7735_v0 = vpop.eup %7734 }
0x1f43   : > { %v7737_v46 = vpop.eup %7736  ;;  %v6110_v34 = vmul.f32 %v7735_v0, %v9503_v7 }
0x1f44   : > { %v6109_v48 = vmul.f32 %v7737_v46, %v9505_v40 }
0x1f45   : > { %v6114_v49 = vpack.c.bf16 %v6110_v34, %v6110_v34 }
0x1f46   : > { %v6113_v53 = vpack.c.bf16 %v6109_v48, %v6109_v48 }
0x1f47   : > { %7478 = vmatmul.mubr.msk.bf16.vlgmr.msra.gmra.mrb[88].mxu1 %vm1999_vm4, %v6114_v49 }
0x1f48   : > { %7472 = vmatmul.mubr.msk.bf16.vlgmr.msra.gmra.mrb[76].mxu0 %vm1999_vm4, %v6113_v53  ;;  %7493 = vmatprep.mubr.msk.bf16.mxu1 %vm8073_vm1, %v8072_v8 }
0x1f49   : > { %7485 = vmatprep.mubr.msk.bf16.mxu0 %vm8073_vm1, %v8072_v8  ;;  %7482 = vmatpush3.bf16.msra.mxu0 %v7656_v14  ;;  %v7662_v14 = vld [vmem:[%s9821_s19 + $0x30] sm:$0xff]  }
0x1f4a   : > { %7483 = vmatprep.subr.bf16.mxu0 %v8072_v8 }
0x1f4d   : > { %7484 = vmatpush3.bf16.msra.mxu0 %v7657_v37 }
0x1f4e   : > { %7497 = vmatprep.subr.bf16.mxu0 %v8072_v8 }
0x1ff2   : > { %v6152_v3 = vpop.f32.mrb[72].mxu0  ;;  %v6195_v60 = vpop.f32.mrb[84].mxu1 }
0x1ff3   : > { %v7461_v51 = vpop.f32.mrb[73].mxu0  ;;  %v7467_v26 = vpop.f32.mrb[85].mxu1 }
0x1ff4   : > { %v6155_v39 = vpop.f32.mrb[74].mxu0  ;;  %v6198_v7 = vpop.f32.mrb[86].mxu1 }
0x1ff5   : > { %v7462_v52 = vpop.f32.mrb[75].mxu0  ;;  %v7468_v40 = vpop.f32.mrb[87].mxu1 }
0x201a   : > { %v6281_v56 = vpop.f32.mrb[88].mxu1 }
0x201b   : > { %v6238_v1 = vpop.f32.mrb[76].mxu0  ;;  %v6303_v62 = vcombine.low %v6195_v60, %v6281_v56  ;;  %v6304_v2 = vcombine.high %v6195_v60, %v6281_v56  ;;  %v7479_v32 = vpop.f32.mrb[89].mxu1 }
0x201c   : > { %v6287_v27 = vcombine.low %v6152_v3, %v6238_v1  ;;  %v6288_v4 = vcombine.high %v6152_v3, %v6238_v1  ;;  %v7473_v5 = vpop.f32.mrb[77].mxu0  ;;  %v6284_v15 = vpop.f32.mrb[90].mxu1  ;;  %v7056_v3 = vld [vmem:[%s9820_s18 + $0x1] ss:$0 sm:$0xff] }
0x201d   : > { %v6311_v18 = vrot.slane %v6303_v62, %v8600_v44  ;;  %v6318_v54 = vrot.slane %v6304_v2, %v8600_v44  ;;  %v6241_v55 = vpop.f32.mrb[78].mxu0  ;;  %v7480_v61 = vpop.f32.mrb[91].mxu1  ;;  %v7661_v5 = vld [vmem:[%s9821_s19 + $0x28] sm:$0xff]  }
0x201e   : > { %v6295_v17 = vrot.slane %v6287_v27, %v8600_v44  ;;  %v6302_v12 = vrot.slane %v6288_v4, %v8600_v44  ;;  %v7474_v19 = vpop.f32.mrb[79].mxu0  ;;  %v7658_v27 = vld [vmem:[#allocation14 + $0x10] sm:$0xff]   ;;  %v7659_v4 = vld [vmem:[#allocation14 + $0x18] sm:$0xff]  }
0x201f   : > { %7490 = vmatpush3.bf16.msra.mxu1 %v7658_v27  ;;  %v7744_v55 = vld [vmem:[%s9816_s24 + $0x4] sm:$0x7] }
0x2020   : > { %v6319_v20 = vcombine.low %v6295_v17, %v6311_v18  ;;  %v6320_v11 = vcombine.high %v6295_v17, %v6311_v18  ;;  %v6335_v13 = vcombine.low %v6302_v12, %v6318_v54  ;;  %v6336_v24 = vcombine.high %v6302_v12, %v6318_v54  ;;  %7491 = vmatprep.subr.bf16.mxu1 %v8072_v8  ;;  %v7745_v19 = vld [vmem:[%s9817_s21 + $0x4] sm:$0x7] }
0x2021   : > { %v6517_v61 = vrot.slane %v7744_v55, %v9072_v58 }
0x2022   : > { %v6327_v22 = vrot.slane %v6319_v20, %v8603_v50  ;;  %v6334_v23 = vrot.slane %v6320_v11, %v8603_v50  ;;  %v6343_v63 = vrot.slane %v6335_v13, %v8603_v50  ;;  %v6350_v25 = vrot.slane %v6336_v24, %v8603_v50 }
0x2023   : > { %7492 = vmatpush3.bf16.msra.mxu1 %v7659_v4  ;;  %v6522_v20 = vrot.slane %v7745_v19, %v9072_v58  ;;  %v7061_v58 = vld [vmem:[%s9822_s17 + $0x1] ss:$0 sm:$0xff] }
0x2024   : > { %v6355_v28 = vcombine.low %v6327_v22, %v6334_v23  ;;  %v7054_v29 = vcombine.high %v6327_v22, %v6334_v23  ;;  %v6371_v30 = vcombine.low %v6343_v63, %v6350_v25  ;;  %v7055_v31 = vcombine.high %v6343_v63, %v6350_v25  ;;  %v7663_v22 = vld [vmem:[%s9821_s19 + $0x38] sm:$0xff]  }
0x2026   : > { %v6362_v47 = vrot.slane %v6355_v28, %v8600_v44  ;;  %v6370_v35 = vrot.slane %v7054_v29, %v8600_v44  ;;  %v6378_v9 = vrot.slane %v6371_v30, %v8600_v44  ;;  %v6386_v10 = vrot.slane %v7055_v31, %v8600_v44 }
0x2028   : > { %v6388_v42 = vcombine.high %v6362_v47, %v6370_v35  ;;  %v6404_v38 = vcombine.high %v6378_v9, %v6386_v10  ;;  %v6387_v16 = vcombine.low %v6362_v47, %v6370_v35  ;;  %v6403_v41 = vcombine.low %v6378_v9, %v6386_v10 }
0x202a   : > { %v6402_v43 = vrot.slane %v6388_v42, %v8603_v50  ;;  %v6418_v6 = vrot.slane %v6404_v38, %v8603_v50  ;;  %v6395_v36 = vrot.slane %v6387_v16, %v8603_v50  ;;  %v6411_v45 = vrot.slane %v6403_v41, %v8603_v50 }
0x202c   : > { %v6421_v33 = vcombine.low %v6402_v43, %v6418_v6  ;;  %v6420_v57 = vcombine.high %v6395_v36, %v6411_v45  ;;  %v6422_v59 = vcombine.high %v6402_v43, %v6418_v6  ;;  %v6419_v44 = vcombine.low %v6395_v36, %v6411_v45 }
0x202e   : > { %6428 = vrot.lane.b32.xlu1 %v6421_v33, %s9825_s29  ;;  %6424 = vrot.lane.b32.xlu0 %v6420_v57, %s9826_s22  ;;  %s9832_s29 = sld [smem:[#allocation45_spill]]  ;;  %s7083_s22 = sshll.u32 %s8221_s23, 7 }
0x202f   : > { %s9641_s8 = scalar_lea.hbm %s9833_s7, %s7083_s22  ;;  %s8084_s23 = smov [#allocation16]  }
0x2032   : > { %6432 = vrot.lane.b32.xlu0 %v6422_v59, %s9827_s6  ;;  %s854_s6 = scalar_lea.vmem [#allocation16], %s8504_s2  ;;  %s7980_s2 = sshll.u32 %s8084_s23, 4  ;;  %s7981_s2 = int_to_ptr.vmem [resolvable:$false] %s7980_s2 }
0x2033   : > { %s6725_s4 = sshll.u32 %s854_s6, 4  ;;  %s9643_s4 = int_to_ptr.vmem [resolvable:$true] %s6725_s4 }
0x2034   : > { %s7976_s26 = scalar_lea.vmem %s9643_s4, 128  ;;  %p7983_p4 = scmp.lt.s32.totalorder %s9643_s4, %s7981_s2 }
0x2035   : > { %p7977_p8 = scmp.ne.s32.totalorder %s9643_s4, %s7976_s26 }
0x2037   : > { %p7978_p5 = pnand %p7977_p8, %p9834_p6 }
0x2039   : > { %p7979_p2 = pneg %p7978_p5 }
0x20a0   : > { %v6425_v0 = vpop.permute.xlu0 %6424  ;;  %v6429_v46 = vpop.permute.xlu1 %6428 }
0x20a1   : > { %v6435_v34 = vsel %vm1432_vm2, %v6419_v44, %v6425_v0  ;;  %v7080_v44 = vld [vmem:[%s9831_s15] ss:$0 sm:$0xff]  ;;  %s7982_s15 = scalar_lea.vmem %s7981_s2, 256 }
0x20a2   : > { %v6436_v49 = vsel %vm1999_vm4, %v6435_v34, %v6429_v46  ;;  %v7081_v46 = vld [vmem:[%s9832_s29] ss:$0 sm:$0xff]  ;;  %p7984_p10 = scmp.lt.s32.totalorder %s7982_s15, %s7976_s26 }
0x20a4   : > { %v6433_v48 = vpop.permute.xlu0 %6432  ;;  %p7985_p13 = por %p7984_p10, %p7983_p4 }
0x20a5   : > { %v6437_v53 = vsel %vm2001_vm5, %v6436_v49, %v6433_v48 }
0x20a6   : > { %v6438_v50 = vpack.c.bf16 %v6437_v53, %v6437_v53  ;;  %p7986_p11 = pnand %p7985_p13, %p7979_p2 }
0x20a8   : > { %7486 = vmatmul.mubr.msk.bf16.vlgmr.msra.gmra.mrb[80].mxu0 %vm873_vm0, %v6438_v50 }
0x20a9   : > { %7505 = vmatprep.mubr.msk.bf16.mxu0 %vm8073_vm1, %v8072_v8 }
0x217b   : > { %v6494_v60 = vpop.f32.mrb[80].mxu0 }
0x217c   : > { %v6495_v51 = vadd.f32 %v7056_v3, %v6494_v60  ;;  %v7487_v26 = vpop.f32.mrb[81].mxu0 }
0x217d   : > { %v6497_v39 = vpop.f32.mrb[82].mxu0 }
0x217e   : > { %v6500_v7 = vadd.f32 %v6495_v51, %v9317_v21  ;;  %v7488_v52 = vpop.f32.mrb[83].mxu0  ;;  %v7660_v21 = vld [vmem:[%s9821_s19 + $0x20] sm:$0xff]  }
0x217f   : > { %7498 = vmatpush3.bf16.msra.mxu0 %v7660_v21 }
0x2180   : > { %v6501_v40 = vsel %vm873_vm0, %v6500_v7, 0.0  ;;  %7499 = vmatprep.subr.bf16.mxu0 %v8072_v8 }
0x2181   : > { %6502 = vadd.xlane.f32.xlu1 %v6501_v40 }
0x2183   : > { %7500 = vmatpush3.bf16.msra.mxu0 %v7661_v5 }
0x2184   : > { %7501 = vmatprep.subr.bf16.mxu0 %v8072_v8 }
0x2187   : > { %7502 = vmatpush3.bf16.msra.mxu0 %v7662_v14 }
0x2188   : > { %7503 = vmatprep.subr.bf16.mxu0 %v8072_v8  ;;  %v7079_v8 = vld [vmem:[%s9824_s12 + $0x1] ss:$0 sm:$0xff] }
0x218b   : > { %7504 = vmatpush3.bf16.msra.mxu0 %v7663_v22 }
0x220e   : > { %v6503_v56 = vpop.xlane.xlu1 %6502 }
0x220f   : > { %v6504_v1 = vmul.f32 0.03125, %v6503_v56 }
0x2211   : > { %v6505_v62 = vsub.f32 %v6500_v7, %v6504_v1 }
0x2213   : > { %v6506_v2 = vmul.f32 %v6505_v62, %v6505_v62 }
0x2215   : > { %v6507_v32 = vsel %vm873_vm0, %v6506_v2, 0.0 }
0x2216   : > { %6508 = vadd.xlane.f32.xlu0 %v6507_v32 }
0x22a3   : > { %v6509_v15 = vpop.xlane.xlu0 %6508 }
0x22a4   : > { %v6510_v18 = vmul.f32 0.03125, %v6509_v15 }
0x22a6   : > { %v6511_v54 = vadd.f32 1e-05, %v6510_v18 }
0x22a8   : > { %7738 = vrsqrt.f32 %v6511_v54 }
0x22b2   : > { %v7739_v17 = vpop.eup %7738 }
0x22b3   : > { %v6513_v12 = vmul.f32 %v7739_v17, %v6505_v62 }
0x22b5   : > { %v6518_v11 = vmul.f32 %v6517_v61, %v6513_v12 }
0x22b7   : > { %v6523_v13 = vadd.f32 %v6522_v20, %v6518_v11 }
0x22b9   : > { %v6524_v24 = vpack.c.bf16 %v6523_v13, %v6523_v13 }
0x22bb   : > { %7494 = vmatmul.mubr.msk.bf16.vlgmr.msra.gmra.mrb[92].mxu1 %vm873_vm0, %v6524_v24 }
0x238e   : > { %v6587_v23 = vpop.f32.mrb[92].mxu1 }
0x238f   : > { %v6588_v63 = vadd.f32 %v7061_v58, %v6587_v23  ;;  %v7495_v25 = vpop.f32.mrb[93].mxu1 }
0x2390   : > { %v6590_v28 = vpop.f32.mrb[94].mxu1 }
0x2391   : > { %v6593_v29 = vmax.f32 %v6588_v63, 0.0  ;;  %v7496_v30 = vpop.f32.mrb[95].mxu1 }
0x2393   : > { %v6594_v31 = vpack.c.bf16 %v6593_v29, %v6593_v29 }
0x2395   : > { %7506 = vmatmul.mubr.msk.bf16.vlgmr.msra.gmra.mrb[84].mxu0 %vm3723_vm6, %v6594_v31 }
0x2468   : > { %v6665_v47 = vpop.f32.mrb[84].mxu0 }
0x2469   : > { %v6671_v35 = vadd.f32 %v6665_v47, %v6500_v7  ;;  %v7507_v9 = vpop.f32.mrb[85].mxu0 }
0x246a   : > { %v6668_v10 = vpop.f32.mrb[86].mxu0 }
0x246b   : > { %v6680_v37 = vadd.f32 %v7079_v8, %v6671_v35  ;;  %v7508_v42 = vpop.f32.mrb[87].mxu0 }
0x246d   : > { %v6683_v38 = vsel %vm873_vm0, %v6680_v37, 0.0 }
0x246e   : > { %6684 = vadd.xlane.f32.xlu0 %v6683_v38 }
0x24fb   : > { %v6685_v16 = vpop.xlane.xlu0 %6684 }
0x24fc   : > { %v6686_v41 = vmul.f32 0.03125, %v6685_v16 }
0x24fe   : > { %v6687_v43 = vsub.f32 %v6680_v37, %v6686_v41 }
0x2500   : > { %v6688_v6 = vmul.f32 %v6687_v43, %v6687_v43 }
0x2502   : > { %v6689_v36 = vsel %vm873_vm0, %v6688_v6, 0.0 }
0x2503   : > { %6690 = vadd.xlane.f32.xlu1 %v6689_v36 }
0x2590   : > { %v6691_v45 = vpop.xlane.xlu1 %6690 }
0x2591   : > { %v6692_v33 = vmul.f32 0.03125, %v6691_v45 }
0x2593   : > { %v6693_v57 = vadd.f32 1e-05, %v6692_v33 }
0x2595   : > { %7740 = vrsqrt.f32 %v6693_v57 }
0x259f   : > { %v7741_v59 = vpop.eup %7740 }
0x25a0   : > { %v6695_v0 = vmul.f32 %v7741_v59, %v6687_v43 }
0x25a2   : > { %v6702_v34 = vmul.f32 %v7080_v44, %v6695_v0 }
0x25a4   : > { %v6709_v48 = vadd.f32 %v7081_v46, %v6702_v34 }
0x25a6   : > { %6710 = vst.msk [vmem:[%s854_s6] sm:$0xff] %vm873_vm0, %v6709_v48 }
0x25a7   : > { %7989 = shalt.err (!%p7986_p11)
}
0x25a8   : > { %s7990_s5 = scalar_lea.hbm %s9641_s8, 128  ;;  %s7994_s1 = scalar_lea.hbm %s9833_s7, 256 }
0x25a9   : > { %p7991_p12 = scmp.ne.s32.totalorder %s9641_s8, %s7990_s5  ;;  %p7995_p9 = scmp.lt.u32.totalorder %s9641_s8, %s9833_s7 }
0x25aa   : > { %p7996_p3 = scmp.lt.u32.totalorder %s7994_s1, %s7990_s5  ;;  %p7998_p8 = scmp.lt.u32.totalorder %s7990_s5, %s9641_s8 }
0x25ab   : > { %p7992_p0 = pnand %p7991_p12, %p9834_p6 }
0x25ac   : > { %p7997_p1 = por %p7996_p3, %p7995_p9 }
0x25ad   : > { %p7993_p7 = pneg %p7992_p0 }
0x25ae   : > { %p7999_p5 = por %p7998_p8, %p7997_p1 }
0x25b0   : > { %p8000_p2 = pnand %p7999_p5, %p7993_p7 }
0x25b2   : > { %8003 = shalt.err (!%p8000_p2)
}
0x25b3   : > { %7535 = dma.vmem_to_hbm [thread:$0]  (%p9834_p6), %s9643_s4, 128, %s9641_s8, %s6712_s25  }
0x25b4 PF: > { %s9835_s6 = sld [smem:[#allocation23_spill]]  ;;  %s9836_s0 = sld [smem:[#allocation28_spill]] }
0x25b5   : > { %p9838_p10 = scmp.ge.s32.totalorder %s8058_s30, 2 }
0x25ba   : > { %s6737_s26 = sand.u32 1, %s9835_s6   ;;  %p9837_p4 = scmp.ne.s32.totalorder %s9836_s0, 0 }
0x25bb   : > { %s6738_s23 = scalar_lea.sflag [#allocation4], %s6737_s26 }
0x25bc   : > { %p7564_p13 = pnand %p9838_p10, %p9837_p4 }
0x25be   : > { %8041 = dma.done.wait (!%p7564_p13), %s6738_s23, 128  }
0x25bf   : > { %8043 = vsyncadd (!%p7564_p13), %s6738_s23, 4294967168  ;;  %s9839_s30 = sld [smem:[#allocation25_spill]]  ;;  %s9840_s2 = sld [smem:[#allocation24_spill]] }
0x25c0   : > { %s9841_s29 = sld [smem:[#allocation26_spill]]  ;;  %s9842_s3 = smov %s8050_s28 }
0x25c5   : > { %p41_p11 = scmp.ge.s32.totalorder %s9839_s30, 4   ;;  %s9843_s28 = smov %s9840_s2 }
0x25c7   :  { %43 = sbr.rel (!%p41_p11) target bundleno = 29 (0x1d), region = 216 }
0x25ce   :  { %6743 = vsyncpa [#allocation3], 1 }
0x25cf   :  { %6745 = vsyncpa [#allocation3 + $0x1], 1 }
0x25d0   :  { %6746 = vsyncpa [#allocation6], 1 }
0x25d1   :  { %6748 = vsyncpa [#allocation6 + $0x1], 1 }
0x25d2   :  { %6749 = vsyncpa [#allocation9], 1 }
0x25d3   :  { %6750 = vsyncpa [#allocation12], 1 }
0x25d4   :  { %6751 = vsyncpa [#allocation15], 1 }
0x25d5   :  { %6752 = vsyncpa [#allocation4], 1 }
0x25d6   :  { %6754 = vsyncpa [#allocation4 + $0x1], 1 }

</bundles_post_ra>
